<compile_context>
chip_gen: v7x
topology: tpu7x:2x2x1
jax: 0.10.0
libtpu: 0.0.40
codegen_flags: <defaults>
</compile_context>

<pallas_src>
import functools

import jax
import jax.numpy as jnp
from jax.experimental import pallas as pl
from jax.experimental.pallas import tpu as pltpu

LANE = 128


def _imv_kernel(x_ref,
                wbig_ref, uall_ref, ball_ref,
                fa_ref, fab_ref, en_ref,
                gtail_ref, gbtail_ref,
                eo_ref, ssum_ref, pwu_ref, ball2_ref,
                out_ref, alpha_ref, fc_ref, beta_ref,
                xu_ref):
    T, B, Dn = out_ref.shape
    D = x_ref.shape[2]
    Lp = alpha_ref.shape[2]          # 128-lane padded width
    FS = fc_ref.shape[0]
    G4 = 4 * Dn
    f32 = jnp.float32

    def mm(a, w):
        # MXU matmul, f32 accumulation; LHS cast to the weight's storage dtype.
        return jnp.dot(a.astype(w.dtype), w, preferred_element_type=f32)

    def lstm_update(z, c):
        j = jnp.tanh(z[:, :Dn])
        i = jax.nn.sigmoid(z[:, Dn:2 * Dn])
        f = jax.nn.sigmoid(z[:, 2 * Dn:3 * Dn])
        o = jax.nn.sigmoid(z[:, 3 * Dn:])
        c = c * f + i * j
        h = o * jnp.tanh(c)
        # TODO(synk): nn.Dropout is modeled in eval mode (identity); training-mode
        # stochastic dropout is not reproduced.
        return h, c

    # ---------------- precompute all encoder input projections (one matmul) -----
    xu_ref[...] = (mm(x_ref[...].reshape(T * B, D), uall_ref[...])
                   .reshape(T, B, G4) + ball_ref[...])

    # Full unroll only for short loops (long unroll -> vreg spills).
    unroll_t = True if T <= 32 else 8
    unroll_s = True if FS <= 32 else 8

    # ---------------- encoder recurrence (one fused matmul per step) ------------
    def enc_body(t, carry):
        h, c = carry
        z = mm(h, wbig_ref[:, :G4]) + xu_ref[t]      # gate columns only (aligned)
        h, c = lstm_update(z, c)
        out_ref[t] = h                               # (B, Dn) lane-dense store
        return (h, c)

    h0 = jnp.zeros((B, Dn), f32)
    c0 = jnp.zeros((B, Dn), f32)
    h, c = jax.lax.fori_loop(0, T, enc_body, (h0, c0), unroll=unroll_t)

    # ---------------- attention over time (fully vectorized, no loop) -----------
    # exp() without max subtraction: scores are tanh-bounded to [-1, 1].
    H = out_ref[...]                                             # (T, B, Dn)
    Hf = H.reshape(T * B, Dn)
    sc = jnp.tanh(mm(Hf, fa_ref[...]) + fab_ref[...])            # (T*B, 128) padded
    e = jnp.exp(sc).reshape(T, B, Lp)
    den = jnp.sum(e, axis=0)                                     # (B, 128)
    alpha = e / den[None]                                        # exact (off serial chain)
    alpha_ref[...] = alpha                                       # one lane-dense store

    ab = mm(alpha.reshape(T * B, Lp), en_ref[...]).reshape(T, B, Dn)
    g = jnp.sum(ab * H, axis=0)                                  # (B, Dn) == g_n

    # ---------------- decoder: hoist loop-invariant g-side projections ----------
    # Tail layout (128 lanes): [F_beta (D) | Phi/mu (D*O) | zeros].
    g_tail = mm(g, gtail_ref[...]) + gbtail_ref[...]             # (B, 128)
    lane = jax.lax.broadcasted_iota(jnp.int32, (1, Lp), 1)
    beta_mask = (lane < D).astype(f32)                           # variables live in first D lanes

    def dec_body(s, carry):
        h, c = carry
        hz = mm(h, wbig_ref[...])                                # (B, 4Dn + 128), one MXU op
        gates_h = hz[:, :G4]
        pre = g_tail + hz[:, G4:]                                # beta pre-acts | mu | 0
        be = jnp.exp(jnp.tanh(pre)) * beta_mask                  # tanh-bounded exp, masked
        be = be * pl.reciprocal(jnp.sum(be, axis=1, keepdims=True), approx=True)
        beta_ref[s] = be                                         # lane-dense store
        be_mu = mm(be, eo_ref[...]) * pre                        # betas scattered onto mu lanes
        y = mm(be_mu, ssum_ref[...])                             # (B, 128), first O lanes real
        fc_ref[s] = y                                            # lane-dense store
        # input_projector fused with U_all -> single matmul on the serial chain
        z = gates_h + mm(y, pwu_ref[...]) + ball2_ref[...]
        h, c = lstm_update(z, c)
        return (h, c)

    jax.lax.fori_loop(0, FS, dec_body, (h, c), unroll=unroll_s)


def _pack_params(params, weights_dtype):
    """Pack per-variable parameters into fused, lane-aligned 2-D matmul operands."""
    f32 = jnp.float32
    D, n, _ = params['W_j'].shape
    O = params['Phi_W'].shape[0]
    Dn, DO = D * n, D * O
    assert D + DO <= LANE and O <= LANE, "tail layout requires D + D*O <= 128"
    eyeD = jnp.eye(D, dtype=f32)

    def bdiag(W):                              # (D, n, n) -> (Dn, Dn) block-diag
        return jnp.einsum('dab,de->daeb', W.astype(f32), eyeD).reshape(Dn, Dn)

    def uscatter(U):                           # (D, 1, n) -> (D, Dn) block-scatter
        return jnp.einsum('db,de->deb', U[:, 0, :].astype(f32), eyeD).reshape(D, Dn)

    W_all = jnp.concatenate([bdiag(params['W_j']), bdiag(params['W_i']),
                             bdiag(params['W_f']), bdiag(params['W_o'])], axis=1)
    U_all = jnp.concatenate([uscatter(params['U_j']), uscatter(params['U_i']),
                             uscatter(params['U_f']), uscatter(params['U_o'])], axis=1)
    b_all = jnp.concatenate([params['b_j'].reshape(1, Dn), params['b_i'].reshape(1, Dn),
                             params['b_f'].reshape(1, Dn), params['b_o'].reshape(1, Dn)],
                            axis=1).astype(f32)

    # Attention score projection, zero-padded to a full 128-lane output block.
    Fa = jnp.einsum('da,de->dae', params['F_alpha_n'][:, :, 0].astype(f32),
                    eyeD).reshape(Dn, D)
    Fa_pad = jnp.pad(Fa, ((0, 0), (0, LANE - D)))
    Fab_pad = jnp.pad(params['F_alpha_n_b'].reshape(1, D).astype(f32),
                      ((0, 0), (0, LANE - D)))

    # alpha lane d -> per-(variable, unit) broadcast; zero rows for pad lanes.
    En_pad = jnp.pad(jnp.kron(eyeD, jnp.ones((1, n), f32)), ((0, LANE - D), (0, 0)))

    PhiW = params['Phi_W'].astype(f32)                 # (O, 2n)
    FbW = params['F_beta_W'].astype(f32)               # (1, 2n)
    Fbh = jnp.kron(eyeD, FbW[:, n:].T)                 # (Dn, D)
    Phih = jnp.kron(eyeD, PhiW[:, n:].T)               # (Dn, DO)
    tail_h = jnp.pad(jnp.concatenate([Fbh, Phih], axis=1),
                     ((0, 0), (0, LANE - D - DO)))
    Wbig = jnp.concatenate([W_all, tail_h], axis=1)    # (Dn, 4Dn + 128)

    Fbg = jnp.kron(eyeD, FbW[:, :n].T)                 # (Dn, D)
    Phig = jnp.kron(eyeD, PhiW[:, :n].T)               # (Dn, DO)
    Gtail = jnp.pad(jnp.concatenate([Fbg, Phig], axis=1),
                    ((0, 0), (0, LANE - D - DO)))      # (Dn, 128)
    Fbb = jnp.full((1, D), params['F_beta_b'][0], f32)
    Phib = jnp.tile(params['Phi_b'].astype(f32), (D,)).reshape(1, DO)
    gb_tail = jnp.pad(jnp.concatenate([Fbb, Phib], axis=1),
                      ((0, 0), (0, LANE - D - DO)))    # (1, 128)

    # Scatter betas (lane d) onto the mu lanes D + d*O + o of the tail block.
    EO = jnp.zeros((LANE, LANE), f32).at[
        jnp.repeat(jnp.arange(D), O), D + jnp.arange(DO)].set(1.0)
    # Sum weighted mu lanes over variables into the first O lanes.
    Ssum = jnp.zeros((LANE, LANE), f32).at[
        D + jnp.arange(DO), jnp.tile(jnp.arange(O), D)].set(1.0)

    # input_projector fused with the recurrent input projection.
    PW = params['proj_W'].astype(f32).T                # (O, D)
    Pb = params['proj_b'].reshape(1, D).astype(f32)
    PWU = jnp.pad(PW @ U_all, ((0, LANE - O), (0, 0))) # (128, 4Dn)
    ball2 = Pb @ U_all + b_all                         # (1, 4Dn)

    wd = weights_dtype
    return [Wbig.astype(wd), U_all.astype(wd), b_all,
            Fa_pad.astype(wd), Fab_pad, En_pad,        # selection matrices stay f32
            Gtail.astype(wd), gb_tail,
            EO, Ssum, PWU.astype(wd), ball2]


def _choose_batch_tiling(B, T, Dn):
    """Per-grid batch tile (BB) and padded batch size."""
    B8 = max(8, ((B + 7) // 8) * 8)
    if B8 <= 8:
        BB = 8
    else:
        # >=2 grid tiles so both v7x TensorCores get work on the "parallel" axis.
        # TODO(synk): on v6e a 256-row tile fills the 256x256 MXU for very large B.
        BB = min(128, ((B8 // 2 + 7) // 8) * 8)
    # Crude VMEM audit (v7x: 64 MiB physical / 32 MiB scoped): xu scratch +
    # double-buffered hidden-state output, both linear in T.
    def vmem_bytes(bb):
        return 4 * (T * bb * 4 * Dn + 2 * T * bb * Dn)
    while BB > 8 and vmem_bytes(BB) > 24 * 1024 * 1024:
        BB = max(8, ((BB // 2) // 8) * 8)
    B_pad = ((B + BB - 1) // BB) * BB
    return BB, B_pad


def imv_forward(params, x, forecast_steps, weights_dtype=jnp.bfloat16):
    """x: (B, T, input_dim) float32. Returns (forecasts, alphas, betas_all, outputs)."""
    B, T, D = x.shape
    n = params['W_j'].shape[1]
    O = params['Phi_W'].shape[0]
    Dn = D * n
    FS = forecast_steps
    f32 = jnp.float32

    weight_list = _pack_params(params, weights_dtype)

    BB, B_pad = _choose_batch_tiling(B, T, Dn)
    x_p = jnp.pad(x.astype(f32), ((0, B_pad - B), (0, 0), (0, 0)))
    x_t = jnp.transpose(x_p, (1, 0, 2))                          # (T, B_pad, D)
    # TODO(synk): pre-flattening x to (T*B_pad, D) would avoid a small in-kernel
    # relayout of the tiny x block; low priority.

    grid = (B_pad // BB,)

    def bspec(shape):   # 3-D arrays blocked along the batch axis (axis 1)
        return pl.BlockSpec(shape, lambda b: (0, b, 0))

    def wspec(shape):   # weights: full block, independent of the grid index
        nd = len(shape)
        # TODO(synk): pl.Buffered(1) on these constant weight blocks would halve
        # their VMEM footprint at large Dn; omitted here (negligible at Dn=128).
        return pl.BlockSpec(shape, lambda b, nd=nd: (0,) * nd)

    out_shapes = (
        jax.ShapeDtypeStruct((T, B_pad, Dn), f32),               # hidden states
        jax.ShapeDtypeStruct((T, B_pad, LANE), f32),             # alphas (lane-padded)
        jax.ShapeDtypeStruct((FS, B_pad, LANE), f32),            # forecasts (lane-padded)
        jax.ShapeDtypeStruct((FS, B_pad, LANE), f32),            # betas (lane-padded)
    )

    outs, alphas, fcs, betas = pl.pallas_call(
        _imv_kernel,
        out_shape=out_shapes,
        grid=grid,
        in_specs=[bspec((T, BB, D))] + [wspec(w.shape) for w in weight_list],
        out_specs=(bspec((T, BB, Dn)), bspec((T, BB, LANE)),
                   bspec((FS, BB, LANE)), bspec((FS, BB, LANE))),
        scratch_shapes=[pltpu.VMEM((T, BB, 4 * Dn), f32)],       # precomputed x @ U
        compiler_params=pltpu.CompilerParams(
            dimension_semantics=("parallel",),
            vmem_limit_bytes=32 * 1024 * 1024),
    )(x_t, *weight_list)

    outputs = jnp.transpose(outs, (1, 0, 2))[:B].reshape(B, T, D, n)
    alphas_o = jnp.transpose(alphas, (1, 0, 2))[:B, :, :D][..., None]   # (B, T, D, 1)
    forecasts = jnp.transpose(fcs, (1, 0, 2))[:B, :, :O]                # (B, FS, O)
    betas_all = jnp.transpose(betas, (1, 0, 2))[:B, :, :D][..., None]   # (B, FS, D, 1)
    return forecasts, alphas_o, betas_all, outputs


def init_params(key, input_dim, output_dim, n_units, init_std=0.02):
    D, n, O = input_dim, n_units, output_dim
    keys = jax.random.split(key, 20)

    def rnd(k, shape, scale=init_std):
        return jax.random.normal(k, shape, jnp.float32) * scale

    return {
        'U_j': rnd(keys[0], (D, 1, n)), 'U_i': rnd(keys[1], (D, 1, n)),
        'U_f': rnd(keys[2], (D, 1, n)), 'U_o': rnd(keys[3], (D, 1, n)),
        'W_j': rnd(keys[4], (D, n, n)), 'W_i': rnd(keys[5], (D, n, n)),
        'W_f': rnd(keys[6], (D, n, n)), 'W_o': rnd(keys[7], (D, n, n)),
        'b_j': rnd(keys[8], (D, n)), 'b_i': rnd(keys[9], (D, n)),
        'b_f': rnd(keys[10], (D, n)), 'b_o': rnd(keys[11], (D, n)),
        'F_alpha_n': rnd(keys[12], (D, n, 1)),
        'F_alpha_n_b': rnd(keys[13], (D, 1)),
        # nn.Linear params (deterministic normal init instead of torch uniform)
        'F_beta_W': rnd(keys[14], (1, 2 * n), 0.1),
        'F_beta_b': rnd(keys[15], (1,), 0.1),
        'Phi_W': rnd(keys[16], (O, 2 * n), 0.1),
        'Phi_b': rnd(keys[17], (O,), 0.1),
        'proj_W': rnd(keys[18], (D, O), 0.1),
        'proj_b': rnd(keys[19], (D,), 0.1),
    }


if __name__ == "__main__":
    B, T = 2, 8                  # batch, input sequence length
    input_dim, output_dim, n_units, forecast_steps = 4, 4, 32, 3

    key = jax.random.PRNGKey(0)
    pkey, xkey = jax.random.split(key)
    params = init_params(pkey, input_dim, output_dim, n_units)
    x = jax.random.normal(xkey, (B, T, input_dim), jnp.float32)

    fwd = jax.jit(functools.partial(imv_forward, forecast_steps=forecast_steps))
    forecasts, alphas, betas_all, outputs = fwd(params, x)
    jax.block_until_ready((forecasts, alphas, betas_all, outputs))

    assert forecasts.shape == (B, forecast_steps, output_dim)
    assert alphas.shape == (B, T, input_dim, 1)
    assert betas_all.shape == (B, forecast_steps, input_dim, 1)
    assert outputs.shape == (B, T, input_dim, n_units)
    assert bool(jnp.all(jnp.isfinite(forecasts)))
    assert bool(jnp.all(jnp.isfinite(alphas)))
    assert bool(jnp.all(jnp.isfinite(betas_all)))
    assert bool(jnp.all(jnp.isfinite(outputs)))
    print("KERNEL_OK")
</pallas_src>

<mosaic_0001>
module attributes {stable_mosaic.version = 11 : i64} {
  func.func @_imv_kernel(%arg0: i32, %arg1: memref<8x8x4xf32, #tpu.memory_space<vmem>>, %arg2: memref<128x640xbf16, #tpu.memory_space<vmem>>, %arg3: memref<4x512xbf16, #tpu.memory_space<vmem>>, %arg4: memref<1x512xf32, #tpu.memory_space<vmem>>, %arg5: memref<128x128xbf16, #tpu.memory_space<vmem>>, %arg6: memref<1x128xf32, #tpu.memory_space<vmem>>, %arg7: memref<128x128xf32, #tpu.memory_space<vmem>>, %arg8: memref<128x128xbf16, #tpu.memory_space<vmem>>, %arg9: memref<1x128xf32, #tpu.memory_space<vmem>>, %arg10: memref<128x128xf32, #tpu.memory_space<vmem>>, %arg11: memref<128x128xf32, #tpu.memory_space<vmem>>, %arg12: memref<128x512xbf16, #tpu.memory_space<vmem>>, %arg13: memref<1x512xf32, #tpu.memory_space<vmem>>, %arg14: memref<8x8x128xf32, #tpu.memory_space<vmem>>, %arg15: memref<8x8x128xf32, #tpu.memory_space<vmem>>, %arg16: memref<3x8x128xf32, #tpu.memory_space<vmem>>, %arg17: memref<3x8x128xf32, #tpu.memory_space<vmem>>, %arg18: memref<8x8x512xf32, #tpu.memory_space<vmem>>) attributes {dimension_semantics = [#tpu.dimension_semantics<parallel>], iteration_bounds = array<i64: 1>, scalar_prefetch = 0 : i64, scratch_operands = 1 : i64, tpu.core_type = #tpu.core_type<tc>, window_params = [{transform_indices = @transform_0, window_bounds = array<i64: 8, 8, 4>}, {pipeline_mode = #tpu.pipeline_mode<synchronous>, transform_indices = @transform_1, window_bounds = array<i64: 128, 640>}, {pipeline_mode = #tpu.pipeline_mode<synchronous>, transform_indices = @transform_2, window_bounds = array<i64: 4, 512>}, {pipeline_mode = #tpu.pipeline_mode<synchronous>, transform_indices = @transform_3, window_bounds = array<i64: 1, 512>}, {pipeline_mode = #tpu.pipeline_mode<synchronous>, transform_indices = @transform_4, window_bounds = array<i64: 128, 128>}, {pipeline_mode = #tpu.pipeline_mode<synchronous>, transform_indices = @transform_5, window_bounds = array<i64: 1, 128>}, {pipeline_mode = #tpu.pipeline_mode<synchronous>, transform_indices = @transform_6, window_bounds = array<i64: 128, 128>}, {pipeline_mode = #tpu.pipeline_mode<synchronous>, transform_indices = @transform_7, window_bounds = array<i64: 128, 128>}, {pipeline_mode = #tpu.pipeline_mode<synchronous>, transform_indices = @transform_8, window_bounds = array<i64: 1, 128>}, {pipeline_mode = #tpu.pipeline_mode<synchronous>, transform_indices = @transform_9, window_bounds = array<i64: 128, 128>}, {pipeline_mode = #tpu.pipeline_mode<synchronous>, transform_indices = @transform_10, window_bounds = array<i64: 128, 128>}, {pipeline_mode = #tpu.pipeline_mode<synchronous>, transform_indices = @transform_11, window_bounds = array<i64: 128, 512>}, {pipeline_mode = #tpu.pipeline_mode<synchronous>, transform_indices = @transform_12, window_bounds = array<i64: 1, 512>}, {transform_indices = @transform_13, window_bounds = array<i64: 8, 8, 128>}, {transform_indices = @transform_14, window_bounds = array<i64: 8, 8, 128>}, {transform_indices = @transform_15, window_bounds = array<i64: 3, 8, 128>}, {transform_indices = @transform_16, window_bounds = array<i64: 3, 8, 128>}]} {
    %c0 = arith.constant 0 : index
    %c0_0 = arith.constant 0 : index
    %c0_1 = arith.constant 0 : index
    %0 = vector.load %arg1[%c0, %c0_0, %c0_1] : memref<8x8x4xf32, #tpu.memory_space<vmem>>, vector<8x8x4xf32>
    %1 = vector.shape_cast %0 : vector<8x8x4xf32> to vector<64x4xf32>
    %c0_2 = arith.constant 0 : index
    %c0_3 = arith.constant 0 : index
    %2 = vector.load %arg3[%c0_2, %c0_3] : memref<4x512xbf16, #tpu.memory_space<vmem>>, vector<4x512xbf16>
    %3 = arith.truncf %1 : vector<64x4xf32> to vector<64x4xbf16>
    %cst = arith.constant dense<0.000000e+00> : vector<64x512xf32>
    %4 = tpu.matmul %3, %2, %cst {dimension_numbers = #tpu.dot_dimension_numbers<[1], [0], [0], [1], [0, 0, 1, 1], [], []>} : vector<64x4xbf16>, vector<4x512xbf16>, vector<64x512xf32> -> vector<64x512xf32>
    %5 = vector.shape_cast %4 : vector<64x512xf32> to vector<8x8x512xf32>
    %c0_4 = arith.constant 0 : index
    %c0_5 = arith.constant 0 : index
    %6 = vector.load %arg4[%c0_4, %c0_5] : memref<1x512xf32, #tpu.memory_space<vmem>>, vector<1x512xf32>
    %7 = vector.shape_cast %6 : vector<1x512xf32> to vector<1x1x512xf32>
    %8 = vector.broadcast %7 : vector<1x1x512xf32> to vector<8x8x512xf32>
    %9 = arith.addf %5, %8 : vector<8x8x512xf32>
    %c0_6 = arith.constant 0 : index
    %c0_7 = arith.constant 0 : index
    %c0_8 = arith.constant 0 : index
    %10 = vector.load %arg18[%c0_6, %c0_7, %c0_8] : memref<8x8x512xf32, #tpu.memory_space<vmem>>, vector<8x8x512xf32>
    tpu.vector_store %arg18[%c0_6, %c0_7, %c0_8], %9 {strides = array<i32>} : memref<8x8x512xf32, #tpu.memory_space<vmem>>, vector<8x8x512xf32>,
    %cst_9 = arith.constant 0.000000e+00 : f32
    %11 = vector.broadcast %cst_9 : f32 to vector<8x128xf32>
    %cst_10 = arith.constant 0.000000e+00 : f32
    %12 = vector.broadcast %cst_10 : f32 to vector<8x128xf32>
    %c0_i32 = arith.constant 0 : i32
    %c0_11 = arith.constant 0 : index
    %c0_12 = arith.constant 0 : index
    %13 = vector.load %arg2[%c0_11, %c0_12] : memref<128x640xbf16, #tpu.memory_space<vmem>>, vector<128x512xbf16>
    %14 = arith.truncf %11 : vector<8x128xf32> to vector<8x128xbf16>
    %cst_13 = arith.constant dense<0.000000e+00> : vector<8x512xf32>
    %15 = tpu.matmul %14, %13, %cst_13 {dimension_numbers = #tpu.dot_dimension_numbers<[1], [0], [0], [1], [0, 0, 1, 1], [], []>} : vector<8x128xbf16>, vector<128x512xbf16>, vector<8x512xf32> -> vector<8x512xf32>
    %16 = arith.index_cast %c0_i32 : i32 to index
    %c0_14 = arith.constant 0 : index
    %c0_15 = arith.constant 0 : index
    %17 = vector.load %arg18[%16, %c0_14, %c0_15] : memref<8x8x512xf32, #tpu.memory_space<vmem>>, vector<1x8x512xf32>
    %18 = vector.shape_cast %17 : vector<1x8x512xf32> to vector<8x512xf32>
    %19 = arith.addf %15, %18 : vector<8x512xf32>
    %20 = vector.extract_strided_slice %19 {offsets = [0, 0], sizes = [8, 128], strides = [1, 1]} : vector<8x512xf32> to vector<8x128xf32>
    %21 = math.tanh %20 : vector<8x128xf32>
    %22 = vector.extract_strided_slice %19 {offsets = [0, 128], sizes = [8, 128], strides = [1, 1]} : vector<8x512xf32> to vector<8x128xf32>
    %23 = arith.negf %22 : vector<8x128xf32>
    %24 = math.exp %23 : vector<8x128xf32>
    %cst_16 = arith.constant 1.000000e+00 : f32
    %25 = vector.broadcast %cst_16 : f32 to vector<8x128xf32>
    %26 = arith.addf %25, %24 : vector<8x128xf32>
    %27 = arith.divf %25, %26 : vector<8x128xf32>
    %28 = vector.extract_strided_slice %19 {offsets = [0, 256], sizes = [8, 128], strides = [1, 1]} : vector<8x512xf32> to vector<8x128xf32>
    %29 = arith.negf %28 : vector<8x128xf32>
    %30 = math.exp %29 : vector<8x128xf32>
    %cst_17 = arith.constant 1.000000e+00 : f32
    %31 = vector.broadcast %cst_17 : f32 to vector<8x128xf32>
    %32 = arith.addf %31, %30 : vector<8x128xf32>
    %33 = arith.divf %31, %32 : vector<8x128xf32>
    %34 = vector.extract_strided_slice %19 {offsets = [0, 384], sizes = [8, 128], strides = [1, 1]} : vector<8x512xf32> to vector<8x128xf32>
    %35 = arith.negf %34 : vector<8x128xf32>
    %36 = math.exp %35 : vector<8x128xf32>
    %cst_18 = arith.constant 1.000000e+00 : f32
    %37 = vector.broadcast %cst_18 : f32 to vector<8x128xf32>
    %38 = arith.addf %37, %36 : vector<8x128xf32>
    %39 = arith.divf %37, %38 : vector<8x128xf32>
    %40 = arith.mulf %12, %33 : vector<8x128xf32>
    %41 = arith.mulf %27, %21 : vector<8x128xf32>
    %42 = arith.addf %40, %41 : vector<8x128xf32>
    %43 = math.tanh %42 : vector<8x128xf32>
    %44 = arith.mulf %39, %43 : vector<8x128xf32>
    %45 = arith.index_cast %c0_i32 : i32 to index
    %c0_19 = arith.constant 0 : index
    %c0_20 = arith.constant 0 : index
    %46 = vector.load %arg14[%45, %c0_19, %c0_20] : memref<8x8x128xf32, #tpu.memory_space<vmem>>, vector<1x8x128xf32>
    %47 = vector.shape_cast %46 : vector<1x8x128xf32> to vector<8x128xf32>
    %48 = vector.shape_cast %44 : vector<8x128xf32> to vector<1x8x128xf32>
    tpu.vector_store %arg14[%45, %c0_19, %c0_20], %48 {strides = array<i32>} : memref<8x8x128xf32, #tpu.memory_space<vmem>>, vector<1x8x128xf32>,
    %c1_i32 = arith.constant 1 : i32
    %c0_21 = arith.constant 0 : index
    %c0_22 = arith.constant 0 : index
    %49 = vector.load %arg2[%c0_21, %c0_22] : memref<128x640xbf16, #tpu.memory_space<vmem>>, vector<128x512xbf16>
    %50 = arith.truncf %44 : vector<8x128xf32> to vector<8x128xbf16>
    %cst_23 = arith.constant dense<0.000000e+00> : vector<8x512xf32>
    %51 = tpu.matmul %50, %49, %cst_23 {dimension_numbers = #tpu.dot_dimension_numbers<[1], [0], [0], [1], [0, 0, 1, 1], [], []>} : vector<8x128xbf16>, vector<128x512xbf16>, vector<8x512xf32> -> vector<8x512xf32>
    %52 = arith.index_cast %c1_i32 : i32 to index
    %c0_24 = arith.constant 0 : index
    %c0_25 = arith.constant 0 : index
    %53 = vector.load %arg18[%52, %c0_24, %c0_25] : memref<8x8x512xf32, #tpu.memory_space<vmem>>, vector<1x8x512xf32>
    %54 = vector.shape_cast %53 : vector<1x8x512xf32> to vector<8x512xf32>
    %55 = arith.addf %51, %54 : vector<8x512xf32>
    %56 = vector.extract_strided_slice %55 {offsets = [0, 0], sizes = [8, 128], strides = [1, 1]} : vector<8x512xf32> to vector<8x128xf32>
    %57 = math.tanh %56 : vector<8x128xf32>
    %58 = vector.extract_strided_slice %55 {offsets = [0, 128], sizes = [8, 128], strides = [1, 1]} : vector<8x512xf32> to vector<8x128xf32>
    %59 = arith.negf %58 : vector<8x128xf32>
    %60 = math.exp %59 : vector<8x128xf32>
    %cst_26 = arith.constant 1.000000e+00 : f32
    %61 = vector.broadcast %cst_26 : f32 to vector<8x128xf32>
    %62 = arith.addf %61, %60 : vector<8x128xf32>
    %63 = arith.divf %61, %62 : vector<8x128xf32>
    %64 = vector.extract_strided_slice %55 {offsets = [0, 256], sizes = [8, 128], strides = [1, 1]} : vector<8x512xf32> to vector<8x128xf32>
    %65 = arith.negf %64 : vector<8x128xf32>
    %66 = math.exp %65 : vector<8x128xf32>
    %cst_27 = arith.constant 1.000000e+00 : f32
    %67 = vector.broadcast %cst_27 : f32 to vector<8x128xf32>
    %68 = arith.addf %67, %66 : vector<8x128xf32>
    %69 = arith.divf %67, %68 : vector<8x128xf32>
    %70 = vector.extract_strided_slice %55 {offsets = [0, 384], sizes = [8, 128], strides = [1, 1]} : vector<8x512xf32> to vector<8x128xf32>
    %71 = arith.negf %70 : vector<8x128xf32>
    %72 = math.exp %71 : vector<8x128xf32>
    %cst_28 = arith.constant 1.000000e+00 : f32
    %73 = vector.broadcast %cst_28 : f32 to vector<8x128xf32>
    %74 = arith.addf %73, %72 : vector<8x128xf32>
    %75 = arith.divf %73, %74 : vector<8x128xf32>
    %76 = arith.mulf %42, %69 : vector<8x128xf32>
    %77 = arith.mulf %63, %57 : vector<8x128xf32>
    %78 = arith.addf %76, %77 : vector<8x128xf32>
    %79 = math.tanh %78 : vector<8x128xf32>
    %80 = arith.mulf %75, %79 : vector<8x128xf32>
    %81 = arith.index_cast %c1_i32 : i32 to index
    %c0_29 = arith.constant 0 : index
    %c0_30 = arith.constant 0 : index
    %82 = vector.load %arg14[%81, %c0_29, %c0_30] : memref<8x8x128xf32, #tpu.memory_space<vmem>>, vector<1x8x128xf32>
    %83 = vector.shape_cast %82 : vector<1x8x128xf32> to vector<8x128xf32>
    %84 = vector.shape_cast %80 : vector<8x128xf32> to vector<1x8x128xf32>
    tpu.vector_store %arg14[%81, %c0_29, %c0_30], %84 {strides = array<i32>} : memref<8x8x128xf32, #tpu.memory_space<vmem>>, vector<1x8x128xf32>,
    %c2_i32 = arith.constant 2 : i32
    %c0_31 = arith.constant 0 : index
    %c0_32 = arith.constant 0 : index
    %85 = vector.load %arg2[%c0_31, %c0_32] : memref<128x640xbf16, #tpu.memory_space<vmem>>, vector<128x512xbf16>
    %86 = arith.truncf %80 : vector<8x128xf32> to vector<8x128xbf16>
    %cst_33 = arith.constant dense<0.000000e+00> : vector<8x512xf32>
    %87 = tpu.matmul %86, %85, %cst_33 {dimension_numbers = #tpu.dot_dimension_numbers<[1], [0], [0], [1], [0, 0, 1, 1], [], []>} : vector<8x128xbf16>, vector<128x512xbf16>, vector<8x512xf32> -> vector<8x512xf32>
    %88 = arith.index_cast %c2_i32 : i32 to index
    %c0_34 = arith.constant 0 : index
    %c0_35 = arith.constant 0 : index
    %89 = vector.load %arg18[%88, %c0_34, %c0_35] : memref<8x8x512xf32, #tpu.memory_space<vmem>>, vector<1x8x512xf32>
    %90 = vector.shape_cast %89 : vector<1x8x512xf32> to vector<8x512xf32>
    %91 = arith.addf %87, %90 : vector<8x512xf32>
    %92 = vector.extract_strided_slice %91 {offsets = [0, 0], sizes = [8, 128], strides = [1, 1]} : vector<8x512xf32> to vector<8x128xf32>
    %93 = math.tanh %92 : vector<8x128xf32>
    %94 = vector.extract_strided_slice %91 {offsets = [0, 128], sizes = [8, 128], strides = [1, 1]} : vector<8x512xf32> to vector<8x128xf32>
    %95 = arith.negf %94 : vector<8x128xf32>
    %96 = math.exp %95 : vector<8x128xf32>
    %cst_36 = arith.constant 1.000000e+00 : f32
    %97 = vector.broadcast %cst_36 : f32 to vector<8x128xf32>
    %98 = arith.addf %97, %96 : vector<8x128xf32>
    %99 = arith.divf %97, %98 : vector<8x128xf32>
    %100 = vector.extract_strided_slice %91 {offsets = [0, 256], sizes = [8, 128], strides = [1, 1]} : vector<8x512xf32> to vector<8x128xf32>
    %101 = arith.negf %100 : vector<8x128xf32>
    %102 = math.exp %101 : vector<8x128xf32>
    %cst_37 = arith.constant 1.000000e+00 : f32
    %103 = vector.broadcast %cst_37 : f32 to vector<8x128xf32>
    %104 = arith.addf %103, %102 : vector<8x128xf32>
    %105 = arith.divf %103, %104 : vector<8x128xf32>
    %106 = vector.extract_strided_slice %91 {offsets = [0, 384], sizes = [8, 128], strides = [1, 1]} : vector<8x512xf32> to vector<8x128xf32>
    %107 = arith.negf %106 : vector<8x128xf32>
    %108 = math.exp %107 : vector<8x128xf32>
    %cst_38 = arith.constant 1.000000e+00 : f32
    %109 = vector.broadcast %cst_38 : f32 to vector<8x128xf32>
    %110 = arith.addf %109, %108 : vector<8x128xf32>
    %111 = arith.divf %109, %110 : vector<8x128xf32>
    %112 = arith.mulf %78, %105 : vector<8x128xf32>
    %113 = arith.mulf %99, %93 : vector<8x128xf32>
    %114 = arith.addf %112, %113 : vector<8x128xf32>
    %115 = math.tanh %114 : vector<8x128xf32>
    %116 = arith.mulf %111, %115 : vector<8x128xf32>
    %117 = arith.index_cast %c2_i32 : i32 to index
    %c0_39 = arith.constant 0 : index
    %c0_40 = arith.constant 0 : index
    %118 = vector.load %arg14[%117, %c0_39, %c0_40] : memref<8x8x128xf32, #tpu.memory_space<vmem>>, vector<1x8x128xf32>
    %119 = vector.shape_cast %118 : vector<1x8x128xf32> to vector<8x128xf32>
    %120 = vector.shape_cast %116 : vector<8x128xf32> to vector<1x8x128xf32>
    tpu.vector_store %arg14[%117, %c0_39, %c0_40], %120 {strides = array<i32>} : memref<8x8x128xf32, #tpu.memory_space<vmem>>, vector<1x8x128xf32>,
    %c3_i32 = arith.constant 3 : i32
    %c0_41 = arith.constant 0 : index
    %c0_42 = arith.constant 0 : index
    %121 = vector.load %arg2[%c0_41, %c0_42] : memref<128x640xbf16, #tpu.memory_space<vmem>>, vector<128x512xbf16>
    %122 = arith.truncf %116 : vector<8x128xf32> to vector<8x128xbf16>
    %cst_43 = arith.constant dense<0.000000e+00> : vector<8x512xf32>
    %123 = tpu.matmul %122, %121, %cst_43 {dimension_numbers = #tpu.dot_dimension_numbers<[1], [0], [0], [1], [0, 0, 1, 1], [], []>} : vector<8x128xbf16>, vector<128x512xbf16>, vector<8x512xf32> -> vector<8x512xf32>
    %124 = arith.index_cast %c3_i32 : i32 to index
    %c0_44 = arith.constant 0 : index
    %c0_45 = arith.constant 0 : index
    %125 = vector.load %arg18[%124, %c0_44, %c0_45] : memref<8x8x512xf32, #tpu.memory_space<vmem>>, vector<1x8x512xf32>
    %126 = vector.shape_cast %125 : vector<1x8x512xf32> to vector<8x512xf32>
    %127 = arith.addf %123, %126 : vector<8x512xf32>
    %128 = vector.extract_strided_slice %127 {offsets = [0, 0], sizes = [8, 128], strides = [1, 1]} : vector<8x512xf32> to vector<8x128xf32>
    %129 = math.tanh %128 : vector<8x128xf32>
    %130 = vector.extract_strided_slice %127 {offsets = [0, 128], sizes = [8, 128], strides = [1, 1]} : vector<8x512xf32> to vector<8x128xf32>
    %131 = arith.negf %130 : vector<8x128xf32>
    %132 = math.exp %131 : vector<8x128xf32>
    %cst_46 = arith.constant 1.000000e+00 : f32
    %133 = vector.broadcast %cst_46 : f32 to vector<8x128xf32>
    %134 = arith.addf %133, %132 : vector<8x128xf32>
    %135 = arith.divf %133, %134 : vector<8x128xf32>
    %136 = vector.extract_strided_slice %127 {offsets = [0, 256], sizes = [8, 128], strides = [1, 1]} : vector<8x512xf32> to vector<8x128xf32>
    %137 = arith.negf %136 : vector<8x128xf32>
    %138 = math.exp %137 : vector<8x128xf32>
    %cst_47 = arith.constant 1.000000e+00 : f32
    %139 = vector.broadcast %cst_47 : f32 to vector<8x128xf32>
    %140 = arith.addf %139, %138 : vector<8x128xf32>
    %141 = arith.divf %139, %140 : vector<8x128xf32>
    %142 = vector.extract_strided_slice %127 {offsets = [0, 384], sizes = [8, 128], strides = [1, 1]} : vector<8x512xf32> to vector<8x128xf32>
    %143 = arith.negf %142 : vector<8x128xf32>
    %144 = math.exp %143 : vector<8x128xf32>
    %cst_48 = arith.constant 1.000000e+00 : f32
    %145 = vector.broadcast %cst_48 : f32 to vector<8x128xf32>
    %146 = arith.addf %145, %144 : vector<8x128xf32>
    %147 = arith.divf %145, %146 : vector<8x128xf32>
    %148 = arith.mulf %114, %141 : vector<8x128xf32>
    %149 = arith.mulf %135, %129 : vector<8x128xf32>
    %150 = arith.addf %148, %149 : vector<8x128xf32>
    %151 = math.tanh %150 : vector<8x128xf32>
    %152 = arith.mulf %147, %151 : vector<8x128xf32>
    %153 = arith.index_cast %c3_i32 : i32 to index
    %c0_49 = arith.constant 0 : index
    %c0_50 = arith.constant 0 : index
    %154 = vector.load %arg14[%153, %c0_49, %c0_50] : memref<8x8x128xf32, #tpu.memory_space<vmem>>, vector<1x8x128xf32>
    %155 = vector.shape_cast %154 : vector<1x8x128xf32> to vector<8x128xf32>
    %156 = vector.shape_cast %152 : vector<8x128xf32> to vector<1x8x128xf32>
    tpu.vector_store %arg14[%153, %c0_49, %c0_50], %156 {strides = array<i32>} : memref<8x8x128xf32, #tpu.memory_space<vmem>>, vector<1x8x128xf32>,
    %c4_i32 = arith.constant 4 : i32
    %c0_51 = arith.constant 0 : index
    %c0_52 = arith.constant 0 : index
    %157 = vector.load %arg2[%c0_51, %c0_52] : memref<128x640xbf16, #tpu.memory_space<vmem>>, vector<128x512xbf16>
    %158 = arith.truncf %152 : vector<8x128xf32> to vector<8x128xbf16>
    %cst_53 = arith.constant dense<0.000000e+00> : vector<8x512xf32>
    %159 = tpu.matmul %158, %157, %cst_53 {dimension_numbers = #tpu.dot_dimension_numbers<[1], [0], [0], [1], [0, 0, 1, 1], [], []>} : vector<8x128xbf16>, vector<128x512xbf16>, vector<8x512xf32> -> vector<8x512xf32>
    %160 = arith.index_cast %c4_i32 : i32 to index
    %c0_54 = arith.constant 0 : index
    %c0_55 = arith.constant 0 : index
    %161 = vector.load %arg18[%160, %c0_54, %c0_55] : memref<8x8x512xf32, #tpu.memory_space<vmem>>, vector<1x8x512xf32>
    %162 = vector.shape_cast %161 : vector<1x8x512xf32> to vector<8x512xf32>
    %163 = arith.addf %159, %162 : vector<8x512xf32>
    %164 = vector.extract_strided_slice %163 {offsets = [0, 0], sizes = [8, 128], strides = [1, 1]} : vector<8x512xf32> to vector<8x128xf32>
    %165 = math.tanh %164 : vector<8x128xf32>
    %166 = vector.extract_strided_slice %163 {offsets = [0, 128], sizes = [8, 128], strides = [1, 1]} : vector<8x512xf32> to vector<8x128xf32>
    %167 = arith.negf %166 : vector<8x128xf32>
    %168 = math.exp %167 : vector<8x128xf32>
    %cst_56 = arith.constant 1.000000e+00 : f32
    %169 = vector.broadcast %cst_56 : f32 to vector<8x128xf32>
    %170 = arith.addf %169, %168 : vector<8x128xf32>
    %171 = arith.divf %169, %170 : vector<8x128xf32>
    %172 = vector.extract_strided_slice %163 {offsets = [0, 256], sizes = [8, 128], strides = [1, 1]} : vector<8x512xf32> to vector<8x128xf32>
    %173 = arith.negf %172 : vector<8x128xf32>
    %174 = math.exp %173 : vector<8x128xf32>
    %cst_57 = arith.constant 1.000000e+00 : f32
    %175 = vector.broadcast %cst_57 : f32 to vector<8x128xf32>
    %176 = arith.addf %175, %174 : vector<8x128xf32>
    %177 = arith.divf %175, %176 : vector<8x128xf32>
    %178 = vector.extract_strided_slice %163 {offsets = [0, 384], sizes = [8, 128], strides = [1, 1]} : vector<8x512xf32> to vector<8x128xf32>
    %179 = arith.negf %178 : vector<8x128xf32>
    %180 = math.exp %179 : vector<8x128xf32>
    %cst_58 = arith.constant 1.000000e+00 : f32
    %181 = vector.broadcast %cst_58 : f32 to vector<8x128xf32>
    %182 = arith.addf %181, %180 : vector<8x128xf32>
    %183 = arith.divf %181, %182 : vector<8x128xf32>
    %184 = arith.mulf %150, %177 : vector<8x128xf32>
    %185 = arith.mulf %171, %165 : vector<8x128xf32>
    %186 = arith.addf %184, %185 : vector<8x128xf32>
    %187 = math.tanh %186 : vector<8x128xf32>
    %188 = arith.mulf %183, %187 : vector<8x128xf32>
    %189 = arith.index_cast %c4_i32 : i32 to index
    %c0_59 = arith.constant 0 : index
    %c0_60 = arith.constant 0 : index
    %190 = vector.load %arg14[%189, %c0_59, %c0_60] : memref<8x8x128xf32, #tpu.memory_space<vmem>>, vector<1x8x128xf32>
    %191 = vector.shape_cast %190 : vector<1x8x128xf32> to vector<8x128xf32>
    %192 = vector.shape_cast %188 : vector<8x128xf32> to vector<1x8x128xf32>
    tpu.vector_store %arg14[%189, %c0_59, %c0_60], %192 {strides = array<i32>} : memref<8x8x128xf32, #tpu.memory_space<vmem>>, vector<1x8x128xf32>,
    %c5_i32 = arith.constant 5 : i32
    %c0_61 = arith.constant 0 : index
    %c0_62 = arith.constant 0 : index
    %193 = vector.load %arg2[%c0_61, %c0_62] : memref<128x640xbf16, #tpu.memory_space<vmem>>, vector<128x512xbf16>
    %194 = arith.truncf %188 : vector<8x128xf32> to vector<8x128xbf16>
    %cst_63 = arith.constant dense<0.000000e+00> : vector<8x512xf32>
    %195 = tpu.matmul %194, %193, %cst_63 {dimension_numbers = #tpu.dot_dimension_numbers<[1], [0], [0], [1], [0, 0, 1, 1], [], []>} : vector<8x128xbf16>, vector<128x512xbf16>, vector<8x512xf32> -> vector<8x512xf32>
    %196 = arith.index_cast %c5_i32 : i32 to index
    %c0_64 = arith.constant 0 : index
    %c0_65 = arith.constant 0 : index
    %197 = vector.load %arg18[%196, %c0_64, %c0_65] : memref<8x8x512xf32, #tpu.memory_space<vmem>>, vector<1x8x512xf32>
    %198 = vector.shape_cast %197 : vector<1x8x512xf32> to vector<8x512xf32>
    %199 = arith.addf %195, %198 : vector<8x512xf32>
    %200 = vector.extract_strided_slice %199 {offsets = [0, 0], sizes = [8, 128], strides = [1, 1]} : vector<8x512xf32> to vector<8x128xf32>
    %201 = math.tanh %200 : vector<8x128xf32>
    %202 = vector.extract_strided_slice %199 {offsets = [0, 128], sizes = [8, 128], strides = [1, 1]} : vector<8x512xf32> to vector<8x128xf32>
    %203 = arith.negf %202 : vector<8x128xf32>
    %204 = math.exp %203 : vector<8x128xf32>
    %cst_66 = arith.constant 1.000000e+00 : f32
    %205 = vector.broadcast %cst_66 : f32 to vector<8x128xf32>
    %206 = arith.addf %205, %204 : vector<8x128xf32>
    %207 = arith.divf %205, %206 : vector<8x128xf32>
    %208 = vector.extract_strided_slice %199 {offsets = [0, 256], sizes = [8, 128], strides = [1, 1]} : vector<8x512xf32> to vector<8x128xf32>
    %209 = arith.negf %208 : vector<8x128xf32>
    %210 = math.exp %209 : vector<8x128xf32>
    %cst_67 = arith.constant 1.000000e+00 : f32
    %211 = vector.broadcast %cst_67 : f32 to vector<8x128xf32>
    %212 = arith.addf %211, %210 : vector<8x128xf32>
    %213 = arith.divf %211, %212 : vector<8x128xf32>
    %214 = vector.extract_strided_slice %199 {offsets = [0, 384], sizes = [8, 128], strides = [1, 1]} : vector<8x512xf32> to vector<8x128xf32>
    %215 = arith.negf %214 : vector<8x128xf32>
    %216 = math.exp %215 : vector<8x128xf32>
    %cst_68 = arith.constant 1.000000e+00 : f32
    %217 = vector.broadcast %cst_68 : f32 to vector<8x128xf32>
    %218 = arith.addf %217, %216 : vector<8x128xf32>
    %219 = arith.divf %217, %218 : vector<8x128xf32>
    %220 = arith.mulf %186, %213 : vector<8x128xf32>
    %221 = arith.mulf %207, %201 : vector<8x128xf32>
    %222 = arith.addf %220, %221 : vector<8x128xf32>
    %223 = math.tanh %222 : vector<8x128xf32>
    %224 = arith.mulf %219, %223 : vector<8x128xf32>
    %225 = arith.index_cast %c5_i32 : i32 to index
    %c0_69 = arith.constant 0 : index
    %c0_70 = arith.constant 0 : index
    %226 = vector.load %arg14[%225, %c0_69, %c0_70] : memref<8x8x128xf32, #tpu.memory_space<vmem>>, vector<1x8x128xf32>
    %227 = vector.shape_cast %226 : vector<1x8x128xf32> to vector<8x128xf32>
    %228 = vector.shape_cast %224 : vector<8x128xf32> to vector<1x8x128xf32>
    tpu.vector_store %arg14[%225, %c0_69, %c0_70], %228 {strides = array<i32>} : memref<8x8x128xf32, #tpu.memory_space<vmem>>, vector<1x8x128xf32>,
    %c6_i32 = arith.constant 6 : i32
    %c0_71 = arith.constant 0 : index
    %c0_72 = arith.constant 0 : index
    %229 = vector.load %arg2[%c0_71, %c0_72] : memref<128x640xbf16, #tpu.memory_space<vmem>>, vector<128x512xbf16>
    %230 = arith.truncf %224 : vector<8x128xf32> to vector<8x128xbf16>
    %cst_73 = arith.constant dense<0.000000e+00> : vector<8x512xf32>
    %231 = tpu.matmul %230, %229, %cst_73 {dimension_numbers = #tpu.dot_dimension_numbers<[1], [0], [0], [1], [0, 0, 1, 1], [], []>} : vector<8x128xbf16>, vector<128x512xbf16>, vector<8x512xf32> -> vector<8x512xf32>
    %232 = arith.index_cast %c6_i32 : i32 to index
    %c0_74 = arith.constant 0 : index
    %c0_75 = arith.constant 0 : index
    %233 = vector.load %arg18[%232, %c0_74, %c0_75] : memref<8x8x512xf32, #tpu.memory_space<vmem>>, vector<1x8x512xf32>
    %234 = vector.shape_cast %233 : vector<1x8x512xf32> to vector<8x512xf32>
    %235 = arith.addf %231, %234 : vector<8x512xf32>
    %236 = vector.extract_strided_slice %235 {offsets = [0, 0], sizes = [8, 128], strides = [1, 1]} : vector<8x512xf32> to vector<8x128xf32>
    %237 = math.tanh %236 : vector<8x128xf32>
    %238 = vector.extract_strided_slice %235 {offsets = [0, 128], sizes = [8, 128], strides = [1, 1]} : vector<8x512xf32> to vector<8x128xf32>
    %239 = arith.negf %238 : vector<8x128xf32>
    %240 = math.exp %239 : vector<8x128xf32>
    %cst_76 = arith.constant 1.000000e+00 : f32
    %241 = vector.broadcast %cst_76 : f32 to vector<8x128xf32>
    %242 = arith.addf %241, %240 : vector<8x128xf32>
    %243 = arith.divf %241, %242 : vector<8x128xf32>
    %244 = vector.extract_strided_slice %235 {offsets = [0, 256], sizes = [8, 128], strides = [1, 1]} : vector<8x512xf32> to vector<8x128xf32>
    %245 = arith.negf %244 : vector<8x128xf32>
    %246 = math.exp %245 : vector<8x128xf32>
    %cst_77 = arith.constant 1.000000e+00 : f32
    %247 = vector.broadcast %cst_77 : f32 to vector<8x128xf32>
    %248 = arith.addf %247, %246 : vector<8x128xf32>
    %249 = arith.divf %247, %248 : vector<8x128xf32>
    %250 = vector.extract_strided_slice %235 {offsets = [0, 384], sizes = [8, 128], strides = [1, 1]} : vector<8x512xf32> to vector<8x128xf32>
    %251 = arith.negf %250 : vector<8x128xf32>
    %252 = math.exp %251 : vector<8x128xf32>
    %cst_78 = arith.constant 1.000000e+00 : f32
    %253 = vector.broadcast %cst_78 : f32 to vector<8x128xf32>
    %254 = arith.addf %253, %252 : vector<8x128xf32>
    %255 = arith.divf %253, %254 : vector<8x128xf32>
    %256 = arith.mulf %222, %249 : vector<8x128xf32>
    %257 = arith.mulf %243, %237 : vector<8x128xf32>
    %258 = arith.addf %256, %257 : vector<8x128xf32>
    %259 = math.tanh %258 : vector<8x128xf32>
    %260 = arith.mulf %255, %259 : vector<8x128xf32>
    %261 = arith.index_cast %c6_i32 : i32 to index
    %c0_79 = arith.constant 0 : index
    %c0_80 = arith.constant 0 : index
    %262 = vector.load %arg14[%261, %c0_79, %c0_80] : memref<8x8x128xf32, #tpu.memory_space<vmem>>, vector<1x8x128xf32>
    %263 = vector.shape_cast %262 : vector<1x8x128xf32> to vector<8x128xf32>
    %264 = vector.shape_cast %260 : vector<8x128xf32> to vector<1x8x128xf32>
    tpu.vector_store %arg14[%261, %c0_79, %c0_80], %264 {strides = array<i32>} : memref<8x8x128xf32, #tpu.memory_space<vmem>>, vector<1x8x128xf32>,
    %c7_i32 = arith.constant 7 : i32
    %c0_81 = arith.constant 0 : index
    %c0_82 = arith.constant 0 : index
    %265 = vector.load %arg2[%c0_81, %c0_82] : memref<128x640xbf16, #tpu.memory_space<vmem>>, vector<128x512xbf16>
    %266 = arith.truncf %260 : vector<8x128xf32> to vector<8x128xbf16>
    %cst_83 = arith.constant dense<0.000000e+00> : vector<8x512xf32>
    %267 = tpu.matmul %266, %265, %cst_83 {dimension_numbers = #tpu.dot_dimension_numbers<[1], [0], [0], [1], [0, 0, 1, 1], [], []>} : vector<8x128xbf16>, vector<128x512xbf16>, vector<8x512xf32> -> vector<8x512xf32>
    %268 = arith.index_cast %c7_i32 : i32 to index
    %c0_84 = arith.constant 0 : index
    %c0_85 = arith.constant 0 : index
    %269 = vector.load %arg18[%268, %c0_84, %c0_85] : memref<8x8x512xf32, #tpu.memory_space<vmem>>, vector<1x8x512xf32>
    %270 = vector.shape_cast %269 : vector<1x8x512xf32> to vector<8x512xf32>
    %271 = arith.addf %267, %270 : vector<8x512xf32>
    %272 = vector.extract_strided_slice %271 {offsets = [0, 0], sizes = [8, 128], strides = [1, 1]} : vector<8x512xf32> to vector<8x128xf32>
    %273 = math.tanh %272 : vector<8x128xf32>
    %274 = vector.extract_strided_slice %271 {offsets = [0, 128], sizes = [8, 128], strides = [1, 1]} : vector<8x512xf32> to vector<8x128xf32>
    %275 = arith.negf %274 : vector<8x128xf32>
    %276 = math.exp %275 : vector<8x128xf32>
    %cst_86 = arith.constant 1.000000e+00 : f32
    %277 = vector.broadcast %cst_86 : f32 to vector<8x128xf32>
    %278 = arith.addf %277, %276 : vector<8x128xf32>
    %279 = arith.divf %277, %278 : vector<8x128xf32>
    %280 = vector.extract_strided_slice %271 {offsets = [0, 256], sizes = [8, 128], strides = [1, 1]} : vector<8x512xf32> to vector<8x128xf32>
    %281 = arith.negf %280 : vector<8x128xf32>
    %282 = math.exp %281 : vector<8x128xf32>
    %cst_87 = arith.constant 1.000000e+00 : f32
    %283 = vector.broadcast %cst_87 : f32 to vector<8x128xf32>
    %284 = arith.addf %283, %282 : vector<8x128xf32>
    %285 = arith.divf %283, %284 : vector<8x128xf32>
    %286 = vector.extract_strided_slice %271 {offsets = [0, 384], sizes = [8, 128], strides = [1, 1]} : vector<8x512xf32> to vector<8x128xf32>
    %287 = arith.negf %286 : vector<8x128xf32>
    %288 = math.exp %287 : vector<8x128xf32>
    %cst_88 = arith.constant 1.000000e+00 : f32
    %289 = vector.broadcast %cst_88 : f32 to vector<8x128xf32>
    %290 = arith.addf %289, %288 : vector<8x128xf32>
    %291 = arith.divf %289, %290 : vector<8x128xf32>
    %292 = arith.mulf %258, %285 : vector<8x128xf32>
    %293 = arith.mulf %279, %273 : vector<8x128xf32>
    %294 = arith.addf %292, %293 : vector<8x128xf32>
    %295 = math.tanh %294 : vector<8x128xf32>
    %296 = arith.mulf %291, %295 : vector<8x128xf32>
    %297 = arith.index_cast %c7_i32 : i32 to index
    %c0_89 = arith.constant 0 : index
    %c0_90 = arith.constant 0 : index
    %298 = vector.load %arg14[%297, %c0_89, %c0_90] : memref<8x8x128xf32, #tpu.memory_space<vmem>>, vector<1x8x128xf32>
    %299 = vector.shape_cast %298 : vector<1x8x128xf32> to vector<8x128xf32>
    %300 = vector.shape_cast %296 : vector<8x128xf32> to vector<1x8x128xf32>
    tpu.vector_store %arg14[%297, %c0_89, %c0_90], %300 {strides = array<i32>} : memref<8x8x128xf32, #tpu.memory_space<vmem>>, vector<1x8x128xf32>,
    %c8_i32 = arith.constant 8 : i32
    %c0_91 = arith.constant 0 : index
    %c0_92 = arith.constant 0 : index
    %c0_93 = arith.constant 0 : index
    %301 = vector.load %arg14[%c0_91, %c0_92, %c0_93] : memref<8x8x128xf32, #tpu.memory_space<vmem>>, vector<8x8x128xf32>
    %302 = vector.shape_cast %301 : vector<8x8x128xf32> to vector<64x128xf32>
    %c0_94 = arith.constant 0 : index
    %c0_95 = arith.constant 0 : index
    %303 = vector.load %arg5[%c0_94, %c0_95] : memref<128x128xbf16, #tpu.memory_space<vmem>>, vector<128x128xbf16>
    %304 = arith.truncf %302 : vector<64x128xf32> to vector<64x128xbf16>
    %cst_96 = arith.constant dense<0.000000e+00> : vector<64x128xf32>
    %305 = tpu.matmul %304, %303, %cst_96 {dimension_numbers = #tpu.dot_dimension_numbers<[1], [0], [0], [1], [0, 0, 1, 1], [], []>} : vector<64x128xbf16>, vector<128x128xbf16>, vector<64x128xf32> -> vector<64x128xf32>
    %c0_97 = arith.constant 0 : index
    %c0_98 = arith.constant 0 : index
    %306 = vector.load %arg6[%c0_97, %c0_98] : memref<1x128xf32, #tpu.memory_space<vmem>>, vector<1x128xf32>
    %307 = vector.broadcast %306 : vector<1x128xf32> to vector<64x128xf32>
    %308 = arith.addf %305, %307 : vector<64x128xf32>
    %309 = math.tanh %308 : vector<64x128xf32>
    %310 = math.exp %309 : vector<64x128xf32>
    %311 = vector.shape_cast %310 : vector<64x128xf32> to vector<8x8x128xf32>
    %cst_99 = arith.constant dense<0.000000e+00> : vector<8x128xf32>
    %312 = vector.multi_reduction <add>, %311, %cst_99 [0] : vector<8x8x128xf32> to vector<8x128xf32>
    %313 = vector.shape_cast %312 : vector<8x128xf32> to vector<1x8x128xf32>
    %314 = vector.broadcast %313 : vector<1x8x128xf32> to vector<8x8x128xf32>
    %315 = arith.divf %311, %314 : vector<8x8x128xf32>
    %c0_100 = arith.constant 0 : index
    %c0_101 = arith.constant 0 : index
    %c0_102 = arith.constant 0 : index
    %316 = vector.load %arg15[%c0_100, %c0_101, %c0_102] : memref<8x8x128xf32, #tpu.memory_space<vmem>>, vector<8x8x128xf32>
    tpu.vector_store %arg15[%c0_100, %c0_101, %c0_102], %315 {strides = array<i32>} : memref<8x8x128xf32, #tpu.memory_space<vmem>>, vector<8x8x128xf32>,
    %317 = vector.shape_cast %315 : vector<8x8x128xf32> to vector<64x128xf32>
    %c0_103 = arith.constant 0 : index
    %c0_104 = arith.constant 0 : index
    %318 = vector.load %arg7[%c0_103, %c0_104] : memref<128x128xf32, #tpu.memory_space<vmem>>, vector<128x128xf32>
    %cst_105 = arith.constant dense<0.000000e+00> : vector<64x128xf32>
    %319 = tpu.matmul %317, %318, %cst_105 {dimension_numbers = #tpu.dot_dimension_numbers<[1], [0], [0], [1], [0, 0, 1, 1], [], []>} : vector<64x128xf32>, vector<128x128xf32>, vector<64x128xf32> -> vector<64x128xf32>
    %320 = vector.shape_cast %319 : vector<64x128xf32> to vector<8x8x128xf32>
    %321 = arith.mulf %320, %301 : vector<8x8x128xf32>
    %cst_106 = arith.constant dense<0.000000e+00> : vector<8x128xf32>
    %322 = vector.multi_reduction <add>, %321, %cst_106 [0] : vector<8x8x128xf32> to vector<8x128xf32>
    %c0_107 = arith.constant 0 : index
    %c0_108 = arith.constant 0 : index
    %323 = vector.load %arg8[%c0_107, %c0_108] : memref<128x128xbf16, #tpu.memory_space<vmem>>, vector<128x128xbf16>
    %324 = arith.truncf %322 : vector<8x128xf32> to vector<8x128xbf16>
    %cst_109 = arith.constant dense<0.000000e+00> : vector<8x128xf32>
    %325 = tpu.matmul %324, %323, %cst_109 {dimension_numbers = #tpu.dot_dimension_numbers<[1], [0], [0], [1], [0, 0, 1, 1], [], []>} : vector<8x128xbf16>, vector<128x128xbf16>, vector<8x128xf32> -> vector<8x128xf32>
    %c0_110 = arith.constant 0 : index
    %c0_111 = arith.constant 0 : index
    %326 = vector.load %arg9[%c0_110, %c0_111] : memref<1x128xf32, #tpu.memory_space<vmem>>, vector<1x128xf32>
    %327 = vector.broadcast %326 : vector<1x128xf32> to vector<8x128xf32>
    %328 = arith.addf %325, %327 : vector<8x128xf32>
    %329 = tpu.iota {dimensions = array<i32: 1>} : vector<1x128xi32>
    %c4_i32_112 = arith.constant 4 : i32
    %330 = vector.broadcast %c4_i32_112 : i32 to vector<1x128xi32>
    %331 = arith.cmpi slt, %329, %330 : vector<1x128xi32>
    %332 = arith.extui %331 : vector<1x128xi1> to vector<1x128xi32>
    %333 = arith.sitofp %332 : vector<1x128xi32> to vector<1x128xf32>
    %c0_i32_113 = arith.constant 0 : i32
    %c0_114 = arith.constant 0 : index
    %c0_115 = arith.constant 0 : index
    %334 = vector.load %arg2[%c0_114, %c0_115] : memref<128x640xbf16, #tpu.memory_space<vmem>>, vector<128x640xbf16>
    %335 = arith.truncf %296 : vector<8x128xf32> to vector<8x128xbf16>
    %cst_116 = arith.constant dense<0.000000e+00> : vector<8x640xf32>
    %336 = tpu.matmul %335, %334, %cst_116 {dimension_numbers = #tpu.dot_dimension_numbers<[1], [0], [0], [1], [0, 0, 1, 1], [], []>} : vector<8x128xbf16>, vector<128x640xbf16>, vector<8x640xf32> -> vector<8x640xf32>
    %337 = vector.extract_strided_slice %336 {offsets = [0, 0], sizes = [8, 512], strides = [1, 1]} : vector<8x640xf32> to vector<8x512xf32>
    %338 = vector.extract_strided_slice %336 {offsets = [0, 512], sizes = [8, 128], strides = [1, 1]} : vector<8x640xf32> to vector<8x128xf32>
    %339 = arith.addf %328, %338 : vector<8x128xf32>
    %340 = math.tanh %339 : vector<8x128xf32>
    %341 = math.exp %340 : vector<8x128xf32>
    %342 = vector.broadcast %333 : vector<1x128xf32> to vector<8x128xf32>
    %343 = arith.mulf %341, %342 : vector<8x128xf32>
    %cst_117 = arith.constant dense<0.000000e+00> : vector<8xf32>
    %344 = vector.multi_reduction <add>, %343, %cst_117 [1] : vector<8x128xf32> to vector<8xf32>
    %345 = vector.shape_cast %344 : vector<8xf32> to vector<8x1xf32>
    %346 = tpu.reciprocal %345 {approx = true} : vector<8x1xf32> -> vector<8x1xf32>
    %347 = vector.broadcast %346 : vector<8x1xf32> to vector<8x128xf32>
    %348 = arith.mulf %343, %347 : vector<8x128xf32>
    %349 = arith.index_cast %c0_i32_113 : i32 to index
    %c0_118 = arith.constant 0 : index
    %c0_119 = arith.constant 0 : index
    %350 = vector.load %arg17[%349, %c0_118, %c0_119] : memref<3x8x128xf32, #tpu.memory_space<vmem>>, vector<1x8x128xf32>
    %351 = vector.shape_cast %350 : vector<1x8x128xf32> to vector<8x128xf32>
    %352 = vector.shape_cast %348 : vector<8x128xf32> to vector<1x8x128xf32>
    tpu.vector_store %arg17[%349, %c0_118, %c0_119], %352 {strides = array<i32>} : memref<3x8x128xf32, #tpu.memory_space<vmem>>, vector<1x8x128xf32>,
    %c0_120 = arith.constant 0 : index
    %c0_121 = arith.constant 0 : index
    %353 = vector.load %arg10[%c0_120, %c0_121] : memref<128x128xf32, #tpu.memory_space<vmem>>, vector<128x128xf32>
    %cst_122 = arith.constant dense<0.000000e+00> : vector<8x128xf32>
    %354 = tpu.matmul %348, %353, %cst_122 {dimension_numbers = #tpu.dot_dimension_numbers<[1], [0], [0], [1], [0, 0, 1, 1], [], []>} : vector<8x128xf32>, vector<128x128xf32>, vector<8x128xf32> -> vector<8x128xf32>
    %355 = arith.mulf %354, %339 : vector<8x128xf32>
    %c0_123 = arith.constant 0 : index
    %c0_124 = arith.constant 0 : index
    %356 = vector.load %arg11[%c0_123, %c0_124] : memref<128x128xf32, #tpu.memory_space<vmem>>, vector<128x128xf32>
    %cst_125 = arith.constant dense<0.000000e+00> : vector<8x128xf32>
    %357 = tpu.matmul %355, %356, %cst_125 {dimension_numbers = #tpu.dot_dimension_numbers<[1], [0], [0], [1], [0, 0, 1, 1], [], []>} : vector<8x128xf32>, vector<128x128xf32>, vector<8x128xf32> -> vector<8x128xf32>
    %358 = arith.index_cast %c0_i32_113 : i32 to index
    %c0_126 = arith.constant 0 : index
    %c0_127 = arith.constant 0 : index
    %359 = vector.load %arg16[%358, %c0_126, %c0_127] : memref<3x8x128xf32, #tpu.memory_space<vmem>>, vector<1x8x128xf32>
    %360 = vector.shape_cast %359 : vector<1x8x128xf32> to vector<8x128xf32>
    %361 = vector.shape_cast %357 : vector<8x128xf32> to vector<1x8x128xf32>
    tpu.vector_store %arg16[%358, %c0_126, %c0_127], %361 {strides = array<i32>} : memref<3x8x128xf32, #tpu.memory_space<vmem>>, vector<1x8x128xf32>,
    %c0_128 = arith.constant 0 : index
    %c0_129 = arith.constant 0 : index
    %362 = vector.load %arg12[%c0_128, %c0_129] : memref<128x512xbf16, #tpu.memory_space<vmem>>, vector<128x512xbf16>
    %363 = arith.truncf %357 : vector<8x128xf32> to vector<8x128xbf16>
    %cst_130 = arith.constant dense<0.000000e+00> : vector<8x512xf32>
    %364 = tpu.matmul %363, %362, %cst_130 {dimension_numbers = #tpu.dot_dimension_numbers<[1], [0], [0], [1], [0, 0, 1, 1], [], []>} : vector<8x128xbf16>, vector<128x512xbf16>, vector<8x512xf32> -> vector<8x512xf32>
    %365 = arith.addf %337, %364 : vector<8x512xf32>
    %c0_131 = arith.constant 0 : index
    %c0_132 = arith.constant 0 : index
    %366 = vector.load %arg13[%c0_131, %c0_132] : memref<1x512xf32, #tpu.memory_space<vmem>>, vector<1x512xf32>
    %367 = vector.broadcast %366 : vector<1x512xf32> to vector<8x512xf32>
    %368 = arith.addf %365, %367 : vector<8x512xf32>
    %369 = vector.extract_strided_slice %368 {offsets = [0, 0], sizes = [8, 128], strides = [1, 1]} : vector<8x512xf32> to vector<8x128xf32>
    %370 = math.tanh %369 : vector<8x128xf32>
    %371 = vector.extract_strided_slice %368 {offsets = [0, 128], sizes = [8, 128], strides = [1, 1]} : vector<8x512xf32> to vector<8x128xf32>
    %372 = arith.negf %371 : vector<8x128xf32>
    %373 = math.exp %372 : vector<8x128xf32>
    %cst_133 = arith.constant 1.000000e+00 : f32
    %374 = vector.broadcast %cst_133 : f32 to vector<8x128xf32>
    %375 = arith.addf %374, %373 : vector<8x128xf32>
    %376 = arith.divf %374, %375 : vector<8x128xf32>
    %377 = vector.extract_strided_slice %368 {offsets = [0, 256], sizes = [8, 128], strides = [1, 1]} : vector<8x512xf32> to vector<8x128xf32>
    %378 = arith.negf %377 : vector<8x128xf32>
    %379 = math.exp %378 : vector<8x128xf32>
    %cst_134 = arith.constant 1.000000e+00 : f32
    %380 = vector.broadcast %cst_134 : f32 to vector<8x128xf32>
    %381 = arith.addf %380, %379 : vector<8x128xf32>
    %382 = arith.divf %380, %381 : vector<8x128xf32>
    %383 = vector.extract_strided_slice %368 {offsets = [0, 384], sizes = [8, 128], strides = [1, 1]} : vector<8x512xf32> to vector<8x128xf32>
    %384 = arith.negf %383 : vector<8x128xf32>
    %385 = math.exp %384 : vector<8x128xf32>
    %cst_135 = arith.constant 1.000000e+00 : f32
    %386 = vector.broadcast %cst_135 : f32 to vector<8x128xf32>
    %387 = arith.addf %386, %385 : vector<8x128xf32>
    %388 = arith.divf %386, %387 : vector<8x128xf32>
    %389 = arith.mulf %294, %382 : vector<8x128xf32>
    %390 = arith.mulf %376, %370 : vector<8x128xf32>
    %391 = arith.addf %389, %390 : vector<8x128xf32>
    %392 = math.tanh %391 : vector<8x128xf32>
    %393 = arith.mulf %388, %392 : vector<8x128xf32>
    %c1_i32_136 = arith.constant 1 : i32
    %c0_137 = arith.constant 0 : index
    %c0_138 = arith.constant 0 : index
    %394 = vector.load %arg2[%c0_137, %c0_138] : memref<128x640xbf16, #tpu.memory_space<vmem>>, vector<128x640xbf16>
    %395 = arith.truncf %393 : vector<8x128xf32> to vector<8x128xbf16>
    %cst_139 = arith.constant dense<0.000000e+00> : vector<8x640xf32>
    %396 = tpu.matmul %395, %394, %cst_139 {dimension_numbers = #tpu.dot_dimension_numbers<[1], [0], [0], [1], [0, 0, 1, 1], [], []>} : vector<8x128xbf16>, vector<128x640xbf16>, vector<8x640xf32> -> vector<8x640xf32>
    %397 = vector.extract_strided_slice %396 {offsets = [0, 0], sizes = [8, 512], strides = [1, 1]} : vector<8x640xf32> to vector<8x512xf32>
    %398 = vector.extract_strided_slice %396 {offsets = [0, 512], sizes = [8, 128], strides = [1, 1]} : vector<8x640xf32> to vector<8x128xf32>
    %399 = arith.addf %328, %398 : vector<8x128xf32>
    %400 = math.tanh %399 : vector<8x128xf32>
    %401 = math.exp %400 : vector<8x128xf32>
    %402 = vector.broadcast %333 : vector<1x128xf32> to vector<8x128xf32>
    %403 = arith.mulf %401, %402 : vector<8x128xf32>
    %cst_140 = arith.constant dense<0.000000e+00> : vector<8xf32>
    %404 = vector.multi_reduction <add>, %403, %cst_140 [1] : vector<8x128xf32> to vector<8xf32>
    %405 = vector.shape_cast %404 : vector<8xf32> to vector<8x1xf32>
    %406 = tpu.reciprocal %405 {approx = true} : vector<8x1xf32> -> vector<8x1xf32>
    %407 = vector.broadcast %406 : vector<8x1xf32> to vector<8x128xf32>
    %408 = arith.mulf %403, %407 : vector<8x128xf32>
    %409 = arith.index_cast %c1_i32_136 : i32 to index
    %c0_141 = arith.constant 0 : index
    %c0_142 = arith.constant 0 : index
    %410 = vector.load %arg17[%409, %c0_141, %c0_142] : memref<3x8x128xf32, #tpu.memory_space<vmem>>, vector<1x8x128xf32>
    %411 = vector.shape_cast %410 : vector<1x8x128xf32> to vector<8x128xf32>
    %412 = vector.shape_cast %408 : vector<8x128xf32> to vector<1x8x128xf32>
    tpu.vector_store %arg17[%409, %c0_141, %c0_142], %412 {strides = array<i32>} : memref<3x8x128xf32, #tpu.memory_space<vmem>>, vector<1x8x128xf32>,
    %c0_143 = arith.constant 0 : index
    %c0_144 = arith.constant 0 : index
    %413 = vector.load %arg10[%c0_143, %c0_144] : memref<128x128xf32, #tpu.memory_space<vmem>>, vector<128x128xf32>
    %cst_145 = arith.constant dense<0.000000e+00> : vector<8x128xf32>
    %414 = tpu.matmul %408, %413, %cst_145 {dimension_numbers = #tpu.dot_dimension_numbers<[1], [0], [0], [1], [0, 0, 1, 1], [], []>} : vector<8x128xf32>, vector<128x128xf32>, vector<8x128xf32> -> vector<8x128xf32>
    %415 = arith.mulf %414, %399 : vector<8x128xf32>
    %c0_146 = arith.constant 0 : index
    %c0_147 = arith.constant 0 : index
    %416 = vector.load %arg11[%c0_146, %c0_147] : memref<128x128xf32, #tpu.memory_space<vmem>>, vector<128x128xf32>
    %cst_148 = arith.constant dense<0.000000e+00> : vector<8x128xf32>
    %417 = tpu.matmul %415, %416, %cst_148 {dimension_numbers = #tpu.dot_dimension_numbers<[1], [0], [0], [1], [0, 0, 1, 1], [], []>} : vector<8x128xf32>, vector<128x128xf32>, vector<8x128xf32> -> vector<8x128xf32>
    %418 = arith.index_cast %c1_i32_136 : i32 to index
    %c0_149 = arith.constant 0 : index
    %c0_150 = arith.constant 0 : index
    %419 = vector.load %arg16[%418, %c0_149, %c0_150] : memref<3x8x128xf32, #tpu.memory_space<vmem>>, vector<1x8x128xf32>
    %420 = vector.shape_cast %419 : vector<1x8x128xf32> to vector<8x128xf32>
    %421 = vector.shape_cast %417 : vector<8x128xf32> to vector<1x8x128xf32>
    tpu.vector_store %arg16[%418, %c0_149, %c0_150], %421 {strides = array<i32>} : memref<3x8x128xf32, #tpu.memory_space<vmem>>, vector<1x8x128xf32>,
    %c0_151 = arith.constant 0 : index
    %c0_152 = arith.constant 0 : index
    %422 = vector.load %arg12[%c0_151, %c0_152] : memref<128x512xbf16, #tpu.memory_space<vmem>>, vector<128x512xbf16>
    %423 = arith.truncf %417 : vector<8x128xf32> to vector<8x128xbf16>
    %cst_153 = arith.constant dense<0.000000e+00> : vector<8x512xf32>
    %424 = tpu.matmul %423, %422, %cst_153 {dimension_numbers = #tpu.dot_dimension_numbers<[1], [0], [0], [1], [0, 0, 1, 1], [], []>} : vector<8x128xbf16>, vector<128x512xbf16>, vector<8x512xf32> -> vector<8x512xf32>
    %425 = arith.addf %397, %424 : vector<8x512xf32>
    %c0_154 = arith.constant 0 : index
    %c0_155 = arith.constant 0 : index
    %426 = vector.load %arg13[%c0_154, %c0_155] : memref<1x512xf32, #tpu.memory_space<vmem>>, vector<1x512xf32>
    %427 = vector.broadcast %426 : vector<1x512xf32> to vector<8x512xf32>
    %428 = arith.addf %425, %427 : vector<8x512xf32>
    %429 = vector.extract_strided_slice %428 {offsets = [0, 0], sizes = [8, 128], strides = [1, 1]} : vector<8x512xf32> to vector<8x128xf32>
    %430 = math.tanh %429 : vector<8x128xf32>
    %431 = vector.extract_strided_slice %428 {offsets = [0, 128], sizes = [8, 128], strides = [1, 1]} : vector<8x512xf32> to vector<8x128xf32>
    %432 = arith.negf %431 : vector<8x128xf32>
    %433 = math.exp %432 : vector<8x128xf32>
    %cst_156 = arith.constant 1.000000e+00 : f32
    %434 = vector.broadcast %cst_156 : f32 to vector<8x128xf32>
    %435 = arith.addf %434, %433 : vector<8x128xf32>
    %436 = arith.divf %434, %435 : vector<8x128xf32>
    %437 = vector.extract_strided_slice %428 {offsets = [0, 256], sizes = [8, 128], strides = [1, 1]} : vector<8x512xf32> to vector<8x128xf32>
    %438 = arith.negf %437 : vector<8x128xf32>
    %439 = math.exp %438 : vector<8x128xf32>
    %cst_157 = arith.constant 1.000000e+00 : f32
    %440 = vector.broadcast %cst_157 : f32 to vector<8x128xf32>
    %441 = arith.addf %440, %439 : vector<8x128xf32>
    %442 = arith.divf %440, %441 : vector<8x128xf32>
    %443 = vector.extract_strided_slice %428 {offsets = [0, 384], sizes = [8, 128], strides = [1, 1]} : vector<8x512xf32> to vector<8x128xf32>
    %444 = arith.negf %443 : vector<8x128xf32>
    %445 = math.exp %444 : vector<8x128xf32>
    %cst_158 = arith.constant 1.000000e+00 : f32
    %446 = vector.broadcast %cst_158 : f32 to vector<8x128xf32>
    %447 = arith.addf %446, %445 : vector<8x128xf32>
    %448 = arith.divf %446, %447 : vector<8x128xf32>
    %449 = arith.mulf %391, %442 : vector<8x128xf32>
    %450 = arith.mulf %436, %430 : vector<8x128xf32>
    %451 = arith.addf %449, %450 : vector<8x128xf32>
    %452 = math.tanh %451 : vector<8x128xf32>
    %453 = arith.mulf %448, %452 : vector<8x128xf32>
    %c2_i32_159 = arith.constant 2 : i32
    %c0_160 = arith.constant 0 : index
    %c0_161 = arith.constant 0 : index
    %454 = vector.load %arg2[%c0_160, %c0_161] : memref<128x640xbf16, #tpu.memory_space<vmem>>, vector<128x640xbf16>
    %455 = arith.truncf %453 : vector<8x128xf32> to vector<8x128xbf16>
    %cst_162 = arith.constant dense<0.000000e+00> : vector<8x640xf32>
    %456 = tpu.matmul %455, %454, %cst_162 {dimension_numbers = #tpu.dot_dimension_numbers<[1], [0], [0], [1], [0, 0, 1, 1], [], []>} : vector<8x128xbf16>, vector<128x640xbf16>, vector<8x640xf32> -> vector<8x640xf32>
    %457 = vector.extract_strided_slice %456 {offsets = [0, 0], sizes = [8, 512], strides = [1, 1]} : vector<8x640xf32> to vector<8x512xf32>
    %458 = vector.extract_strided_slice %456 {offsets = [0, 512], sizes = [8, 128], strides = [1, 1]} : vector<8x640xf32> to vector<8x128xf32>
    %459 = arith.addf %328, %458 : vector<8x128xf32>
    %460 = math.tanh %459 : vector<8x128xf32>
    %461 = math.exp %460 : vector<8x128xf32>
    %462 = vector.broadcast %333 : vector<1x128xf32> to vector<8x128xf32>
    %463 = arith.mulf %461, %462 : vector<8x128xf32>
    %cst_163 = arith.constant dense<0.000000e+00> : vector<8xf32>
    %464 = vector.multi_reduction <add>, %463, %cst_163 [1] : vector<8x128xf32> to vector<8xf32>
    %465 = vector.shape_cast %464 : vector<8xf32> to vector<8x1xf32>
    %466 = tpu.reciprocal %465 {approx = true} : vector<8x1xf32> -> vector<8x1xf32>
    %467 = vector.broadcast %466 : vector<8x1xf32> to vector<8x128xf32>
    %468 = arith.mulf %463, %467 : vector<8x128xf32>
    %469 = arith.index_cast %c2_i32_159 : i32 to index
    %c0_164 = arith.constant 0 : index
    %c0_165 = arith.constant 0 : index
    %470 = vector.load %arg17[%469, %c0_164, %c0_165] : memref<3x8x128xf32, #tpu.memory_space<vmem>>, vector<1x8x128xf32>
    %471 = vector.shape_cast %470 : vector<1x8x128xf32> to vector<8x128xf32>
    %472 = vector.shape_cast %468 : vector<8x128xf32> to vector<1x8x128xf32>
    tpu.vector_store %arg17[%469, %c0_164, %c0_165], %472 {strides = array<i32>} : memref<3x8x128xf32, #tpu.memory_space<vmem>>, vector<1x8x128xf32>,
    %c0_166 = arith.constant 0 : index
    %c0_167 = arith.constant 0 : index
    %473 = vector.load %arg10[%c0_166, %c0_167] : memref<128x128xf32, #tpu.memory_space<vmem>>, vector<128x128xf32>
    %cst_168 = arith.constant dense<0.000000e+00> : vector<8x128xf32>
    %474 = tpu.matmul %468, %473, %cst_168 {dimension_numbers = #tpu.dot_dimension_numbers<[1], [0], [0], [1], [0, 0, 1, 1], [], []>} : vector<8x128xf32>, vector<128x128xf32>, vector<8x128xf32> -> vector<8x128xf32>
    %475 = arith.mulf %474, %459 : vector<8x128xf32>
    %c0_169 = arith.constant 0 : index
    %c0_170 = arith.constant 0 : index
    %476 = vector.load %arg11[%c0_169, %c0_170] : memref<128x128xf32, #tpu.memory_space<vmem>>, vector<128x128xf32>
    %cst_171 = arith.constant dense<0.000000e+00> : vector<8x128xf32>
    %477 = tpu.matmul %475, %476, %cst_171 {dimension_numbers = #tpu.dot_dimension_numbers<[1], [0], [0], [1], [0, 0, 1, 1], [], []>} : vector<8x128xf32>, vector<128x128xf32>, vector<8x128xf32> -> vector<8x128xf32>
    %478 = arith.index_cast %c2_i32_159 : i32 to index
    %c0_172 = arith.constant 0 : index
    %c0_173 = arith.constant 0 : index
    %479 = vector.load %arg16[%478, %c0_172, %c0_173] : memref<3x8x128xf32, #tpu.memory_space<vmem>>, vector<1x8x128xf32>
    %480 = vector.shape_cast %479 : vector<1x8x128xf32> to vector<8x128xf32>
    %481 = vector.shape_cast %477 : vector<8x128xf32> to vector<1x8x128xf32>
    tpu.vector_store %arg16[%478, %c0_172, %c0_173], %481 {strides = array<i32>} : memref<3x8x128xf32, #tpu.memory_space<vmem>>, vector<1x8x128xf32>,
    %c0_174 = arith.constant 0 : index
    %c0_175 = arith.constant 0 : index
    %482 = vector.load %arg12[%c0_174, %c0_175] : memref<128x512xbf16, #tpu.memory_space<vmem>>, vector<128x512xbf16>
    %483 = arith.truncf %477 : vector<8x128xf32> to vector<8x128xbf16>
    %cst_176 = arith.constant dense<0.000000e+00> : vector<8x512xf32>
    %484 = tpu.matmul %483, %482, %cst_176 {dimension_numbers = #tpu.dot_dimension_numbers<[1], [0], [0], [1], [0, 0, 1, 1], [], []>} : vector<8x128xbf16>, vector<128x512xbf16>, vector<8x512xf32> -> vector<8x512xf32>
    %485 = arith.addf %457, %484 : vector<8x512xf32>
    %c0_177 = arith.constant 0 : index
    %c0_178 = arith.constant 0 : index
    %486 = vector.load %arg13[%c0_177, %c0_178] : memref<1x512xf32, #tpu.memory_space<vmem>>, vector<1x512xf32>
    %487 = vector.broadcast %486 : vector<1x512xf32> to vector<8x512xf32>
    %488 = arith.addf %485, %487 : vector<8x512xf32>
    %489 = vector.extract_strided_slice %488 {offsets = [0, 0], sizes = [8, 128], strides = [1, 1]} : vector<8x512xf32> to vector<8x128xf32>
    %490 = math.tanh %489 : vector<8x128xf32>
    %491 = vector.extract_strided_slice %488 {offsets = [0, 128], sizes = [8, 128], strides = [1, 1]} : vector<8x512xf32> to vector<8x128xf32>
    %492 = arith.negf %491 : vector<8x128xf32>
    %493 = math.exp %492 : vector<8x128xf32>
    %cst_179 = arith.constant 1.000000e+00 : f32
    %494 = vector.broadcast %cst_179 : f32 to vector<8x128xf32>
    %495 = arith.addf %494, %493 : vector<8x128xf32>
    %496 = arith.divf %494, %495 : vector<8x128xf32>
    %497 = vector.extract_strided_slice %488 {offsets = [0, 256], sizes = [8, 128], strides = [1, 1]} : vector<8x512xf32> to vector<8x128xf32>
    %498 = arith.negf %497 : vector<8x128xf32>
    %499 = math.exp %498 : vector<8x128xf32>
    %cst_180 = arith.constant 1.000000e+00 : f32
    %500 = vector.broadcast %cst_180 : f32 to vector<8x128xf32>
    %501 = arith.addf %500, %499 : vector<8x128xf32>
    %502 = arith.divf %500, %501 : vector<8x128xf32>
    %503 = vector.extract_strided_slice %488 {offsets = [0, 384], sizes = [8, 128], strides = [1, 1]} : vector<8x512xf32> to vector<8x128xf32>
    %504 = arith.negf %503 : vector<8x128xf32>
    %505 = math.exp %504 : vector<8x128xf32>
    %cst_181 = arith.constant 1.000000e+00 : f32
    %506 = vector.broadcast %cst_181 : f32 to vector<8x128xf32>
    %507 = arith.addf %506, %505 : vector<8x128xf32>
    %508 = arith.divf %506, %507 : vector<8x128xf32>
    %509 = arith.mulf %451, %502 : vector<8x128xf32>
    %510 = arith.mulf %496, %490 : vector<8x128xf32>
    %511 = arith.addf %509, %510 : vector<8x128xf32>
    %512 = math.tanh %511 : vector<8x128xf32>
    %513 = arith.mulf %508, %512 : vector<8x128xf32>
    %c3_i32_182 = arith.constant 3 : i32
    return
  }
  func.func @transform_0(%arg0: i32) -> (i32, i32, i32) {
    %c0_i32 = arith.constant 0 : i32
    %c0_i32_0 = arith.constant 0 : i32
    %c0_i32_1 = arith.constant 0 : i32
    return %c0_i32, %arg0, %c0_i32_0 : i32, i32, i32
  }
  func.func @transform_1(%arg0: i32) -> (i32, i32) {
    %c0_i32 = arith.constant 0 : i32
    %c0_i32_0 = arith.constant 0 : i32
    %c0_i32_1 = arith.constant 0 : i32
    return %c0_i32, %c0_i32_0 : i32, i32
  }
  func.func @transform_2(%arg0: i32) -> (i32, i32) {
    %c0_i32 = arith.constant 0 : i32
    %c0_i32_0 = arith.constant 0 : i32
    %c0_i32_1 = arith.constant 0 : i32
    return %c0_i32, %c0_i32_0 : i32, i32
  }
  func.func @transform_3(%arg0: i32) -> (i32, i32) {
    %c0_i32 = arith.constant 0 : i32
    %c0_i32_0 = arith.constant 0 : i32
    %c0_i32_1 = arith.constant 0 : i32
    return %c0_i32, %c0_i32_0 : i32, i32
  }
  func.func @transform_4(%arg0: i32) -> (i32, i32) {
    %c0_i32 = arith.constant 0 : i32
    %c0_i32_0 = arith.constant 0 : i32
    %c0_i32_1 = arith.constant 0 : i32
    return %c0_i32, %c0_i32_0 : i32, i32
  }
  func.func @transform_5(%arg0: i32) -> (i32, i32) {
    %c0_i32 = arith.constant 0 : i32
    %c0_i32_0 = arith.constant 0 : i32
    %c0_i32_1 = arith.constant 0 : i32
    return %c0_i32, %c0_i32_0 : i32, i32
  }
  func.func @transform_6(%arg0: i32) -> (i32, i32) {
    %c0_i32 = arith.constant 0 : i32
    %c0_i32_0 = arith.constant 0 : i32
    %c0_i32_1 = arith.constant 0 : i32
    return %c0_i32, %c0_i32_0 : i32, i32
  }
  func.func @transform_7(%arg0: i32) -> (i32, i32) {
    %c0_i32 = arith.constant 0 : i32
    %c0_i32_0 = arith.constant 0 : i32
    %c0_i32_1 = arith.constant 0 : i32
    return %c0_i32, %c0_i32_0 : i32, i32
  }
  func.func @transform_8(%arg0: i32) -> (i32, i32) {
    %c0_i32 = arith.constant 0 : i32
    %c0_i32_0 = arith.constant 0 : i32
    %c0_i32_1 = arith.constant 0 : i32
    return %c0_i32, %c0_i32_0 : i32, i32
  }
  func.func @transform_9(%arg0: i32) -> (i32, i32) {
    %c0_i32 = arith.constant 0 : i32
    %c0_i32_0 = arith.constant 0 : i32
    %c0_i32_1 = arith.constant 0 : i32
    return %c0_i32, %c0_i32_0 : i32, i32
  }
  func.func @transform_10(%arg0: i32) -> (i32, i32) {
    %c0_i32 = arith.constant 0 : i32
    %c0_i32_0 = arith.constant 0 : i32
    %c0_i32_1 = arith.constant 0 : i32
    return %c0_i32, %c0_i32_0 : i32, i32
  }
  func.func @transform_11(%arg0: i32) -> (i32, i32) {
    %c0_i32 = arith.constant 0 : i32
    %c0_i32_0 = arith.constant 0 : i32
    %c0_i32_1 = arith.constant 0 : i32
    return %c0_i32, %c0_i32_0 : i32, i32
  }
  func.func @transform_12(%arg0: i32) -> (i32, i32) {
    %c0_i32 = arith.constant 0 : i32
    %c0_i32_0 = arith.constant 0 : i32
    %c0_i32_1 = arith.constant 0 : i32
    return %c0_i32, %c0_i32_0 : i32, i32
  }
  func.func @transform_13(%arg0: i32) -> (i32, i32, i32) {
    %c0_i32 = arith.constant 0 : i32
    %c0_i32_0 = arith.constant 0 : i32
    %c0_i32_1 = arith.constant 0 : i32
    return %c0_i32, %arg0, %c0_i32_0 : i32, i32, i32
  }
  func.func @transform_14(%arg0: i32) -> (i32, i32, i32) {
    %c0_i32 = arith.constant 0 : i32
    %c0_i32_0 = arith.constant 0 : i32
    %c0_i32_1 = arith.constant 0 : i32
    return %c0_i32, %arg0, %c0_i32_0 : i32, i32, i32
  }
  func.func @transform_15(%arg0: i32) -> (i32, i32, i32) {
    %c0_i32 = arith.constant 0 : i32
    %c0_i32_0 = arith.constant 0 : i32
    %c0_i32_1 = arith.constant 0 : i32
    return %c0_i32, %arg0, %c0_i32_0 : i32, i32, i32
  }
  func.func @transform_16(%arg0: i32) -> (i32, i32, i32) {
    %c0_i32 = arith.constant 0 : i32
    %c0_i32_0 = arith.constant 0 : i32
    %c0_i32_1 = arith.constant 0 : i32
    return %c0_i32, %arg0, %c0_i32_0 : i32, i32, i32
  }
}

</mosaic_0001>

<bundles_post_ra>
// kernel: tile.13
= control target key start
LH: loop header
LB: loop body
LE: loop exit
PB: predicated region body
PF: predicated region fallthrough
CT: control target
= control target key end

     0   :  { %s22_s0 = inlined_call_operand.vmem [shape: f32[4], index: 0, kind: input, shape index: {}]   ;;  %s23_s1 = inlined_call_operand.vmem [shape: f32[4,4], index: 1, kind: output, shape index: {}]  }
   0x1   :  { %v4_v0 = vld [vmem:[%s22_s0] ss:$0 sm:$0xff] }
   0x2   :  { %5 = vst [vmem:[%s23_s1] sm:$0xf] %v4_v0 }

// kernel: tile.14
= control target key start
LH: loop header
LB: loop body
LE: loop exit
PB: predicated region body
PF: predicated region fallthrough
CT: control target
= control target key end

     0   :  { %vm7_vm0 = vcmask 31744   ;;  %s37_s8 = smov 4   ;;  %s38_s9 = smov 8   ;;  %vm13_vm1 = vcmask 130144   ;;  %vm19_vm2 = vcmask 97344   ;;  %vm25_vm3 = vcmask 64544   ;;  %s55_s0 = inlined_call_operand.vmem [shape: f32[4,4], index: 0, kind: input, shape index: {}]   ;;  %s56_s1 = inlined_call_operand.vmem [shape: f32[1,16], index: 1, kind: output, shape index: {}]  }
   0x1   :  { %v4_v0 = vld [vmem:[%s55_s0] sm:$0xf]  ;;  %s36_s0 = smov 12  }
   0x2   :  { %5 = vst [vmem:[#allocation1] sm:$0xf] %v4_v0 }
   0x9   :  { %v10_v1 = vld [vmem:[#allocation1 + $0x3] sm:$0x1]   ;;  %v22_v2 = vld [vmem:[#allocation1 + $0x1] sm:$0x1]   ;;  %v6_v3 = vld [vmem:[#allocation1] sm:$0x1]  }
   0xa   :  { %11 = vrot.lane.b32.xlu0 %v10_v1, %s36_s0  ;;  %23 = vrot.lane.b32.xlu1 %v22_v2, %s37_s8  ;;  %v16_v4 = vld [vmem:[#allocation1 + $0x2] sm:$0x1]   ;;  %8 = vst.msk [vmem:[#allocation0] sm:$0x1] %vm7_vm0, %v6_v3  }
   0xe   :  { %17 = vrot.lane.b32.xlu0 %v16_v4, %s38_s9 }
  0x7c   :  { %v12_v5 = vpop.permute.xlu0 %11   ;;  %v24_v6 = vpop.permute.xlu1 %23  }
  0x7d   :  { %14 = vst.msk [vmem:[#allocation0] sm:$0x1] %vm13_vm1, %v12_v5  }
  0x80   :  { %v18_v7 = vpop.permute.xlu0 %17  }
  0x81   :  { %20 = vst.msk [vmem:[#allocation0] sm:$0x1] %vm19_vm2, %v18_v7  }
  0x82   :  { %26 = vst.msk [vmem:[#allocation0] sm:$0x1] %vm25_vm3, %v24_v6  }
  0x89   :  { %v30_v8 = vld [vmem:[#allocation0] sm:$0x1] }
  0x8a   :  { %32 = vst [vmem:[%s56_s1] sm:$0x1] %v30_v8 }

// kernel: imv_forward.1
= control target key start
LH: loop header
LB: loop body
LE: loop exit
PB: predicated region body
PF: predicated region fallthrough
CT: control target
= control target key end

     0   :  { %v9069_v0 = vlaneseq  ;;  %v6968_v2 = vmov 1983009808   ;;  %v9070_v4 = vmov 0   ;;  %vm93_vm0 = vcmask 1041408   ;;  %s9052_s2 = inlined_call_operand.vmem [shape: bf16[4,512], index: 2, kind: input, shape index: {}]   ;;  %s9053_s1 = inlined_call_operand.vmem [shape: bf16[128,640], index: 1, kind: input, shape index: {}]   ;;  %s9054_s0 = inlined_call_operand.vmem [shape: f32[8,8,4], index: 0, kind: input, shape index: {}]   ;;  %s9055_s3 = inlined_call_operand.vmem [shape: f32[1,512], index: 3, kind: input, shape index: {}]   ;;  %s9056_s13 = inlined_call_operand.vmem [shape: f32[8,8,128], index: 13, kind: output, shape index: {0}]   ;;  %s9057_s4 = inlined_call_operand.vmem [shape: bf16[128,128], index: 4, kind: input, shape index: {}]   ;;  %s9058_s5 = inlined_call_operand.vmem [shape: f32[1,128], index: 5, kind: input, shape index: {}]   ;;  %s9059_s6 = inlined_call_operand.vmem [shape: f32[128,128], index: 6, kind: input, shape index: {}]   ;;  %s9060_s7 = inlined_call_operand.vmem [shape: bf16[128,128], index: 7, kind: input, shape index: {}]   ;;  %s9061_s14 = inlined_call_operand.vmem [shape: f32[8,8,128], index: 14, kind: output, shape index: {1}]   ;;  %s9062_s9 = inlined_call_operand.vmem [shape: f32[128,128], index: 9, kind: input, shape index: {}]   ;;  %s9063_s8 = inlined_call_operand.vmem [shape: f32[1,128], index: 8, kind: input, shape index: {}]   ;;  %s9064_s10 = inlined_call_operand.vmem [shape: f32[128,128], index: 10, kind: input, shape index: {}]   ;;  %s9065_s16 = inlined_call_operand.vmem [shape: f32[3,8,128], index: 16, kind: output, shape index: {3}]   ;;  %s9066_s11 = inlined_call_operand.vmem [shape: bf16[128,512], index: 11, kind: input, shape index: {}]   ;;  %s9067_s15 = inlined_call_operand.vmem [shape: f32[3,8,128], index: 15, kind: output, shape index: {2}]   ;;  %s9068_s12 = inlined_call_operand.vmem [shape: f32[1,512], index: 12, kind: input, shape index: {}]  }
   0x1   :  { %9106 = sst [smem:[#allocation29_spill]] %s9052_s2  ;;  %v65_v3 = vunpack.c.l.s4 %v6968_v2  ;;  %138 = vmatprep.mubr.bf16.mxu0 %v9070_v4  ;;  %211 = vmatprep.mubr.bf16.mxu1 %v9070_v4  ;;  %v49_v11 = vld [vmem:[%s9054_s0] sm:$0xff]  ;;  %v50_v12 = vld [vmem:[%s9054_s0 + $0x8] sm:$0xff]  ;;  %vm80_vm1 = vcmask 31744   ;;  %v51_v26 = vld [vmem:[%s9054_s0 + $0x10] sm:$0xff]  ;;  %vm6971_vm2 = vmmov 0  }
   0x2   :  { %s9107_s23 = sld [smem:[#allocation29_spill]]  ;;  %v7064_v5 = vshrl.u32 %v9069_v0, 7  ;;  %v7076_v13 = vld [vmem:[%s9053_s1 + $0x4] ss:$20 sps:$4 sm:$0xff]   ;;  %v7081_v18 = vld [vmem:[%s9053_s1 + $0xc] ss:$20 sps:$4 sm:$0xff]   ;;  %v58_v19 = vpack.c.bf16 %v50_v12, %v49_v11 }
   0x3   :  { %v66_v6 = vunpack.c.0.s8 %v65_v3  ;;  %v7086_v20 = vld [vmem:[%s9053_s1] ss:$20 sps:$4 sm:$0xff]   ;;  %v7091_v21 = vld [vmem:[%s9053_s1 + $0x8] ss:$20 sps:$4 sm:$0xff]   ;;  %v7115_v25 = vld [vmem:[%s9053_s1 + $0x30] ss:$20 sps:$4 sm:$0xff]  }
   0x4   :  { %v7098_v22 = vld [vmem:[%s9053_s1 + $0x2c] ss:$20 sps:$4 sm:$0xff]   ;;  %v7103_v23 = vld [vmem:[%s9053_s1 + $0x34] ss:$20 sps:$4 sm:$0xff]   ;;  %v52_v27 = vld [vmem:[%s9054_s0 + $0x18] sm:$0xff]  ;;  %v7338_v59 = vsub.s32 2, %v7064_v5 }
   0x5   :  { %v69_v8 = vsub.s32 %v66_v6, %v7064_v5  ;;  %v7108_v24 = vld [vmem:[%s9053_s1 + $0x28] ss:$20 sps:$4 sm:$0xff]   ;;  %v59_v30 = vpack.c.bf16 %v52_v27, %v51_v26  ;;  %v7142_v31 = vld [vmem:[%s9053_s1 + $0x50] ss:$20 sps:$4 sm:$0xff]   ;;  %v7147_v32 = vld [vmem:[%s9053_s1 + $0x58] ss:$20 sps:$4 sm:$0xff]  }
   0x6   :  { %v7130_v28 = vld [vmem:[%s9053_s1 + $0x54] ss:$20 sps:$4 sm:$0xff]   ;;  %v7135_v29 = vld [vmem:[%s9053_s1 + $0x5c] ss:$20 sps:$4 sm:$0xff]   ;;  %v7161_v34 = vld [vmem:[%s9053_s1 + $0x84] ss:$20 sps:$4 sm:$0xff]  }
   0x7   :  { %v7154_v33 = vld [vmem:[%s9053_s1 + $0x7c] ss:$20 sps:$4 sm:$0xff]   ;;  %v7166_v35 = vld [vmem:[%s9053_s1 + $0x78] ss:$20 sps:$4 sm:$0xff]   ;;  %v7171_v36 = vld [vmem:[%s9053_s1 + $0x80] ss:$20 sps:$4 sm:$0xff]  }
   0x8   :  { %v57_v1 = vld [vmem:[%s9107_s23] sm:$0xff]  ;;  %v54_v38 = vld [vmem:[%s9054_s0 + $0x28] sm:$0xff]  ;;  %v55_v48 = vld [vmem:[%s9054_s0 + $0x30] sm:$0xff]  ;;  %9108 = vst [vmem:[#allocation3_spill] sm:$0xff] %v7338_v59  ;;  %v7344_v61 = vsub.s32 0, %v7064_v5  ;;  %v7347_v62 = vsub.s32 1, %v7064_v5 }
   0x9   :  { %v63_v7 = vcombine.high %v57_v1, %v57_v1  ;;  %v70_v9 = vrot.slane %v57_v1, %v69_v8  ;;  %v53_v37 = vld [vmem:[%s9054_s0 + $0x20] sm:$0xff]  ;;  %v7205_v42 = vld [vmem:[%s9053_s1 + $0xa8] ss:$20 sps:$4 sm:$0xff]   ;;  %v7263_v53 = vld [vmem:[%s9053_s1 + $0xf8] ss:$20 sps:$4 sm:$0xff]   ;;  %v7350_v63 = vsub.s32 3, %v7064_v5 }
   0xa   :  { %v7186_v39 = vld [vmem:[%s9053_s1 + $0xa4] ss:$20 sps:$4 sm:$0xff]   ;;  %v7193_v40 = vld [vmem:[%s9053_s1 + $0xac] ss:$20 sps:$4 sm:$0xff]   ;;  %v60_v43 = vpack.c.bf16 %v54_v38, %v53_v37  ;;  %v7215_v45 = vld [vmem:[%s9053_s1 + $0xd4] ss:$20 sps:$4 sm:$0xff]  }
   0xb   :  { %v77_v10 = vrot.slane %v63_v7, %v69_v8  ;;  %v78_v14 = vcombine.high %v70_v9, %v70_v9  ;;  %v95_v16 = vsel %vm93_vm0, %v70_v9, 0  ;;  %v7200_v41 = vld [vmem:[%s9053_s1 + $0xa0] ss:$20 sps:$4 sm:$0xff]   ;;  %v7224_v46 = vld [vmem:[%s9053_s1 + $0xc8] ss:$20 sps:$4 sm:$0xff]   ;;  %9109 = vst [vmem:[#allocation4_spill] sm:$0xff] %v7344_v61 }
   0xc   :  { %v7210_v44 = vld [vmem:[%s9053_s1 + $0xcc] ss:$20 sps:$4 sm:$0xff]   ;;  %v7229_v47 = vld [vmem:[%s9053_s1 + $0xd0] ss:$20 sps:$4 sm:$0xff]   ;;  %v56_v49 = vld [vmem:[%s9054_s0 + $0x38] sm:$0xff]  ;;  %9110 = vst [vmem:[#allocation5_spill] sm:$0xff] %v7347_v62 }
   0xd   :  { %v79_v15 = vcombine.high %v77_v10, %v77_v10  ;;  %v101_v17 = vsel %vm93_vm0, %v77_v10, 0  ;;  %5325 = vmatprep.subr.msk.bf16.mxu0 %vm93_vm0, %v78_v14  ;;  %v7242_v50 = vld [vmem:[%s9053_s1 + $0xf4] ss:$20 sps:$4 sm:$0xff]   ;;  %v7247_v51 = vld [vmem:[%s9053_s1 + $0xfc] ss:$20 sps:$4 sm:$0xff]   ;;  %v61_v54 = vpack.c.bf16 %v56_v49, %v55_v48  ;;  %9111 = vst [vmem:[#allocation6_spill] sm:$0xff] %v7350_v63 }
   0xe   :  { %107 = vmatpush1.bf16.msra.mxu0 %v95_v16  ;;  %v7258_v52 = vld [vmem:[%s9053_s1 + $0xf0] ss:$20 sps:$4 sm:$0xff]   ;;  %v7282_v57 = vld [vmem:[%s9053_s1 + $0x118] ss:$20 sps:$4 sm:$0xff]   ;;  %v7287_v58 = vld [vmem:[%s9053_s1 + $0x120] ss:$20 sps:$4 sm:$0xff]  }
   0xf   :  { %5330 = vmatprep.subr.msk.bf16.mxu1 %vm93_vm0, %v79_v15  ;;  %534 = vmatprep.subr.bf16.mxu0 %v7076_v13  ;;  %v7268_v55 = vld [vmem:[%s9053_s1 + $0x11c] ss:$20 sps:$4 sm:$0xff]   ;;  %v7273_v56 = vld [vmem:[%s9053_s1 + $0x124] ss:$20 sps:$4 sm:$0xff]   ;;  %v252_v60 = vld [vmem:[%s9055_s3] sm:$0xf] }
  0x10   :  { %180 = vmatpush1.bf16.msra.mxu1 %v101_v17  ;;  %v7353_v1 = vrot.slane %v252_v60, %v7338_v59  ;;  %v257_v6 = vrot.slane %v252_v60, %v7344_v61  ;;  %v261_v9 = vrot.slane %v252_v60, %v7347_v62  ;;  %v269_v10 = vrot.slane %v252_v60, %v7350_v63 }
  0x11   :  { %575 = vmatprep.subr.bf16.mxu1 %v7081_v18  ;;  %5326 = vmatmul.mubr.msk.bf16.vlgmr.msra.gmra.mrb[0].mxu0 %vm80_vm1, %v58_v19 }
  0x12   :  { %535 = vmatpush1.bf16.msra.mxu0 %v7086_v20  ;;  %148 = vmatprep.mubr.bf16.mxu0 %v9070_v4 }
  0x13   :  { %5331 = vmatmul.mubr.msk.bf16.vlgmr.msra.gmra.mrb[0].mxu1 %vm80_vm1, %v58_v19  ;;  %536 = vmatprep.subr.bf16.mxu0 %v7098_v22 }
  0x14   :  { %576 = vmatpush1.bf16.msra.mxu1 %v7091_v21  ;;  %221 = vmatprep.mubr.bf16.mxu1 %v9070_v4 }
  0x15   :  { %577 = vmatprep.subr.bf16.mxu1 %v7103_v23 }
  0x16   :  { %537 = vmatpush1.bf16.msra.mxu0 %v7108_v24 }
  0x17   :  { %538 = vmatprep.subr.bf16.mxu0 %v7130_v28 }
  0x18   :  { %578 = vmatpush1.bf16.msra.mxu1 %v7115_v25 }
  0x19   :  { %579 = vmatprep.subr.bf16.mxu1 %v7135_v29  ;;  %5327 = vmatmul.mubr.msk.bf16.gmra.mrb[4].mxu0 %vm80_vm1, %v59_v30 }
  0x1a   :  { %539 = vmatpush1.bf16.msra.mxu0 %v7142_v31  ;;  %158 = vmatprep.mubr.bf16.mxu0 %v9070_v4 }
  0x1b   :  { %5332 = vmatmul.mubr.msk.bf16.gmra.mrb[4].mxu1 %vm80_vm1, %v59_v30  ;;  %540 = vmatprep.subr.bf16.mxu0 %v7154_v33 }
  0x1c   :  { %580 = vmatpush1.bf16.msra.mxu1 %v7147_v32  ;;  %231 = vmatprep.mubr.bf16.mxu1 %v9070_v4 }
  0x1d   :  { %581 = vmatprep.subr.bf16.mxu1 %v7161_v34 }
  0x1e   :  { %541 = vmatpush1.bf16.msra.mxu0 %v7166_v35 }
  0x1f   :  { %542 = vmatprep.subr.bf16.mxu0 %v7186_v39 }
  0x20   :  { %582 = vmatpush1.bf16.msra.mxu1 %v7171_v36 }
  0x21   :  { %583 = vmatprep.subr.bf16.mxu1 %v7193_v40  ;;  %5328 = vmatmul.mubr.msk.bf16.gmra.mrb[8].mxu0 %vm80_vm1, %v60_v43 }
  0x22   :  { %543 = vmatpush1.bf16.msra.mxu0 %v7200_v41  ;;  %168 = vmatprep.mubr.bf16.mxu0 %v9070_v4 }
  0x23   :  { %5333 = vmatmul.mubr.msk.bf16.gmra.mrb[8].mxu1 %vm80_vm1, %v60_v43  ;;  %544 = vmatprep.subr.bf16.mxu0 %v7210_v44 }
  0x24   :  { %584 = vmatpush1.bf16.msra.mxu1 %v7205_v42  ;;  %241 = vmatprep.mubr.bf16.mxu1 %v9070_v4 }
  0x25   :  { %585 = vmatprep.subr.bf16.mxu1 %v7215_v45 }
  0x26   :  { %545 = vmatpush1.bf16.msra.mxu0 %v7224_v46 }
  0x27   :  { %546 = vmatprep.subr.bf16.mxu0 %v7242_v50 }
  0x28   :  { %586 = vmatpush1.bf16.msra.mxu1 %v7229_v47 }
  0x29   :  { %587 = vmatprep.subr.bf16.mxu1 %v7247_v51  ;;  %5329 = vmatmul.mubr.msk.bf16.gmra.mrb[12].mxu0 %vm80_vm1, %v61_v54 }
  0x2a   :  { %547 = vmatpush1.bf16.msra.mxu0 %v7258_v52  ;;  %566 = vmatprep.mubr.bf16.mxu0 %v9070_v4 }
  0x2b   :  { %5334 = vmatmul.mubr.msk.bf16.gmra.mrb[12].mxu1 %vm80_vm1, %v61_v54  ;;  %548 = vmatprep.subr.bf16.mxu0 %v7268_v55 }
  0x2c   :  { %588 = vmatpush1.bf16.msra.mxu1 %v7263_v53  ;;  %607 = vmatprep.mubr.bf16.mxu1 %v9070_v4 }
  0x2d   :  { %589 = vmatprep.subr.bf16.mxu1 %v7273_v56 }
  0x2e   :  { %549 = vmatpush1.bf16.msra.mxu0 %v7282_v57 }
  0x2f   :  { %839 = vmatprep.subr.bf16.mxu0 %v7076_v13 }
  0x30   :  { %590 = vmatpush1.bf16.msra.mxu1 %v7287_v58 }
  0x31   :  { %880 = vmatprep.subr.bf16.mxu1 %v7081_v18  ;;  %567 = vmatmul.mubr.bf16.vlgmr.msra.gmra.mrb[16].mxu0 %v9070_v4 }
  0x32   :  { %840 = vmatpush1.bf16.msra.mxu0 %v7086_v20  ;;  %871 = vmatprep.mubr.bf16.mxu0 %v9070_v4 }
  0x33   :  { %608 = vmatmul.mubr.bf16.vlgmr.msra.gmra.mrb[16].mxu1 %v9070_v4  ;;  %841 = vmatprep.subr.bf16.mxu0 %v7098_v22 }
  0x34   :  { %881 = vmatpush1.bf16.msra.mxu1 %v7091_v21  ;;  %912 = vmatprep.mubr.bf16.mxu1 %v9070_v4 }
  0x35   :  { %882 = vmatprep.subr.bf16.mxu1 %v7103_v23 }
  0x36   :  { %842 = vmatpush1.bf16.msra.mxu0 %v7108_v24 }
  0x37   :  { %843 = vmatprep.subr.bf16.mxu0 %v7130_v28 }
  0x38   :  { %883 = vmatpush1.bf16.msra.mxu1 %v7115_v25 }
  0x39   :  { %884 = vmatprep.subr.bf16.mxu1 %v7135_v29 }
  0x3a   :  { %844 = vmatpush1.bf16.msra.mxu0 %v7142_v31 }
  0x3b   :  { %845 = vmatprep.subr.bf16.mxu0 %v7154_v33 }
  0x3c   :  { %885 = vmatpush1.bf16.msra.mxu1 %v7147_v32 }
  0x3d   :  { %886 = vmatprep.subr.bf16.mxu1 %v7161_v34 }
  0x3e   :  { %846 = vmatpush1.bf16.msra.mxu0 %v7166_v35 }
  0x3f   :  { %847 = vmatprep.subr.bf16.mxu0 %v7186_v39 }
  0x40   :  { %887 = vmatpush1.bf16.msra.mxu1 %v7171_v36 }
  0x41   :  { %888 = vmatprep.subr.bf16.mxu1 %v7193_v40 }
  0x42   :  { %848 = vmatpush1.bf16.msra.mxu0 %v7200_v41 }
  0x43   :  { %849 = vmatprep.subr.bf16.mxu0 %v7210_v44 }
  0x44   :  { %889 = vmatpush1.bf16.msra.mxu1 %v7205_v42 }
  0x45   :  { %890 = vmatprep.subr.bf16.mxu1 %v7215_v45 }
  0x46   :  { %850 = vmatpush1.bf16.msra.mxu0 %v7224_v46 }
  0x47   :  { %851 = vmatprep.subr.bf16.mxu0 %v7242_v50 }
  0x48   :  { %891 = vmatpush1.bf16.msra.mxu1 %v7229_v47 }
  0x49   :  { %892 = vmatprep.subr.bf16.mxu1 %v7247_v51 }
  0x4a   :  { %852 = vmatpush1.bf16.msra.mxu0 %v7258_v52 }
  0x4b   :  { %853 = vmatprep.subr.bf16.mxu0 %v7268_v55 }
  0x4c   :  { %893 = vmatpush1.bf16.msra.mxu1 %v7263_v53 }
  0x4d   :  { %894 = vmatprep.subr.bf16.mxu1 %v7273_v56 }
  0x4e   :  { %854 = vmatpush1.bf16.msra.mxu0 %v7282_v57 }
  0x4f   :  { %1145 = vmatprep.subr.bf16.mxu0 %v7076_v13 }
  0x50   :  { %895 = vmatpush1.bf16.msra.mxu1 %v7287_v58 }
  0x51   :  { %1186 = vmatprep.subr.bf16.mxu1 %v7081_v18 }
  0xe4   :  { %v7355_v2 = vpop.f32.mrb[0].mxu0 }
  0xe5   :  { %v142_v7 = vpop.f32.mrb[1].mxu0 }
  0xe6   :  { %v7357_v3 = vpop.f32.mrb[0].mxu1  ;;  %v144_v11 = vpop.f32.mrb[2].mxu0 }
  0xe7   :  { %v215_v8 = vpop.f32.mrb[1].mxu1  ;;  %v7362_v14 = vadd.f32 %v257_v6, %v144_v11  ;;  %v146_v15 = vpop.f32.mrb[3].mxu0 }
  0xe8   :  { %v217_v12 = vpop.f32.mrb[2].mxu1  ;;  %v7367_v17 = vadd.f32 %v261_v9, %v146_v15 }
  0xe9   :  { %v7365_v5 = vadd.f32 %v7353_v1, %v217_v12  ;;  %v219_v16 = vpop.f32.mrb[3].mxu1 }
  0xea   :  { %v7369_v19 = vadd.f32 %v269_v10, %v219_v16 }
  0xec   :  { %v150_v26 = vpop.f32.mrb[4].mxu0 }
  0xed   :  { %v7371_v30 = vadd.f32 %v257_v6, %v150_v26  ;;  %v152_v38 = vpop.f32.mrb[5].mxu0 }
  0xee   :  { %v223_v27 = vpop.f32.mrb[4].mxu1  ;;  %v7376_v48 = vadd.f32 %v261_v9, %v152_v38  ;;  %v154_v54 = vpop.f32.mrb[6].mxu0 }
  0xef   :  { %v7374_v37 = vadd.f32 %v7353_v1, %v223_v27  ;;  %v225_v43 = vpop.f32.mrb[5].mxu1  ;;  %v7380_v11 = vadd.f32 %v257_v6, %v154_v54  ;;  %v156_v15 = vpop.f32.mrb[7].mxu0 }
  0xf0   :  { %9112 = vst [vmem:[#allocation7_spill] sm:$0xff] %v7376_v48  ;;  %v7378_v49 = vadd.f32 %v269_v10, %v225_v43  ;;  %v227_v60 = vpop.f32.mrb[6].mxu1  ;;  %v7385_v26 = vadd.f32 %v261_v9, %v156_v15 }
  0xf1   :  { %9114 = vst [vmem:[#allocation9_spill] sm:$0xff] %v7380_v11  ;;  %v7383_v12 = vadd.f32 %v7353_v1, %v227_v60  ;;  %v229_v16 = vpop.f32.mrb[7].mxu1 }
  0xf2   :  { %9113 = vst [vmem:[#allocation8_spill] sm:$0xff] %v7378_v49  ;;  %9116 = vst [vmem:[#allocation11_spill] sm:$0xff] %v7385_v26  ;;  %v7387_v0 = vadd.f32 %v269_v10, %v229_v16 }
  0xf3   :  { %9115 = vst [vmem:[#allocation10_spill] sm:$0xff] %v7383_v12 }
  0xf4   :  { %9117 = vst [vmem:[#allocation12_spill] sm:$0xff] %v7387_v0  ;;  %v160_v27 = vpop.f32.mrb[8].mxu0 }
  0xf5   :  { %v7389_v61 = vadd.f32 %v257_v6, %v160_v27  ;;  %v162_v43 = vpop.f32.mrb[9].mxu0 }
  0xf6   :  { %v233_v4 = vpop.f32.mrb[8].mxu1  ;;  %v7394_v54 = vadd.f32 %v261_v9, %v162_v43  ;;  %v164_v60 = vpop.f32.mrb[10].mxu0 }
  0xf7   :  { %9118 = vst [vmem:[#allocation13_spill] sm:$0xff] %v7389_v61  ;;  %v7392_v38 = vadd.f32 %v7353_v1, %v233_v4  ;;  %v235_v63 = vpop.f32.mrb[9].mxu1  ;;  %v7398_v12 = vadd.f32 %v257_v6, %v164_v60  ;;  %v166_v16 = vpop.f32.mrb[11].mxu0 }
  0xf8   :  { %9120 = vst [vmem:[#allocation15_spill] sm:$0xff] %v7394_v54  ;;  %v7396_v62 = vadd.f32 %v269_v10, %v235_v63  ;;  %v237_v59 = vpop.f32.mrb[10].mxu1  ;;  %v7403_v27 = vadd.f32 %v261_v9, %v166_v16 }
  0xf9   :  { %9119 = vst [vmem:[#allocation14_spill] sm:$0xff] %v7392_v38  ;;  %9122 = vst [vmem:[#allocation17_spill] sm:$0xff] %v7398_v12  ;;  %v7401_v15 = vadd.f32 %v7353_v1, %v237_v59  ;;  %v239_v0 = vpop.f32.mrb[11].mxu1 }
  0xfa   :  { %9121 = vst [vmem:[#allocation16_spill] sm:$0xff] %v7396_v62  ;;  %9124 = vst [vmem:[#allocation19_spill] sm:$0xff] %v7403_v27  ;;  %v7405_v61 = vadd.f32 %v269_v10, %v239_v0 }
  0xfb   :  { %9123 = vst [vmem:[#allocation18_spill] sm:$0xff] %v7401_v15 }
  0xfc   :  { %9125 = vst [vmem:[#allocation20_spill] sm:$0xff] %v7405_v61  ;;  %v170_v4 = vpop.f32.mrb[12].mxu0 }
  0xfd   :  { %v7407_v26 = vadd.f32 %v257_v6, %v170_v4  ;;  %v172_v43 = vpop.f32.mrb[13].mxu0 }
  0xfe   :  { %v243_v38 = vpop.f32.mrb[12].mxu1  ;;  %v7412_v60 = vadd.f32 %v261_v9, %v172_v43  ;;  %v174_v59 = vpop.f32.mrb[14].mxu0  ;;  %v276_v43 = vadd.f32 %v7353_v1, %v7357_v3 }
  0xff   :  { %9126 = vst [vmem:[#allocation21_spill] sm:$0xff] %v7407_v26  ;;  %v7410_v63 = vadd.f32 %v7353_v1, %v243_v38  ;;  %v245_v62 = vpop.f32.mrb[13].mxu1  ;;  %v7416_v54 = vadd.f32 %v257_v6, %v174_v59  ;;  %v176_v16 = vpop.f32.mrb[15].mxu0  ;;  %v274_v38 = vadd.f32 %v257_v6, %v7355_v2 }
 0x100   :  { %9128 = vst [vmem:[#allocation23_spill] sm:$0xff] %v7412_v60  ;;  %v7414_v12 = vadd.f32 %v269_v10, %v245_v62  ;;  %v247_v15 = vpop.f32.mrb[14].mxu1  ;;  %v7421_v4 = vadd.f32 %v261_v9, %v176_v16  ;;  %v275_v62 = vadd.f32 %v261_v9, %v142_v7 }
 0x101   :  { %9127 = vst [vmem:[#allocation22_spill] sm:$0xff] %v7410_v63  ;;  %9130 = vst [vmem:[#allocation25_spill] sm:$0xff] %v7416_v54  ;;  %v7419_v0 = vadd.f32 %v7353_v1, %v247_v15  ;;  %v249_v61 = vpop.f32.mrb[15].mxu1 }
 0x102   :  { %9129 = vst [vmem:[#allocation24_spill] sm:$0xff] %v7414_v12  ;;  %9132 = vst [vmem:[#allocation27_spill] sm:$0xff] %v7421_v4  ;;  %v7423_v26 = vadd.f32 %v269_v10, %v249_v61  ;;  %v277_v12 = vadd.f32 %v269_v10, %v215_v8 }
 0x103   :  { %9131 = vst [vmem:[#allocation26_spill] sm:$0xff] %v7419_v0 }
 0x104   :  { %9133 = vst [vmem:[#allocation28_spill] sm:$0xff] %v7423_v26  ;;  %v568_v60 = vpop.f32.mrb[16].mxu0 }
 0x105   :  { %v569_v59 = vadd.f32 %v568_v60, %v274_v38  ;;  %v570_v27 = vpop.f32.mrb[17].mxu0 }
 0x106   :  { %v609_v63 = vpop.f32.mrb[16].mxu1  ;;  %v571_v0 = vadd.f32 %v570_v27, %v275_v62  ;;  %v572_v49 = vpop.f32.mrb[18].mxu0 }
 0x107   :  { %v610_v54 = vadd.f32 %v609_v63, %v276_v43  ;;  %v611_v15 = vpop.f32.mrb[17].mxu1  ;;  %v573_v61 = vpop.f32.mrb[19].mxu0 }
 0x108   :  { %v612_v11 = vadd.f32 %v611_v15, %v277_v12  ;;  %v613_v16 = vpop.f32.mrb[18].mxu1  ;;  %v5367_v48 = vmul.f32 -1.442695, %v571_v0  ;;  %v9134_v0 = vmov 0  }
 0x109   :  { %v5368_v4 = vmul.f32 -1.442695, %v610_v54  ;;  %v614_v26 = vpop.f32.mrb[19].mxu1 }
 0x10a   :  { %v5369_v2 = vmul.f32 -1.442695, %v612_v11 }
 0x10b   :  { %6755 = vpow2.f32 %v5368_v4 }
 0x10c   :  { %6757 = vpow2.f32 %v5367_v48 }
 0x10d   :  { %6759 = vpow2.f32 %v5369_v2 }
 0x10e   :  { %6761 = vtanh.f32 %v569_v59 }
 0x115   :  { %v6756_v1 = vpop.eup %6755 }
 0x116   :  { %v6758_v3 = vpop.eup %6757  ;;  %v626_v6 = vadd.f32 1.0, %v6756_v1 }
 0x117   :  { %v620_v7 = vadd.f32 1.0, %v6758_v3  ;;  %v6760_v8 = vpop.eup %6759 }
 0x118   :  { %6763 = vrcp.f32 %v626_v6  ;;  %v6762_v9 = vpop.eup %6761  ;;  %v632_v54 = vadd.f32 1.0, %v6760_v8 }
 0x119   :  { %6765 = vrcp.f32 %v620_v7 }
 0x11a   :  { %6767 = vrcp.f32 %v632_v54 }
 0x122   :  { %v6764_v10 = vpop.eup %6763 }
 0x123   :  { %v6766_v49 = vpop.eup %6765  ;;  %v635_v12 = vmul.f32 0.0, %v6764_v10 }
 0x124   :  { %v636_v27 = vmul.f32 %v6766_v49, %v6762_v9  ;;  %v6768_v48 = vpop.eup %6767 }
 0x126   :  { %v7428_v26 = vadd.f32 %v636_v27, %v635_v12 }
 0x128   :  { %6769 = vtanh.f32 %v7428_v26 }
 0x132   :  { %v6770_v11 = vpop.eup %6769 }
 0x133   :  { %v639_v63 = vmul.f32 %v6770_v11, %v6768_v48 }
 0x135   :  { %640 = vst [vmem:[%s9056_s13] sm:$0xff] %v639_v63  ;;  %v673_v60 = vpack.c.bf16 %v639_v63, %v639_v63 }
 0x137   :  { %872 = vmatmul.mubr.bf16.vlgmr.msra.gmra.mrb[20].mxu0 %v673_v60  ;;  %913 = vmatmul.mubr.bf16.vlgmr.msra.gmra.mrb[20].mxu1 %v673_v60 }
 0x138   :  { %1146 = vmatpush1.bf16.msra.mxu0 %v7086_v20  ;;  %1187 = vmatpush1.bf16.msra.mxu1 %v7091_v21 }
 0x139   :  { %1147 = vmatprep.subr.bf16.mxu0 %v7098_v22  ;;  %1188 = vmatprep.subr.bf16.mxu1 %v7103_v23 }
 0x13a   :  { %1177 = vmatprep.mubr.bf16.mxu0 %v9134_v0  ;;  %1218 = vmatprep.mubr.bf16.mxu1 %v9134_v0 }
 0x13c   :  { %1148 = vmatpush1.bf16.msra.mxu0 %v7108_v24  ;;  %1189 = vmatpush1.bf16.msra.mxu1 %v7115_v25 }
 0x13d   :  { %1149 = vmatprep.subr.bf16.mxu0 %v7130_v28  ;;  %1190 = vmatprep.subr.bf16.mxu1 %v7135_v29 }
 0x140   :  { %1150 = vmatpush1.bf16.msra.mxu0 %v7142_v31  ;;  %1191 = vmatpush1.bf16.msra.mxu1 %v7147_v32 }
 0x141   :  { %1151 = vmatprep.subr.bf16.mxu0 %v7154_v33  ;;  %1192 = vmatprep.subr.bf16.mxu1 %v7161_v34 }
 0x144   :  { %1152 = vmatpush1.bf16.msra.mxu0 %v7166_v35  ;;  %1193 = vmatpush1.bf16.msra.mxu1 %v7171_v36 }
 0x145   :  { %1153 = vmatprep.subr.bf16.mxu0 %v7186_v39  ;;  %1194 = vmatprep.subr.bf16.mxu1 %v7193_v40 }
 0x148   :  { %1154 = vmatpush1.bf16.msra.mxu0 %v7200_v41  ;;  %1195 = vmatpush1.bf16.msra.mxu1 %v7205_v42 }
 0x149   :  { %1155 = vmatprep.subr.bf16.mxu0 %v7210_v44  ;;  %1196 = vmatprep.subr.bf16.mxu1 %v7215_v45 }
 0x14c   :  { %1156 = vmatpush1.bf16.msra.mxu0 %v7224_v46  ;;  %1197 = vmatpush1.bf16.msra.mxu1 %v7229_v47 }
 0x14d   :  { %1157 = vmatprep.subr.bf16.mxu0 %v7242_v50  ;;  %1198 = vmatprep.subr.bf16.mxu1 %v7247_v51 }
 0x150   :  { %1158 = vmatpush1.bf16.msra.mxu0 %v7258_v52  ;;  %1199 = vmatpush1.bf16.msra.mxu1 %v7263_v53 }
 0x151   :  { %1159 = vmatprep.subr.bf16.mxu0 %v7268_v55  ;;  %1200 = vmatprep.subr.bf16.mxu1 %v7273_v56 }
 0x154   :  { %1160 = vmatpush1.bf16.msra.mxu0 %v7282_v57  ;;  %1201 = vmatpush1.bf16.msra.mxu1 %v7287_v58 }
 0x155   :  { %1451 = vmatprep.subr.bf16.mxu0 %v7076_v13  ;;  %1492 = vmatprep.subr.bf16.mxu1 %v7081_v18 }
 0x20a   :  { %v873_v4 = vpop.f32.mrb[20].mxu0  ;;  %v914_v38 = vpop.f32.mrb[20].mxu1 }
 0x20b   :  { %v874_v43 = vadd.f32 %v873_v4, %v7362_v14  ;;  %v915_v62 = vadd.f32 %v914_v38, %v7365_v5  ;;  %v875_v59 = vpop.f32.mrb[21].mxu0  ;;  %v916_v15 = vpop.f32.mrb[21].mxu1  ;;  %v7527_v38 = vld [vmem:[%s9053_s1 + $0x4] ss:$20 sps:$4 sm:$0xff]  }
 0x20c   :  { %v876_v16 = vadd.f32 %v875_v59, %v7367_v17  ;;  %v917_v61 = vadd.f32 %v916_v15, %v7369_v19  ;;  %v877_v2 = vpop.f32.mrb[22].mxu0  ;;  %v918_v1 = vpop.f32.mrb[22].mxu1  ;;  %v7542_v59 = vld [vmem:[%s9053_s1 + $0x8] ss:$20 sps:$4 sm:$0xff]   ;;  %v7551_v15 = vld [vmem:[%s9053_s1 + $0x2c] ss:$20 sps:$4 sm:$0xff]  }
 0x20d   :  { %v5403_v3 = vmul.f32 -1.442695, %v915_v62  ;;  %v878_v6 = vpop.f32.mrb[23].mxu0  ;;  %v919_v7 = vpop.f32.mrb[23].mxu1  ;;  %v7537_v62 = vld [vmem:[%s9053_s1] ss:$20 sps:$4 sm:$0xff]  }
 0x20e   :  { %v5402_v13 = vmul.f32 -1.442695, %v876_v16  ;;  %v5404_v18 = vmul.f32 -1.442695, %v917_v61  ;;  %v7556_v16 = vld [vmem:[%s9053_s1 + $0x34] ss:$20 sps:$4 sm:$0xff]  }
 0x20f   :  { %6771 = vpow2.f32 %v5403_v3  ;;  %v7561_v61 = vld [vmem:[%s9053_s1 + $0x28] ss:$20 sps:$4 sm:$0xff]   ;;  %v7566_v2 = vld [vmem:[%s9053_s1 + $0x30] ss:$20 sps:$4 sm:$0xff]   ;;  %v7590_v7 = vld [vmem:[%s9053_s1 + $0x58] ss:$20 sps:$4 sm:$0xff]  }
 0x210   :  { %6773 = vpow2.f32 %v5402_v13  ;;  %v7575_v1 = vld [vmem:[%s9053_s1 + $0x54] ss:$20 sps:$4 sm:$0xff]   ;;  %v7580_v3 = vld [vmem:[%s9053_s1 + $0x5c] ss:$20 sps:$4 sm:$0xff]  }
 0x211   :  { %6775 = vpow2.f32 %v5404_v18  ;;  %v7585_v6 = vld [vmem:[%s9053_s1 + $0x50] ss:$20 sps:$4 sm:$0xff]  }
 0x212   :  { %6777 = vtanh.f32 %v874_v43  ;;  %v7532_v43 = vld [vmem:[%s9053_s1 + $0xc] ss:$20 sps:$4 sm:$0xff]   ;;  %v7599_v13 = vld [vmem:[%s9053_s1 + $0x7c] ss:$20 sps:$4 sm:$0xff]   ;;  %v7604_v18 = vld [vmem:[%s9053_s1 + $0x84] ss:$20 sps:$4 sm:$0xff]  }
 0x219   :  { %v6772_v8 = vpop.eup %6771 }
 0x21a   :  { %v6774_v9 = vpop.eup %6773  ;;  %v931_v14 = vadd.f32 1.0, %v6772_v8  ;;  %v7609_v8 = vld [vmem:[%s9053_s1 + $0x78] ss:$20 sps:$4 sm:$0xff]  }
 0x21b   :  { %v925_v5 = vadd.f32 1.0, %v6774_v9  ;;  %v6776_v17 = vpop.eup %6775  ;;  %v7614_v9 = vld [vmem:[%s9053_s1 + $0x80] ss:$20 sps:$4 sm:$0xff]  }
 0x21c   :  { %6779 = vrcp.f32 %v931_v14  ;;  %v6778_v10 = vpop.eup %6777  ;;  %v937_v54 = vadd.f32 1.0, %v6776_v17  ;;  %v7623_v14 = vld [vmem:[%s9053_s1 + $0xa4] ss:$20 sps:$4 sm:$0xff]   ;;  %v7633_v17 = vld [vmem:[%s9053_s1 + $0xa0] ss:$20 sps:$4 sm:$0xff]  }
 0x21d   :  { %6781 = vrcp.f32 %v925_v5  ;;  %v7628_v5 = vld [vmem:[%s9053_s1 + $0xac] ss:$20 sps:$4 sm:$0xff]  }
 0x21e   :  { %6783 = vrcp.f32 %v937_v54  ;;  %v7662_v54 = vld [vmem:[%s9053_s1 + $0xd4] ss:$20 sps:$4 sm:$0xff]  }
 0x226   :  { %v6780_v19 = vpop.eup %6779 }
 0x227   :  { %v6782_v49 = vpop.eup %6781  ;;  %v940_v12 = vmul.f32 %v6780_v19, %v7428_v26  ;;  %v7645_v19 = vld [vmem:[%s9053_s1 + $0xcc] ss:$20 sps:$4 sm:$0xff]  }
 0x228   :  { %v941_v27 = vmul.f32 %v6782_v49, %v6778_v10  ;;  %v6784_v11 = vpop.eup %6783  ;;  %v7638_v10 = vld [vmem:[%s9053_s1 + $0xa8] ss:$20 sps:$4 sm:$0xff]  }
 0x229   :  { %v7652_v49 = vld [vmem:[%s9053_s1 + $0xc8] ss:$20 sps:$4 sm:$0xff]  }
 0x22a   :  { %v7473_v48 = vadd.f32 %v941_v27, %v940_v12  ;;  %v7657_v12 = vld [vmem:[%s9053_s1 + $0xd0] ss:$20 sps:$4 sm:$0xff]   ;;  %v7668_v27 = vld [vmem:[%s9053_s1 + $0xf4] ss:$20 sps:$4 sm:$0xff]  }
 0x22c   :  { %6785 = vtanh.f32 %v7473_v48 }
 0x236   :  { %v6786_v63 = vpop.eup %6785 }
 0x237   :  { %v944_v60 = vmul.f32 %v6786_v63, %v6784_v11  ;;  %v7681_v11 = vld [vmem:[%s9053_s1 + $0xf0] ss:$20 sps:$4 sm:$0xff]   ;;  %v7686_v63 = vld [vmem:[%s9053_s1 + $0xf8] ss:$20 sps:$4 sm:$0xff]  }
 0x239   :  { %5405 = vst [vmem:[%s9056_s13 + $0x8] sm:$0xff] %v944_v60  ;;  %v979_v4 = vpack.c.bf16 %v944_v60, %v944_v60  ;;  %v7693_v60 = vld [vmem:[%s9053_s1 + $0x11c] ss:$20 sps:$4 sm:$0xff]  }
 0x23b   :  { %1178 = vmatmul.mubr.bf16.vlgmr.msra.gmra.mrb[24].mxu0 %v979_v4  ;;  %1219 = vmatmul.mubr.bf16.vlgmr.msra.gmra.mrb[24].mxu1 %v979_v4  ;;  %v7698_v4 = vld [vmem:[%s9053_s1 + $0x124] ss:$20 sps:$4 sm:$0xff]  }
 0x23c   :  { %1452 = vmatpush1.bf16.msra.mxu0 %v7086_v20  ;;  %1493 = vmatpush1.bf16.msra.mxu1 %v7091_v21 }
 0x23d   :  { %1453 = vmatprep.subr.bf16.mxu0 %v7098_v22  ;;  %1494 = vmatprep.subr.bf16.mxu1 %v7103_v23 }
 0x23e   :  { %1483 = vmatprep.mubr.bf16.mxu0 %v9134_v0  ;;  %1524 = vmatprep.mubr.bf16.mxu1 %v9134_v0 }
 0x240   :  { %1454 = vmatpush1.bf16.msra.mxu0 %v7108_v24  ;;  %1495 = vmatpush1.bf16.msra.mxu1 %v7115_v25 }
 0x241   :  { %1455 = vmatprep.subr.bf16.mxu0 %v7130_v28  ;;  %1496 = vmatprep.subr.bf16.mxu1 %v7135_v29  ;;  %v9135_v28 = vld [vmem:[#allocation7_spill] sm:$0xff] }
 0x244   :  { %1456 = vmatpush1.bf16.msra.mxu0 %v7142_v31  ;;  %1497 = vmatpush1.bf16.msra.mxu1 %v7147_v32  ;;  %v9136_v31 = vld [vmem:[#allocation8_spill] sm:$0xff] }
 0x245   :  { %1457 = vmatprep.subr.bf16.mxu0 %v7154_v33  ;;  %1498 = vmatprep.subr.bf16.mxu1 %v7161_v34 }
 0x248   :  { %1458 = vmatpush1.bf16.msra.mxu0 %v7166_v35  ;;  %1499 = vmatpush1.bf16.msra.mxu1 %v7171_v36 }
 0x249   :  { %1459 = vmatprep.subr.bf16.mxu0 %v7186_v39  ;;  %1500 = vmatprep.subr.bf16.mxu1 %v7193_v40 }
 0x24c   :  { %1460 = vmatpush1.bf16.msra.mxu0 %v7200_v41  ;;  %1501 = vmatpush1.bf16.msra.mxu1 %v7205_v42 }
 0x24d   :  { %1461 = vmatprep.subr.bf16.mxu0 %v7210_v44  ;;  %1502 = vmatprep.subr.bf16.mxu1 %v7215_v45 }
 0x250   :  { %1462 = vmatpush1.bf16.msra.mxu0 %v7224_v46  ;;  %1503 = vmatpush1.bf16.msra.mxu1 %v7229_v47 }
 0x251   :  { %1463 = vmatprep.subr.bf16.mxu0 %v7242_v50  ;;  %1504 = vmatprep.subr.bf16.mxu1 %v7247_v51 }
 0x254   :  { %1464 = vmatpush1.bf16.msra.mxu0 %v7258_v52  ;;  %1505 = vmatpush1.bf16.msra.mxu1 %v7263_v53 }
 0x255   :  { %1465 = vmatprep.subr.bf16.mxu0 %v7268_v55  ;;  %1506 = vmatprep.subr.bf16.mxu1 %v7273_v56 }
 0x258   :  { %1466 = vmatpush1.bf16.msra.mxu0 %v7282_v57  ;;  %1507 = vmatpush1.bf16.msra.mxu1 %v7287_v58 }
 0x259   :  { %1757 = vmatprep.subr.bf16.mxu0 %v7527_v38  ;;  %1798 = vmatprep.subr.bf16.mxu1 %v7532_v43 }
 0x30e   :  { %v1179_v20 = vpop.f32.mrb[24].mxu0  ;;  %v1220_v21 = vpop.f32.mrb[24].mxu1 }
 0x30f   :  { %v1180_v22 = vadd.f32 %v1179_v20, %v7371_v30  ;;  %v1221_v23 = vadd.f32 %v1220_v21, %v7374_v37  ;;  %v1181_v24 = vpop.f32.mrb[25].mxu0  ;;  %v1222_v25 = vpop.f32.mrb[25].mxu1  ;;  %v7705_v20 = vld [vmem:[%s9053_s1 + $0x118] ss:$20 sps:$4 sm:$0xff]   ;;  %v7710_v21 = vld [vmem:[%s9053_s1 + $0x120] ss:$20 sps:$4 sm:$0xff]  }
 0x310   :  { %v1182_v29 = vadd.f32 %v1181_v24, %v9135_v28  ;;  %v1223_v32 = vadd.f32 %v1222_v25, %v9136_v31  ;;  %v1183_v33 = vpop.f32.mrb[26].mxu0  ;;  %v1224_v34 = vpop.f32.mrb[26].mxu1  ;;  %v9137_v24 = vld [vmem:[#allocation9_spill] sm:$0xff]  ;;  %v9138_v28 = vld [vmem:[#allocation10_spill] sm:$0xff] }
 0x311   :  { %v5439_v35 = vmul.f32 -1.442695, %v1221_v23  ;;  %v1184_v36 = vpop.f32.mrb[27].mxu0  ;;  %v1225_v39 = vpop.f32.mrb[27].mxu1  ;;  %v9139_v33 = vld [vmem:[#allocation11_spill] sm:$0xff] }
 0x312   :  { %v5438_v40 = vmul.f32 -1.442695, %v1182_v29  ;;  %v5440_v41 = vmul.f32 -1.442695, %v1223_v32 }
 0x313   :  { %6787 = vpow2.f32 %v5439_v35  ;;  %v9140_v35 = vld [vmem:[#allocation12_spill] sm:$0xff] }
 0x314   :  { %6789 = vpow2.f32 %v5438_v40 }
 0x315   :  { %6791 = vpow2.f32 %v5440_v41 }
 0x316   :  { %6793 = vtanh.f32 %v1180_v22 }
 0x31d   :  { %v6788_v42 = vpop.eup %6787 }
 0x31e   :  { %v6790_v44 = vpop.eup %6789  ;;  %v1237_v45 = vadd.f32 1.0, %v6788_v42 }
 0x31f   :  { %v1231_v46 = vadd.f32 1.0, %v6790_v44  ;;  %v6792_v47 = vpop.eup %6791 }
 0x320   :  { %6795 = vrcp.f32 %v1237_v45  ;;  %v6794_v50 = vpop.eup %6793  ;;  %v1243_v55 = vadd.f32 1.0, %v6792_v47 }
 0x321   :  { %6797 = vrcp.f32 %v1231_v46 }
 0x322   :  { %6799 = vrcp.f32 %v1243_v55 }
 0x32a   :  { %v6796_v51 = vpop.eup %6795 }
 0x32b   :  { %v6798_v52 = vpop.eup %6797  ;;  %v1246_v53 = vmul.f32 %v6796_v51, %v7473_v48  ;;  %v7673_v48 = vld [vmem:[%s9053_s1 + $0xfc] ss:$20 sps:$4 sm:$0xff]  }
 0x32c   :  { %v1247_v56 = vmul.f32 %v6798_v52, %v6794_v50  ;;  %v6800_v58 = vpop.eup %6799 }
 0x32e   :  { %v7516_v57 = vadd.f32 %v1247_v56, %v1246_v53 }
 0x330   :  { %6801 = vtanh.f32 %v7516_v57 }
 0x33a   :  { %v6802_v30 = vpop.eup %6801 }
 0x33b   :  { %v1250_v37 = vmul.f32 %v6802_v30, %v6800_v58 }
 0x33d   :  { %5441 = vst [vmem:[%s9056_s13 + $0x10] sm:$0xff] %v1250_v37  ;;  %v1285_v26 = vpack.c.bf16 %v1250_v37, %v1250_v37 }
 0x33f   :  { %1484 = vmatmul.mubr.bf16.vlgmr.msra.gmra.mrb[28].mxu0 %v1285_v26  ;;  %1525 = vmatmul.mubr.bf16.vlgmr.msra.gmra.mrb[28].mxu1 %v1285_v26 }
 0x340   :  { %1789 = vmatprep.mubr.bf16.mxu0 %v9134_v0  ;;  %1830 = vmatprep.mubr.bf16.mxu1 %v9134_v0 }
 0x341   :  { %1758 = vmatpush1.bf16.msra.mxu0 %v7537_v62  ;;  %1799 = vmatpush1.bf16.msra.mxu1 %v7542_v59 }
 0x342   :  { %1759 = vmatprep.subr.bf16.mxu0 %v7551_v15  ;;  %1800 = vmatprep.subr.bf16.mxu1 %v7556_v16 }
 0x345   :  { %1760 = vmatpush1.bf16.msra.mxu0 %v7561_v61  ;;  %1801 = vmatpush1.bf16.msra.mxu1 %v7566_v2 }
 0x346   :  { %1761 = vmatprep.subr.bf16.mxu0 %v7575_v1  ;;  %1802 = vmatprep.subr.bf16.mxu1 %v7580_v3 }
 0x349   :  { %1762 = vmatpush1.bf16.msra.mxu0 %v7585_v6  ;;  %1803 = vmatpush1.bf16.msra.mxu1 %v7590_v7 }
 0x34a   :  { %1763 = vmatprep.subr.bf16.mxu0 %v7599_v13  ;;  %1804 = vmatprep.subr.bf16.mxu1 %v7604_v18 }
 0x34d   :  { %1764 = vmatpush1.bf16.msra.mxu0 %v7609_v8  ;;  %1805 = vmatpush1.bf16.msra.mxu1 %v7614_v9 }
 0x34e   :  { %1765 = vmatprep.subr.bf16.mxu0 %v7623_v14  ;;  %1806 = vmatprep.subr.bf16.mxu1 %v7628_v5 }
 0x351   :  { %1766 = vmatpush1.bf16.msra.mxu0 %v7633_v17  ;;  %1807 = vmatpush1.bf16.msra.mxu1 %v7638_v10 }
 0x352   :  { %1767 = vmatprep.subr.bf16.mxu0 %v7645_v19  ;;  %1808 = vmatprep.subr.bf16.mxu1 %v7662_v54 }
 0x355   :  { %1768 = vmatpush1.bf16.msra.mxu0 %v7652_v49  ;;  %1809 = vmatpush1.bf16.msra.mxu1 %v7657_v12 }
 0x356   :  { %1769 = vmatprep.subr.bf16.mxu0 %v7668_v27  ;;  %1810 = vmatprep.subr.bf16.mxu1 %v7673_v48 }
 0x359   :  { %1770 = vmatpush1.bf16.msra.mxu0 %v7681_v11  ;;  %1811 = vmatpush1.bf16.msra.mxu1 %v7686_v63 }
 0x35a   :  { %1771 = vmatprep.subr.bf16.mxu0 %v7693_v60  ;;  %1812 = vmatprep.subr.bf16.mxu1 %v7698_v4 }
 0x35d   :  { %1772 = vmatpush1.bf16.msra.mxu0 %v7705_v20  ;;  %1813 = vmatpush1.bf16.msra.mxu1 %v7710_v21 }
 0x35e   :  { %2063 = vmatprep.subr.bf16.mxu0 %v7527_v38  ;;  %2104 = vmatprep.subr.bf16.mxu1 %v7532_v43 }
 0x412   :  { %v1485_v22 = vpop.f32.mrb[28].mxu0  ;;  %v1526_v23 = vpop.f32.mrb[28].mxu1 }
 0x413   :  { %v1486_v25 = vadd.f32 %v1485_v22, %v9137_v24  ;;  %v1527_v29 = vadd.f32 %v1526_v23, %v9138_v28  ;;  %v1487_v31 = vpop.f32.mrb[29].mxu0  ;;  %v1528_v32 = vpop.f32.mrb[29].mxu1 }
 0x414   :  { %v1488_v34 = vadd.f32 %v1487_v31, %v9139_v33  ;;  %v1529_v36 = vadd.f32 %v1528_v32, %v9140_v35  ;;  %v1489_v39 = vpop.f32.mrb[30].mxu0  ;;  %v1530_v40 = vpop.f32.mrb[30].mxu1  ;;  %v9141_v31 = vld [vmem:[#allocation13_spill] sm:$0xff]  ;;  %v9142_v33 = vld [vmem:[#allocation14_spill] sm:$0xff] }
 0x415   :  { %v5475_v41 = vmul.f32 -1.442695, %v1527_v29  ;;  %v1490_v42 = vpop.f32.mrb[31].mxu0  ;;  %v1531_v44 = vpop.f32.mrb[31].mxu1  ;;  %v9143_v39 = vld [vmem:[#allocation15_spill] sm:$0xff] }
 0x416   :  { %v5474_v45 = vmul.f32 -1.442695, %v1488_v34  ;;  %v5476_v46 = vmul.f32 -1.442695, %v1529_v36 }
 0x417   :  { %6803 = vpow2.f32 %v5475_v41  ;;  %v9144_v41 = vld [vmem:[#allocation16_spill] sm:$0xff] }
 0x418   :  { %6805 = vpow2.f32 %v5474_v45 }
 0x419   :  { %6807 = vpow2.f32 %v5476_v46 }
 0x41a   :  { %6809 = vtanh.f32 %v1486_v25 }
 0x421   :  { %v6804_v47 = vpop.eup %6803 }
 0x422   :  { %v6806_v50 = vpop.eup %6805  ;;  %v1543_v51 = vadd.f32 1.0, %v6804_v47 }
 0x423   :  { %v1537_v52 = vadd.f32 1.0, %v6806_v50  ;;  %v6808_v53 = vpop.eup %6807 }
 0x424   :  { %6811 = vrcp.f32 %v1543_v51  ;;  %v6810_v55 = vpop.eup %6809  ;;  %v1549_v37 = vadd.f32 1.0, %v6808_v53 }
 0x425   :  { %6813 = vrcp.f32 %v1537_v52 }
 0x426   :  { %6815 = vrcp.f32 %v1549_v37 }
 0x42e   :  { %v6812_v56 = vpop.eup %6811 }
 0x42f   :  { %v6814_v58 = vpop.eup %6813  ;;  %v1552_v30 = vmul.f32 %v6812_v56, %v7516_v57 }
 0x430   :  { %v1553_v26 = vmul.f32 %v6814_v58, %v6810_v55  ;;  %v6816_v23 = vpop.eup %6815 }
 0x432   :  { %v7723_v22 = vadd.f32 %v1553_v26, %v1552_v30 }
 0x434   :  { %6817 = vtanh.f32 %v7723_v22 }
 0x43e   :  { %v6818_v24 = vpop.eup %6817 }
 0x43f   :  { %v7726_v28 = vmul.f32 %v6818_v24, %v6816_v23 }
 0x441   :  { %5477 = vst [vmem:[%s9056_s13 + $0x18] sm:$0xff] %v7726_v28  ;;  %v1591_v25 = vpack.c.bf16 %v7726_v28, %v7726_v28 }
 0x443   :  { %1790 = vmatmul.mubr.bf16.vlgmr.msra.gmra.mrb[32].mxu0 %v1591_v25  ;;  %1831 = vmatmul.mubr.bf16.vlgmr.msra.gmra.mrb[32].mxu1 %v1591_v25 }
 0x444   :  { %2064 = vmatpush1.bf16.msra.mxu0 %v7537_v62  ;;  %2105 = vmatpush1.bf16.msra.mxu1 %v7542_v59 }
 0x445   :  { %2065 = vmatprep.subr.bf16.mxu0 %v7551_v15  ;;  %2106 = vmatprep.subr.bf16.mxu1 %v7556_v16 }
 0x446   :  { %2095 = vmatprep.mubr.bf16.mxu0 %v9134_v0  ;;  %2136 = vmatprep.mubr.bf16.mxu1 %v9134_v0 }
 0x448   :  { %2066 = vmatpush1.bf16.msra.mxu0 %v7561_v61  ;;  %2107 = vmatpush1.bf16.msra.mxu1 %v7566_v2 }
 0x449   :  { %2067 = vmatprep.subr.bf16.mxu0 %v7575_v1  ;;  %2108 = vmatprep.subr.bf16.mxu1 %v7580_v3 }
 0x44c   :  { %2068 = vmatpush1.bf16.msra.mxu0 %v7585_v6  ;;  %2109 = vmatpush1.bf16.msra.mxu1 %v7590_v7 }
 0x44d   :  { %2069 = vmatprep.subr.bf16.mxu0 %v7599_v13  ;;  %2110 = vmatprep.subr.bf16.mxu1 %v7604_v18 }
 0x450   :  { %2070 = vmatpush1.bf16.msra.mxu0 %v7609_v8  ;;  %2111 = vmatpush1.bf16.msra.mxu1 %v7614_v9 }
 0x451   :  { %2071 = vmatprep.subr.bf16.mxu0 %v7623_v14  ;;  %2112 = vmatprep.subr.bf16.mxu1 %v7628_v5 }
 0x454   :  { %2072 = vmatpush1.bf16.msra.mxu0 %v7633_v17  ;;  %2113 = vmatpush1.bf16.msra.mxu1 %v7638_v10 }
 0x455   :  { %2073 = vmatprep.subr.bf16.mxu0 %v7645_v19  ;;  %2114 = vmatprep.subr.bf16.mxu1 %v7662_v54 }
 0x458   :  { %2074 = vmatpush1.bf16.msra.mxu0 %v7652_v49  ;;  %2115 = vmatpush1.bf16.msra.mxu1 %v7657_v12 }
 0x459   :  { %2075 = vmatprep.subr.bf16.mxu0 %v7668_v27  ;;  %2116 = vmatprep.subr.bf16.mxu1 %v7673_v48 }
 0x45c   :  { %2076 = vmatpush1.bf16.msra.mxu0 %v7681_v11  ;;  %2117 = vmatpush1.bf16.msra.mxu1 %v7686_v63 }
 0x45d   :  { %2077 = vmatprep.subr.bf16.mxu0 %v7693_v60  ;;  %2118 = vmatprep.subr.bf16.mxu1 %v7698_v4 }
 0x460   :  { %2078 = vmatpush1.bf16.msra.mxu0 %v7705_v20  ;;  %2119 = vmatpush1.bf16.msra.mxu1 %v7710_v21 }
 0x461   :  { %2369 = vmatprep.subr.bf16.mxu0 %v7527_v38  ;;  %2410 = vmatprep.subr.bf16.mxu1 %v7532_v43 }
 0x516   :  { %v1791_v57 = vpop.f32.mrb[32].mxu0  ;;  %v1832_v29 = vpop.f32.mrb[32].mxu1 }
 0x517   :  { %v1792_v32 = vadd.f32 %v1791_v57, %v9141_v31  ;;  %v1833_v34 = vadd.f32 %v1832_v29, %v9142_v33  ;;  %v1793_v35 = vpop.f32.mrb[33].mxu0  ;;  %v1834_v36 = vpop.f32.mrb[33].mxu1 }
 0x518   :  { %v1794_v40 = vadd.f32 %v1793_v35, %v9143_v39  ;;  %v1835_v42 = vadd.f32 %v1834_v36, %v9144_v41  ;;  %v1795_v44 = vpop.f32.mrb[34].mxu0  ;;  %v1836_v45 = vpop.f32.mrb[34].mxu1  ;;  %v9145_v36 = vld [vmem:[#allocation17_spill] sm:$0xff] }
 0x519   :  { %v5511_v46 = vmul.f32 -1.442695, %v1833_v34  ;;  %v1796_v47 = vpop.f32.mrb[35].mxu0  ;;  %v1837_v50 = vpop.f32.mrb[35].mxu1  ;;  %v9147_v45 = vld [vmem:[#allocation19_spill] sm:$0xff] }
 0x51a   :  { %v5510_v51 = vmul.f32 -1.442695, %v1794_v40  ;;  %v5512_v52 = vmul.f32 -1.442695, %v1835_v42  ;;  %v9146_v40 = vld [vmem:[#allocation18_spill] sm:$0xff]  ;;  %v9148_v47 = vld [vmem:[#allocation20_spill] sm:$0xff] }
 0x51b   :  { %6819 = vpow2.f32 %v5511_v46 }
 0x51c   :  { %6821 = vpow2.f32 %v5510_v51 }
 0x51d   :  { %6823 = vpow2.f32 %v5512_v52 }
 0x51e   :  { %6825 = vtanh.f32 %v1792_v32 }
 0x525   :  { %v6820_v53 = vpop.eup %6819 }
 0x526   :  { %v6822_v55 = vpop.eup %6821  ;;  %v1849_v56 = vadd.f32 1.0, %v6820_v53 }
 0x527   :  { %v1843_v58 = vadd.f32 1.0, %v6822_v55  ;;  %v6824_v30 = vpop.eup %6823 }
 0x528   :  { %6827 = vrcp.f32 %v1849_v56  ;;  %v6826_v37 = vpop.eup %6825  ;;  %v1855_v25 = vadd.f32 1.0, %v6824_v30 }
 0x529   :  { %6829 = vrcp.f32 %v1843_v58 }
 0x52a   :  { %6831 = vrcp.f32 %v1855_v25 }
 0x532   :  { %v6828_v26 = vpop.eup %6827 }
 0x533   :  { %v6830_v23 = vpop.eup %6829  ;;  %v1858_v24 = vmul.f32 %v6828_v26, %v7723_v22 }
 0x534   :  { %v1859_v57 = vmul.f32 %v6830_v23, %v6826_v37  ;;  %v6832_v31 = vpop.eup %6831 }
 0x536   :  { %v7773_v29 = vadd.f32 %v1859_v57, %v1858_v24 }
 0x538   :  { %6833 = vtanh.f32 %v7773_v29 }
 0x542   :  { %v6834_v33 = vpop.eup %6833 }
 0x543   :  { %v7776_v34 = vmul.f32 %v6834_v33, %v6832_v31 }
 0x545   :  { %5513 = vst [vmem:[%s9056_s13 + $0x20] sm:$0xff] %v7776_v34  ;;  %v1897_v32 = vpack.c.bf16 %v7776_v34, %v7776_v34 }
 0x547   :  { %2096 = vmatmul.mubr.bf16.vlgmr.msra.gmra.mrb[36].mxu0 %v1897_v32  ;;  %2137 = vmatmul.mubr.bf16.vlgmr.msra.gmra.mrb[36].mxu1 %v1897_v32 }
 0x548   :  { %2370 = vmatpush1.bf16.msra.mxu0 %v7537_v62  ;;  %2411 = vmatpush1.bf16.msra.mxu1 %v7542_v59 }
 0x549   :  { %2371 = vmatprep.subr.bf16.mxu0 %v7551_v15  ;;  %2412 = vmatprep.subr.bf16.mxu1 %v7556_v16 }
 0x54a   :  { %2401 = vmatprep.mubr.bf16.mxu0 %v9134_v0  ;;  %2442 = vmatprep.mubr.bf16.mxu1 %v9134_v0 }
 0x54c   :  { %2372 = vmatpush1.bf16.msra.mxu0 %v7561_v61  ;;  %2413 = vmatpush1.bf16.msra.mxu1 %v7566_v2 }
 0x54d   :  { %2373 = vmatprep.subr.bf16.mxu0 %v7575_v1  ;;  %2414 = vmatprep.subr.bf16.mxu1 %v7580_v3 }
 0x550   :  { %2374 = vmatpush1.bf16.msra.mxu0 %v7585_v6  ;;  %2415 = vmatpush1.bf16.msra.mxu1 %v7590_v7 }
 0x551   :  { %2375 = vmatprep.subr.bf16.mxu0 %v7599_v13  ;;  %2416 = vmatprep.subr.bf16.mxu1 %v7604_v18 }
 0x554   :  { %2376 = vmatpush1.bf16.msra.mxu0 %v7609_v8  ;;  %2417 = vmatpush1.bf16.msra.mxu1 %v7614_v9 }
 0x555   :  { %2377 = vmatprep.subr.bf16.mxu0 %v7623_v14  ;;  %2418 = vmatprep.subr.bf16.mxu1 %v7628_v5 }
 0x558   :  { %2378 = vmatpush1.bf16.msra.mxu0 %v7633_v17  ;;  %2419 = vmatpush1.bf16.msra.mxu1 %v7638_v10 }
 0x559   :  { %2379 = vmatprep.subr.bf16.mxu0 %v7645_v19  ;;  %2420 = vmatprep.subr.bf16.mxu1 %v7662_v54 }
 0x55c   :  { %2380 = vmatpush1.bf16.msra.mxu0 %v7652_v49  ;;  %2421 = vmatpush1.bf16.msra.mxu1 %v7657_v12 }
 0x55d   :  { %2381 = vmatprep.subr.bf16.mxu0 %v7668_v27  ;;  %2422 = vmatprep.subr.bf16.mxu1 %v7673_v48 }
 0x560   :  { %2382 = vmatpush1.bf16.msra.mxu0 %v7681_v11  ;;  %2423 = vmatpush1.bf16.msra.mxu1 %v7686_v63 }
 0x561   :  { %2383 = vmatprep.subr.bf16.mxu0 %v7693_v60  ;;  %2424 = vmatprep.subr.bf16.mxu1 %v7698_v4 }
 0x564   :  { %2384 = vmatpush1.bf16.msra.mxu0 %v7705_v20  ;;  %2425 = vmatpush1.bf16.msra.mxu1 %v7710_v21 }
 0x565   :  { %2675 = vmatprep.subr.bf16.mxu0 %v7527_v38  ;;  %2716 = vmatprep.subr.bf16.mxu1 %v7532_v43 }
 0x61a   :  { %v2097_v22 = vpop.f32.mrb[36].mxu0  ;;  %v2138_v35 = vpop.f32.mrb[36].mxu1 }
 0x61b   :  { %v2098_v39 = vadd.f32 %v2097_v22, %v9145_v36  ;;  %v2139_v41 = vadd.f32 %v2138_v35, %v9146_v40  ;;  %v2099_v42 = vpop.f32.mrb[37].mxu0  ;;  %v2140_v44 = vpop.f32.mrb[37].mxu1 }
 0x61c   :  { %v2100_v46 = vadd.f32 %v2099_v42, %v9147_v45  ;;  %v2141_v50 = vadd.f32 %v2140_v44, %v9148_v47  ;;  %v2101_v51 = vpop.f32.mrb[38].mxu0  ;;  %v2142_v52 = vpop.f32.mrb[38].mxu1 }
 0x61d   :  { %v5547_v53 = vmul.f32 -1.442695, %v2139_v41  ;;  %v2102_v55 = vpop.f32.mrb[39].mxu0  ;;  %v2143_v56 = vpop.f32.mrb[39].mxu1  ;;  %v6614_v51 = vld [vmem:[%s9057_s4 + $0x8] sm:$0xff]  }
 0x61e   :  { %v5546_v38 = vmul.f32 -1.442695, %v2100_v46  ;;  %v5548_v43 = vmul.f32 -1.442695, %v2141_v50  ;;  %v7882_v46 = vld [vmem:[%s9056_s13 + $0x8] sm:$0xff]  ;;  %v7893_v50 = vld [vmem:[%s9056_s13] sm:$0xff] }
 0x61f   :  { %6835 = vpow2.f32 %v5547_v53  ;;  %v2807_v52 = vpack.c.bf16 %v7882_v46, %v7893_v50  ;;  %v6615_v53 = vld [vmem:[%s9057_s4 + $0x10] sm:$0xff]   ;;  %v6616_v55 = vld [vmem:[%s9057_s4 + $0x18] sm:$0xff]   ;;  %v6617_v56 = vld [vmem:[%s9057_s4 + $0x20] sm:$0xff]  }
 0x620   :  { %6837 = vpow2.f32 %v5546_v38  ;;  %v6618_v38 = vld [vmem:[%s9057_s4 + $0x28] sm:$0xff]  }
 0x621   :  { %6839 = vpow2.f32 %v5548_v43  ;;  %v6619_v43 = vld [vmem:[%s9057_s4 + $0x30] sm:$0xff]  }
 0x622   :  { %6841 = vtanh.f32 %v2098_v39 }
 0x629   :  { %v6836_v58 = vpop.eup %6835 }
 0x62a   :  { %v6838_v30 = vpop.eup %6837  ;;  %v2155_v37 = vadd.f32 1.0, %v6836_v58  ;;  %v6620_v58 = vld [vmem:[%s9057_s4 + $0x38] sm:$0xff]  }
 0x62b   :  { %v2149_v26 = vadd.f32 1.0, %v6838_v30  ;;  %v6840_v23 = vpop.eup %6839  ;;  %v7921_v30 = vld [vmem:[%s9056_s13 + $0x10] sm:$0xff] }
 0x62c   :  { %6843 = vrcp.f32 %v2155_v37  ;;  %v6842_v24 = vpop.eup %6841  ;;  %v2161_v33 = vadd.f32 1.0, %v6840_v23  ;;  %v2808_v37 = vpack.c.bf16 %v7726_v28, %v7921_v30 }
 0x62d   :  { %6845 = vrcp.f32 %v2149_v26 }
 0x62e   :  { %6847 = vrcp.f32 %v2161_v33 }
 0x636   :  { %v6844_v25 = vpop.eup %6843 }
 0x637   :  { %v6846_v57 = vpop.eup %6845  ;;  %v2164_v31 = vmul.f32 %v6844_v25, %v7773_v29  ;;  %v9153_v25 = vld [vmem:[#allocation25_spill] sm:$0xff] }
 0x638   :  { %v2165_v32 = vmul.f32 %v6846_v57, %v6842_v24  ;;  %v6848_v35 = vpop.eup %6847 }
 0x63a   :  { %v7823_v22 = vadd.f32 %v2165_v32, %v2164_v31  ;;  %v9154_v31 = vld [vmem:[#allocation26_spill] sm:$0xff] }
 0x63c   :  { %6849 = vtanh.f32 %v7823_v22 }
 0x646   :  { %v6850_v36 = vpop.eup %6849 }
 0x647   :  { %v7826_v40 = vmul.f32 %v6850_v36, %v6848_v35  ;;  %v9155_v35 = vld [vmem:[#allocation27_spill] sm:$0xff] }
 0x649   :  { %5549 = vst [vmem:[%s9056_s13 + $0x28] sm:$0xff] %v7826_v40  ;;  %v2203_v39 = vpack.c.bf16 %v7826_v40, %v7826_v40  ;;  %v2809_v26 = vpack.c.bf16 %v7826_v40, %v7776_v34 }
 0x64b   :  { %2402 = vmatmul.mubr.bf16.vlgmr.msra.gmra.mrb[40].mxu0 %v2203_v39  ;;  %2443 = vmatmul.mubr.bf16.vlgmr.msra.gmra.mrb[40].mxu1 %v2203_v39  ;;  %v9156_v39 = vld [vmem:[#allocation28_spill] sm:$0xff] }
 0x64c   :  { %2676 = vmatpush1.bf16.msra.mxu0 %v7537_v62  ;;  %2717 = vmatpush1.bf16.msra.mxu1 %v7542_v59  ;;  %v6613_v62 = vld [vmem:[%s9057_s4] sm:$0xff]  }
 0x64d   :  { %2677 = vmatprep.subr.bf16.mxu0 %v7551_v15  ;;  %2718 = vmatprep.subr.bf16.mxu1 %v7556_v16  ;;  %v9149_v16 = vld [vmem:[#allocation21_spill] sm:$0xff] }
 0x64e   :  { %2707 = vmatprep.mubr.bf16.mxu0 %v9134_v0  ;;  %2748 = vmatprep.mubr.bf16.mxu1 %v9134_v0 }
 0x650   :  { %2678 = vmatpush1.bf16.msra.mxu0 %v7561_v61  ;;  %2719 = vmatpush1.bf16.msra.mxu1 %v7566_v2  ;;  %v9150_v2 = vld [vmem:[#allocation22_spill] sm:$0xff] }
 0x651   :  { %2679 = vmatprep.subr.bf16.mxu0 %v7575_v1  ;;  %2720 = vmatprep.subr.bf16.mxu1 %v7580_v3 }
 0x654   :  { %2680 = vmatpush1.bf16.msra.mxu0 %v7585_v6  ;;  %2721 = vmatpush1.bf16.msra.mxu1 %v7590_v7  ;;  %v9151_v7 = vld [vmem:[#allocation23_spill] sm:$0xff] }
 0x655   :  { %2681 = vmatprep.subr.bf16.mxu0 %v7599_v13  ;;  %2722 = vmatprep.subr.bf16.mxu1 %v7604_v18  ;;  %v9152_v18 = vld [vmem:[#allocation24_spill] sm:$0xff] }
 0x658   :  { %2682 = vmatpush1.bf16.msra.mxu0 %v7609_v8  ;;  %2723 = vmatpush1.bf16.msra.mxu1 %v7614_v9 }
 0x659   :  { %2683 = vmatprep.subr.bf16.mxu0 %v7623_v14  ;;  %2724 = vmatprep.subr.bf16.mxu1 %v7628_v5 }
 0x65c   :  { %2684 = vmatpush1.bf16.msra.mxu0 %v7633_v17  ;;  %2725 = vmatpush1.bf16.msra.mxu1 %v7638_v10 }
 0x65d   :  { %2685 = vmatprep.subr.bf16.mxu0 %v7645_v19  ;;  %2726 = vmatprep.subr.bf16.mxu1 %v7662_v54 }
 0x660   :  { %2686 = vmatpush1.bf16.msra.mxu0 %v7652_v49  ;;  %2727 = vmatpush1.bf16.msra.mxu1 %v7657_v12 }
 0x661   :  { %2687 = vmatprep.subr.bf16.mxu0 %v7668_v27  ;;  %2728 = vmatprep.subr.bf16.mxu1 %v7673_v48 }
 0x664   :  { %2688 = vmatpush1.bf16.msra.mxu0 %v7681_v11  ;;  %2729 = vmatpush1.bf16.msra.mxu1 %v7686_v63 }
 0x665   :  { %2689 = vmatprep.subr.bf16.mxu0 %v7693_v60  ;;  %2730 = vmatprep.subr.bf16.mxu1 %v7698_v4 }
 0x668   :  { %2690 = vmatpush1.bf16.msra.mxu0 %v7705_v20  ;;  %2731 = vmatpush1.bf16.msra.mxu1 %v7710_v21 }
 0x669   :  { %5977 = vmatprep.subr.bf16.mxu0 %v6613_v62 }
 0x71e   :  { %v2403_v59 = vpop.f32.mrb[40].mxu0  ;;  %v2444_v15 = vpop.f32.mrb[40].mxu1 }
 0x71f   :  { %v2404_v61 = vadd.f32 %v2403_v59, %v9149_v16  ;;  %v2445_v1 = vadd.f32 %v2444_v15, %v9150_v2  ;;  %v2405_v3 = vpop.f32.mrb[41].mxu0  ;;  %v2446_v6 = vpop.f32.mrb[41].mxu1 }
 0x720   :  { %v2406_v13 = vadd.f32 %v2405_v3, %v9151_v7  ;;  %v2447_v8 = vadd.f32 %v2446_v6, %v9152_v18  ;;  %v2407_v9 = vpop.f32.mrb[42].mxu0  ;;  %v2448_v14 = vpop.f32.mrb[42].mxu1 }
 0x721   :  { %v5583_v5 = vmul.f32 -1.442695, %v2445_v1  ;;  %v2408_v17 = vpop.f32.mrb[43].mxu0  ;;  %v2449_v10 = vpop.f32.mrb[43].mxu1 }
 0x722   :  { %v5582_v19 = vmul.f32 -1.442695, %v2406_v13  ;;  %v5584_v49 = vmul.f32 -1.442695, %v2447_v8 }
 0x723   :  { %6851 = vpow2.f32 %v5583_v5 }
 0x724   :  { %6853 = vpow2.f32 %v5582_v19  ;;  %v7935_v19 = vld [vmem:[%s9058_s5] ss:$0 sm:$0xff] }
 0x725   :  { %6855 = vpow2.f32 %v5584_v49 }
 0x726   :  { %6857 = vtanh.f32 %v2404_v61 }
 0x72d   :  { %v6852_v12 = vpop.eup %6851 }
 0x72e   :  { %v6854_v54 = vpop.eup %6853  ;;  %v2461_v27 = vadd.f32 1.0, %v6852_v12 }
 0x72f   :  { %v2455_v48 = vadd.f32 1.0, %v6854_v54  ;;  %v6856_v11 = vpop.eup %6855 }
 0x730   :  { %6859 = vrcp.f32 %v2461_v27  ;;  %v6858_v63 = vpop.eup %6857  ;;  %v2467_v21 = vadd.f32 1.0, %v6856_v11 }
 0x731   :  { %6861 = vrcp.f32 %v2455_v48 }
 0x732   :  { %6863 = vrcp.f32 %v2467_v21 }
 0x73a   :  { %v6860_v60 = vpop.eup %6859 }
 0x73b   :  { %v6862_v4 = vpop.eup %6861  ;;  %v2470_v20 = vmul.f32 %v6860_v60, %v7823_v22 }
 0x73c   :  { %v2471_v29 = vmul.f32 %v6862_v4, %v6858_v63  ;;  %v6864_v42 = vpop.eup %6863 }
 0x73e   :  { %v7874_v41 = vadd.f32 %v2471_v29, %v2470_v20 }
 0x740   :  { %6865 = vtanh.f32 %v7874_v41 }
 0x74a   :  { %v6866_v44 = vpop.eup %6865 }
 0x74b   :  { %v7877_v45 = vmul.f32 %v6866_v44, %v6864_v42 }
 0x74d   :  { %5585 = vst [vmem:[%s9056_s13 + $0x30] sm:$0xff] %v7877_v45  ;;  %v2509_v47 = vpack.c.bf16 %v7877_v45, %v7877_v45 }
 0x74f   :  { %2708 = vmatmul.mubr.bf16.vlgmr.msra.gmra.mrb[44].mxu0 %v2509_v47  ;;  %2749 = vmatmul.mubr.bf16.vlgmr.msra.gmra.mrb[44].mxu1 %v2509_v47 }
 0x750   :  { %5978 = vmatpush3.bf16.msra.mxu0 %v6613_v62  ;;  %5993 = vmatprep.mubr.bf16.mxu0 %v2807_v52 }
 0x751   :  { %5979 = vmatprep.subr.bf16.mxu0 %v6614_v51 }
 0x754   :  { %5980 = vmatpush3.bf16.msra.mxu0 %v6614_v51 }
 0x755   :  { %5981 = vmatprep.subr.bf16.mxu0 %v6615_v53 }
 0x758   :  { %5982 = vmatpush3.bf16.msra.mxu0 %v6615_v53 }
 0x759   :  { %5983 = vmatprep.subr.bf16.mxu0 %v6616_v55 }
 0x75c   :  { %5984 = vmatpush3.bf16.msra.mxu0 %v6616_v55 }
 0x75d   :  { %5985 = vmatprep.subr.bf16.mxu0 %v6617_v56 }
 0x760   :  { %5986 = vmatpush3.bf16.msra.mxu0 %v6617_v56 }
 0x761   :  { %5987 = vmatprep.subr.bf16.mxu0 %v6618_v38 }
 0x764   :  { %5988 = vmatpush3.bf16.msra.mxu0 %v6618_v38 }
 0x765   :  { %5989 = vmatprep.subr.bf16.mxu0 %v6619_v43 }
 0x768   :  { %5990 = vmatpush3.bf16.msra.mxu0 %v6619_v43 }
 0x769   :  { %5991 = vmatprep.subr.bf16.mxu0 %v6620_v58 }
 0x76c   :  { %5992 = vmatpush3.bf16.msra.mxu0 %v6620_v58 }
 0x76f   :  { %5994 = vmatmul.mubr.bf16.vlgmr.msra.gmra.mrb[48].mxu0 %v2808_v37 }
 0x770   :  { %5997 = vmatprep.mubr.bf16.mxu0 %v2809_v26 }
 0x822   :  { %v2709_v23 = vpop.f32.mrb[44].mxu0  ;;  %v2750_v24 = vpop.f32.mrb[44].mxu1 }
 0x823   :  { %v2710_v57 = vadd.f32 %v2709_v23, %v9153_v25  ;;  %v2751_v33 = vadd.f32 %v2750_v24, %v9154_v31  ;;  %v2711_v32 = vpop.f32.mrb[45].mxu0  ;;  %v2752_v22 = vpop.f32.mrb[45].mxu1  ;;  %v2979_v25 = vld [vmem:[%s9059_s6] sm:$0xff] }
 0x824   :  { %v2712_v36 = vadd.f32 %v2711_v32, %v9155_v35  ;;  %v2753_v62 = vadd.f32 %v2752_v22, %v9156_v39  ;;  %v2713_v59 = vpop.f32.mrb[46].mxu0  ;;  %v2754_v15 = vpop.f32.mrb[46].mxu1  ;;  %v2982_v32 = vld [vmem:[%s9059_s6 + $0x18] sm:$0xff]  ;;  %v2983_v35 = vld [vmem:[%s9059_s6 + $0x20] sm:$0xff] }
 0x825   :  { %v5619_v28 = vmul.f32 -1.442695, %v2751_v33  ;;  %v2714_v16 = vpop.f32.mrb[47].mxu0  ;;  %v2755_v61 = vpop.f32.mrb[47].mxu1  ;;  %v2981_v33 = vld [vmem:[%s9059_s6 + $0x10] sm:$0xff]  ;;  %v2986_v59 = vld [vmem:[%s9059_s6 + $0x38] sm:$0xff] }
 0x826   :  { %v5618_v2 = vmul.f32 -1.442695, %v2712_v36  ;;  %v5620_v1 = vmul.f32 -1.442695, %v2753_v62  ;;  %v6339_v22 = vpack.c.bf16 %v2982_v32, %v2981_v33  ;;  %v2984_v36 = vld [vmem:[%s9059_s6 + $0x28] sm:$0xff]  ;;  %v2985_v62 = vld [vmem:[%s9059_s6 + $0x30] sm:$0xff] }
 0x827   :  { %6867 = vpow2.f32 %v5619_v28  ;;  %v6343_v39 = vpack.c.bf16 %v2984_v36, %v2983_v35  ;;  %v6347_v15 = vpack.c.bf16 %v2986_v59, %v2985_v62  ;;  %v2987_v28 = vld [vmem:[%s9059_s6 + $0x40] sm:$0xff]  ;;  %v2988_v16 = vld [vmem:[%s9059_s6 + $0x48] sm:$0xff] }
 0x828   :  { %6869 = vpow2.f32 %v5618_v2  ;;  %v6351_v61 = vpack.c.bf16 %v2988_v16, %v2987_v28  ;;  %v2989_v2 = vld [vmem:[%s9059_s6 + $0x50] sm:$0xff]  ;;  %v8106_v16 = vld [vmem:[%s9053_s1 + $0x78] ss:$20 sps:$4 sm:$0xff]  }
 0x829   :  { %6871 = vpow2.f32 %v5620_v1  ;;  %v2990_v1 = vld [vmem:[%s9059_s6 + $0x58] sm:$0xff] }
 0x82a   :  { %6873 = vtanh.f32 %v2710_v57  ;;  %v2980_v57 = vld [vmem:[%s9059_s6 + $0x8] sm:$0xff]  ;;  %v8100_v28 = vld [vmem:[%s9053_s1 + $0x7c] ss:$20 sps:$4 sm:$0xff]  }
 0x82b   :  { %v6335_v31 = vpack.c.bf16 %v2980_v57, %v2979_v25 }
 0x82d   :  { %6336 = vmatprep.subr.bf16.mxu1 %v6335_v31 }
 0x82e   :  { %6338 = vmatpush3.bf16.msra.mxu1 %v6335_v31 }
 0x82f   :  { %6340 = vmatprep.subr.bf16.mxu1 %v6339_v22 }
 0x831   :  { %v6868_v3 = vpop.eup %6867 }
 0x832   :  { %v6870_v6 = vpop.eup %6869  ;;  %v2767_v7 = vadd.f32 1.0, %v6868_v3  ;;  %6342 = vmatpush3.bf16.msra.mxu1 %v6339_v22  ;;  %v6355_v3 = vpack.c.bf16 %v2990_v1, %v2989_v2  ;;  %v8044_v22 = vld [vmem:[%s9053_s1] ss:$20 sps:$4 sm:$0xff]  }
 0x833   :  { %v2761_v13 = vadd.f32 1.0, %v6870_v6  ;;  %v6872_v18 = vpop.eup %6871  ;;  %6344 = vmatprep.subr.bf16.mxu1 %v6343_v39  ;;  %v2991_v6 = vld [vmem:[%s9059_s6 + $0x60] sm:$0xff] }
 0x834   :  { %6875 = vrcp.f32 %v2767_v7  ;;  %v6874_v8 = vpop.eup %6873  ;;  %v2773_v17 = vadd.f32 1.0, %v6872_v18  ;;  %v2992_v7 = vld [vmem:[%s9059_s6 + $0x68] sm:$0xff]  ;;  %v2993_v18 = vld [vmem:[%s9059_s6 + $0x70] sm:$0xff] }
 0x835   :  { %6877 = vrcp.f32 %v2761_v13  ;;  %v6359_v13 = vpack.c.bf16 %v2992_v7, %v2991_v6  ;;  %v8118_v2 = vld [vmem:[%s9053_s1 + $0xa0] ss:$20 sps:$4 sm:$0xff]   ;;  %v6639_v7 = vld [vmem:[%s9053_s1 + $0xf0] ss:$20 sps:$4 sm:$0xff]  }
 0x836   :  { %6879 = vrcp.f32 %v2773_v17  ;;  %6346 = vmatpush3.bf16.msra.mxu1 %v6343_v39  ;;  %v6653_v17 = vld [vmem:[%s9060_s7] sm:$0xff]   ;;  %v6641_v6 = vld [vmem:[%s9053_s1 + $0xf4] ss:$20 sps:$4 sm:$0xff]  }
 0x837   :  { %6348 = vmatprep.subr.bf16.mxu1 %v6347_v15  ;;  %v8052_v39 = vld [vmem:[%s9053_s1 + $0x2c] ss:$20 sps:$4 sm:$0xff]  }
 0x838   :  { %v8125_v1 = vld [vmem:[%s9053_s1 + $0xcc] ss:$20 sps:$4 sm:$0xff]  }
 0x83a   :  { %6350 = vmatpush3.bf16.msra.mxu1 %v6347_v15 }
 0x83b   :  { %6352 = vmatprep.subr.bf16.mxu1 %v6351_v61 }
 0x83e   :  { %v6876_v9 = vpop.eup %6875  ;;  %6354 = vmatpush3.bf16.msra.mxu1 %v6351_v61  ;;  %v8112_v61 = vld [vmem:[%s9053_s1 + $0xa4] ss:$20 sps:$4 sm:$0xff]  }
 0x83f   :  { %v6878_v14 = vpop.eup %6877  ;;  %v2776_v5 = vmul.f32 %v6876_v9, %v7874_v41  ;;  %6356 = vmatprep.subr.bf16.mxu1 %v6355_v3 }
 0x840   :  { %v2777_v10 = vmul.f32 %v6878_v14, %v6874_v8  ;;  %v6880_v20 = vpop.eup %6879  ;;  %v2994_v8 = vld [vmem:[%s9059_s6 + $0x78] sm:$0xff] }
 0x841   :  { %v6363_v9 = vpack.c.bf16 %v2994_v8, %v2993_v18  ;;  %v8017_v14 = vld [vmem:[%s9053_s1 + $0x4] ss:$20 sps:$4 sm:$0xff]  }
 0x842   :  { %v7937_v49 = vadd.f32 %v2777_v10, %v2776_v5  ;;  %v5995_v12 = vpop.f32.mrb[48].mxu0  ;;  %6358 = vmatpush3.bf16.msra.mxu1 %v6355_v3  ;;  %v9080_v5 = vmov 0.0   ;;  %v6654_v10 = vld [vmem:[%s9060_s7 + $0x8] sm:$0xff]   ;;  %v6645_v8 = vld [vmem:[%s9053_s1 + $0x10] ss:$20 sps:$4 sm:$0xff]  }
 0x843   :  { %v2909_v54 = vadd.f32 %v5995_v12, %v7935_v19  ;;  %v2900_v27 = vpop.f32.mrb[49].mxu0  ;;  %6360 = vmatprep.subr.bf16.mxu1 %v6359_v13  ;;  %6045 = vmatprep.subr.bf16.mxu0 %v9080_v5  ;;  %v6655_v12 = vld [vmem:[%s9060_s7 + $0x10] sm:$0xff]   ;;  %v8131_v3 = vld [vmem:[%s9053_s1 + $0xc8] ss:$20 sps:$4 sm:$0xff]   ;;  %v6642_v18 = vld [vmem:[%s9053_s1 + $0x118] ss:$20 sps:$4 sm:$0xff]  }
 0x844   :  { %6881 = vtanh.f32 %v7937_v49  ;;  %v2901_v48 = vadd.f32 %v7935_v19, %v2900_v27  ;;  %v5996_v11 = vpop.f32.mrb[50].mxu0  ;;  %6046 = vmatpush3.bf16.msra.mxu0 %v6653_v17  ;;  %v6646_v17 = vld [vmem:[%s9053_s1 + $0x38] ss:$20 sps:$4 sm:$0xff]  }
 0x845   :  { %6883 = vtanh.f32 %v2909_v54  ;;  %v2912_v63 = vadd.f32 %v5996_v11, %v7935_v19  ;;  %v2903_v60 = vpop.f32.mrb[51].mxu0  ;;  %6047 = vmatprep.subr.bf16.mxu0 %v9080_v5 }
 0x846   :  { %6885 = vtanh.f32 %v2901_v48  ;;  %v2904_v4 = vadd.f32 %v7935_v19, %v2903_v60  ;;  %6362 = vmatpush3.bf16.msra.mxu1 %v6359_v13  ;;  %v6644_v13 = vld [vmem:[%s9053_s1 + $0x11c] ss:$20 sps:$4 sm:$0xff]  }
 0x847   :  { %6887 = vtanh.f32 %v2912_v63  ;;  %6364 = vmatprep.subr.bf16.mxu1 %v6363_v9 }
 0x848   :  { %6889 = vtanh.f32 %v2904_v4  ;;  %6048 = vmatpush3.bf16.msra.mxu0 %v6654_v10  ;;  %v6647_v10 = vld [vmem:[%s9053_s1 + $0x60] ss:$20 sps:$4 sm:$0xff]  }
 0x849   :  { %6049 = vmatprep.subr.bf16.mxu0 %v9080_v5 }
 0x84a   :  { %6366 = vmatpush3.bf16.msra.mxu1 %v6363_v9 }
 0x84b   :  { %3489 = vmatprep.subr.bf16.mxu1 %v8017_v14 }
 0x84c   :  { %6050 = vmatpush3.bf16.msra.mxu0 %v6655_v12  ;;  %v6648_v12 = vld [vmem:[%s9053_s1 + $0x88] ss:$20 sps:$4 sm:$0xff]  }
 0x84d   :  { %6051 = vmatprep.subr.bf16.mxu0 %v9080_v5 }
 0x84e   :  { %v6882_v21 = vpop.eup %6881 }
 0x84f   :  { %v6884_v29 = vpop.eup %6883  ;;  %v7944_v41 = vmul.f32 %v6882_v21, %v6880_v20 }
 0x850   :  { %v6886_v42 = vpop.eup %6885  ;;  %v2943_v53 = vmul.f32 1.442695, %v6884_v29 }
 0x851   :  { %v6888_v44 = vpop.eup %6887  ;;  %5621 = vst [vmem:[%s9056_s13 + $0x38] sm:$0xff] %v7944_v41  ;;  %v2939_v47 = vmul.f32 1.442695, %v6886_v42  ;;  %v2810_v51 = vpack.c.bf16 %v7944_v41, %v7877_v45  ;;  %v8152_v9 = vpack.c.bf16 %v7944_v41, %v7944_v41 }
 0x852   :  { %v6890_v52 = vpop.eup %6889  ;;  %v2945_v56 = vmul.f32 1.442695, %v6888_v44 }
 0x853   :  { %v2941_v55 = vmul.f32 1.442695, %v6890_v52  ;;  %5998 = vmatmul.mubr.bf16.gmra.mrb[52].mxu0 %v2810_v51  ;;  %6891 = vpow2.f32 %v2939_v47 }
 0x854   :  { %6061 = vmatprep.mubr.msk.bf16.mxu0 %vm6971_vm2, %v9080_v5 }
 0x855   :  { %6893 = vpow2.f32 %v2941_v55 }
 0x856   :  { %6895 = vpow2.f32 %v2943_v53 }
 0x857   :  { %6897 = vpow2.f32 %v2945_v56 }
 0x85d   :  { %v7952_v38 = vpop.eup %6891 }
 0x85f   :  { %v7954_v43 = vpop.eup %6893 }
 0x860   :  { %v2955_v58 = vadd.f32 %v7954_v43, %v7952_v38  ;;  %v7958_v37 = vpop.eup %6895 }
 0x861   :  { %v7961_v23 = vpop.eup %6897 }
 0x862   :  { %v2956_v26 = vadd.f32 %v7958_v37, %v2955_v58 }
 0x864   :  { %v7964_v24 = vadd.f32 %v7961_v23, %v2956_v26 }
 0x926   :  { %v5999_v54 = vpop.f32.mrb[52].mxu0 }
 0x927   :  { %v2925_v27 = vadd.f32 %v5999_v54, %v7935_v19  ;;  %v2916_v48 = vpop.f32.mrb[53].mxu0  ;;  %v6649_v54 = vld [vmem:[%s9053_s1 + $0xb0] ss:$20 sps:$4 sm:$0xff]  }
 0x928   :  { %v2917_v11 = vadd.f32 %v7935_v19, %v2916_v48  ;;  %v6000_v63 = vpop.f32.mrb[54].mxu0  ;;  %v6651_v48 = vld [vmem:[%s9053_s1 + $0x100] ss:$20 sps:$4 sm:$0xff]  }
 0x929   :  { %6899 = vtanh.f32 %v2925_v27  ;;  %v2928_v60 = vadd.f32 %v6000_v63, %v7935_v19  ;;  %v2919_v4 = vpop.f32.mrb[55].mxu0  ;;  %v6650_v27 = vld [vmem:[%s9053_s1 + $0xd8] ss:$20 sps:$4 sm:$0xff]  }
 0x92a   :  { %6901 = vtanh.f32 %v2917_v11  ;;  %v2920_v20 = vadd.f32 %v7935_v19, %v2919_v4  ;;  %v6652_v11 = vld [vmem:[%s9053_s1 + $0x128] ss:$20 sps:$4 sm:$0xff]  }
 0x92b   :  { %6903 = vtanh.f32 %v2928_v60  ;;  %v6656_v63 = vld [vmem:[%s9060_s7 + $0x18] sm:$0xff]   ;;  %v6657_v60 = vld [vmem:[%s9060_s7 + $0x20] sm:$0xff]   ;;  %v6658_v4 = vld [vmem:[%s9060_s7 + $0x28] sm:$0xff]  }
 0x92c   :  { %6905 = vtanh.f32 %v2920_v20  ;;  %6052 = vmatpush3.bf16.msra.mxu0 %v6656_v63  ;;  %v6659_v20 = vld [vmem:[%s9060_s7 + $0x30] sm:$0xff]   ;;  %v8309_v63 = vld [vmem:[%s9053_s1 + $0x124] ss:$20 sps:$4 sm:$0xff]  }
 0x92d   :  { %6053 = vmatprep.subr.bf16.mxu0 %v9080_v5 }
 0x930   :  { %6054 = vmatpush3.bf16.msra.mxu0 %v6657_v60  ;;  %v8315_v60 = vld [vmem:[%s9053_s1 + $0x120] ss:$20 sps:$4 sm:$0xff]  }
 0x931   :  { %6055 = vmatprep.subr.bf16.mxu0 %v9080_v5 }
 0x933   :  { %v6900_v21 = vpop.eup %6899 }
 0x934   :  { %v6902_v29 = vpop.eup %6901  ;;  %v2951_v51 = vmul.f32 1.442695, %v6900_v21  ;;  %6056 = vmatpush3.bf16.msra.mxu0 %v6658_v4  ;;  %v6660_v21 = vld [vmem:[%s9060_s7 + $0x38] sm:$0xff]  }
 0x935   :  { %v6904_v42 = vpop.eup %6903  ;;  %v2947_v44 = vmul.f32 1.442695, %v6902_v29  ;;  %6057 = vmatprep.subr.bf16.mxu0 %v9080_v5  ;;  %v8211_v29 = vld [vmem:[%s9053_s1 + $0xc] ss:$20 sps:$4 sm:$0xff]  }
 0x936   :  { %v6906_v47 = vpop.eup %6905  ;;  %v2953_v53 = vmul.f32 1.442695, %v6904_v42 }
 0x937   :  { %6907 = vpow2.f32 %v2947_v44  ;;  %v2949_v52 = vmul.f32 1.442695, %v6906_v47 }
 0x938   :  { %6058 = vmatpush3.bf16.msra.mxu0 %v6659_v20 }
 0x939   :  { %6909 = vpow2.f32 %v2949_v52  ;;  %6059 = vmatprep.subr.bf16.mxu0 %v9080_v5 }
 0x93a   :  { %6911 = vpow2.f32 %v2951_v51 }
 0x93b   :  { %6913 = vpow2.f32 %v2953_v53 }
 0x93c   :  { %6060 = vmatpush3.bf16.msra.mxu0 %v6660_v21 }
 0x93d   :  { %3530 = vmatprep.subr.bf16.mxu0 %v8211_v29 }
 0x941   :  { %v6908_v55 = vpop.eup %6907 }
 0x942   :  { %v2958_v56 = vadd.f32 %v6908_v55, %v7964_v24 }
 0x943   :  { %v6910_v58 = vpop.eup %6909 }
 0x944   :  { %v2959_v26 = vadd.f32 %v6910_v58, %v2958_v56  ;;  %v6912_v19 = vpop.eup %6911 }
 0x945   :  { %v6914_v57 = vpop.eup %6913 }
 0x946   :  { %v2960_v25 = vadd.f32 %v6912_v19, %v2959_v26 }
 0x948   :  { %v2961_v31 = vadd.f32 %v6914_v57, %v2960_v25 }
 0x94a   :  { %6915 = vrcp.f32 %v2961_v31 }
 0x954   :  { %v6916_v33 = vpop.eup %6915 }
 0x955   :  { %v2963_v32 = vmul.f32 %v6916_v33, %v7952_v38  ;;  %v2964_v35 = vmul.f32 %v6916_v33, %v7954_v43  ;;  %v2965_v36 = vmul.f32 %v6916_v33, %v7958_v37  ;;  %v2966_v24 = vmul.f32 %v6916_v33, %v7961_v23  ;;  %v8082_v43 = vld [vmem:[%s9053_s1 + $0x28] ss:$20 sps:$4 sm:$0xff]   ;;  %v8094_v23 = vld [vmem:[%s9053_s1 + $0x50] ss:$20 sps:$4 sm:$0xff]  }
 0x956   :  { %v2967_v62 = vmul.f32 %v6916_v33, %v6908_v55  ;;  %v2968_v59 = vmul.f32 %v6916_v33, %v6910_v58  ;;  %v2969_v15 = vmul.f32 %v6916_v33, %v6912_v19  ;;  %v2970_v38 = vmul.f32 %v6916_v33, %v6914_v57  ;;  %v8088_v37 = vld [vmem:[%s9053_s1 + $0x54] ss:$20 sps:$4 sm:$0xff]   ;;  %v6967_v58 = vld [vmem:[%s9056_s13 + $0x18] sm:$0xff] }
 0x957   :  { %2971 = vst [vmem:[%s9061_s14] sm:$0xff] %v2963_v32  ;;  %6033 = vmatprep.mubr.f32.mxu1 %v2963_v32  ;;  %2972 = vst [vmem:[%s9061_s14 + $0x8] sm:$0xff] %v2964_v35 }
 0x958   :  { %2973 = vst [vmem:[%s9061_s14 + $0x10] sm:$0xff] %v2965_v36  ;;  %2974 = vst [vmem:[%s9061_s14 + $0x18] sm:$0xff] %v2966_v24  ;;  %6034 = vmatmul.mubr.f32.vlgmr.msra.gmra.mrb[48].mxu1 %v2964_v35 }
 0x959   :  { %2975 = vst [vmem:[%s9061_s14 + $0x20] sm:$0xff] %v2967_v62  ;;  %2976 = vst [vmem:[%s9061_s14 + $0x28] sm:$0xff] %v2968_v59  ;;  %3490 = vmatpush1.bf16.msra.mxu1 %v8044_v22  ;;  %6036 = vmatprep.mubr.f32.mxu1 %v2965_v36 }
 0x95a   :  { %2977 = vst [vmem:[%s9061_s14 + $0x30] sm:$0xff] %v2969_v15  ;;  %2978 = vst [vmem:[%s9061_s14 + $0x38] sm:$0xff] %v2970_v38  ;;  %3491 = vmatprep.subr.bf16.mxu1 %v8052_v39 }
 0x95c   :  { %6037 = vmatmul.mubr.f32.gmra.mrb[50].mxu1 %v2966_v24 }
 0x95d   :  { %3492 = vmatpush1.bf16.msra.mxu1 %v8082_v43  ;;  %6039 = vmatprep.mubr.f32.mxu1 %v2967_v62 }
 0x95e   :  { %3493 = vmatprep.subr.bf16.mxu1 %v8088_v37 }
 0x960   :  { %6040 = vmatmul.mubr.f32.gmra.mrb[52].mxu1 %v2968_v59 }
 0x961   :  { %3494 = vmatpush1.bf16.msra.mxu1 %v8094_v23  ;;  %6042 = vmatprep.mubr.f32.mxu1 %v2969_v15  ;;  %v8227_v15 = vld [vmem:[%s9053_s1 + $0x8] ss:$20 sps:$4 sm:$0xff]  }
 0x962   :  { %3495 = vmatprep.subr.bf16.mxu1 %v8100_v28 }
 0x964   :  { %6043 = vmatmul.mubr.f32.gmra.mrb[54].mxu1 %v2970_v38 }
 0x965   :  { %3496 = vmatpush1.bf16.msra.mxu1 %v8106_v16  ;;  %3521 = vmatprep.mubr.bf16.mxu1 %v9134_v0 }
 0x966   :  { %3497 = vmatprep.subr.bf16.mxu1 %v8112_v61 }
 0x969   :  { %3498 = vmatpush1.bf16.msra.mxu1 %v8118_v2 }
 0x96a   :  { %3499 = vmatprep.subr.bf16.mxu1 %v8125_v1 }
 0x96d   :  { %3500 = vmatpush1.bf16.msra.mxu1 %v8131_v3 }
 0x96e   :  { %3501 = vmatprep.subr.bf16.mxu1 %v6641_v6  ;;  %v8257_v6 = vld [vmem:[%s9053_s1 + $0x84] ss:$20 sps:$4 sm:$0xff]  }
 0x971   :  { %3502 = vmatpush1.bf16.msra.mxu1 %v6639_v7  ;;  %v8263_v7 = vld [vmem:[%s9053_s1 + $0x80] ss:$20 sps:$4 sm:$0xff]  }
 0x972   :  { %3503 = vmatprep.subr.bf16.mxu1 %v6644_v13 }
 0x975   :  { %3504 = vmatpush1.bf16.msra.mxu1 %v6642_v18  ;;  %v8271_v18 = vld [vmem:[%s9053_s1 + $0xac] ss:$20 sps:$4 sm:$0xff]  }
 0x976   :  { %6065 = vmatprep.subr.bf16.mxu1 %v9080_v5 }
 0x978   :  { %3522 = vmatmul.mubr.bf16.vlgmr.msra.gmra.mrb[56].mxu1 %v8152_v9 }
 0x979   :  { %6066 = vmatpush3.bf16.msra.mxu1 %v6645_v8  ;;  %6081 = vmatprep.mubr.msk.bf16.mxu1 %vm6971_vm2, %v9080_v5 }
 0x97a   :  { %6067 = vmatprep.subr.bf16.mxu1 %v9080_v5 }
 0x97d   :  { %6068 = vmatpush3.bf16.msra.mxu1 %v6646_v17 }
 0x97e   :  { %6069 = vmatprep.subr.bf16.mxu1 %v9080_v5 }
 0x981   :  { %6070 = vmatpush3.bf16.msra.mxu1 %v6647_v10 }
 0x982   :  { %6071 = vmatprep.subr.bf16.mxu1 %v9080_v5 }
 0x985   :  { %6072 = vmatpush3.bf16.msra.mxu1 %v6648_v12  ;;  %v8279_v12 = vld [vmem:[%s9053_s1 + $0xa8] ss:$20 sps:$4 sm:$0xff]  }
 0x986   :  { %6073 = vmatprep.subr.bf16.mxu1 %v9080_v5 }
 0x989   :  { %6074 = vmatpush3.bf16.msra.mxu1 %v6649_v54  ;;  %v8285_v54 = vld [vmem:[%s9053_s1 + $0xd4] ss:$20 sps:$4 sm:$0xff]  }
 0x98a   :  { %6075 = vmatprep.subr.bf16.mxu1 %v9080_v5 }
 0x98d   :  { %6076 = vmatpush3.bf16.msra.mxu1 %v6650_v27  ;;  %v8291_v27 = vld [vmem:[%s9053_s1 + $0xd0] ss:$20 sps:$4 sm:$0xff]  }
 0x98e   :  { %6077 = vmatprep.subr.bf16.mxu1 %v9080_v5 }
 0x991   :  { %6078 = vmatpush3.bf16.msra.mxu1 %v6651_v48  ;;  %v8297_v48 = vld [vmem:[%s9053_s1 + $0xfc] ss:$20 sps:$4 sm:$0xff]  }
 0x992   :  { %6079 = vmatprep.subr.bf16.mxu1 %v9080_v5 }
 0x995   :  { %6080 = vmatpush3.bf16.msra.mxu1 %v6652_v11  ;;  %v8303_v11 = vld [vmem:[%s9053_s1 + $0xf8] ss:$20 sps:$4 sm:$0xff]  }
 0x998   :  { %6082 = vmatmul.mubr.bf16.vlgmr.msra.gmra.mrb[60].mxu1 %v8152_v9 }
 0x999   :  { %6152 = vmatprep.mubr.msk.f32.mxu1 %vm6971_vm2, %v9080_v5 }
 0xa2b   :  { %v6035_v42 = vpop.f32.mrb[48].mxu1 }
 0xa2c   :  { %v3101_v44 = vmul.f32 %v6035_v42, %v7882_v46  ;;  %v3061_v47 = vpop.f32.mrb[49].mxu1 }
 0xa2d   :  { %v3100_v51 = vmul.f32 %v3061_v47, %v7893_v50  ;;  %v3621_v47 = vld [vmem:[%s9062_s9] sm:$0xff] }
 0xa2f   :  { %v3108_v52 = vadd.f32 %v3101_v44, %v3100_v51  ;;  %v6038_v53 = vpop.f32.mrb[50].mxu1  ;;  %v9082_v44 = vmov 0.0|0.0   ;;  %v3622_v51 = vld [vmem:[%s9062_s9 + $0x8] sm:$0xff] }
 0xa30   :  { %v3071_v55 = vpop.f32.mrb[51].mxu1  ;;  %v3103_v26 = vmul.f32 %v6967_v58, %v6038_v53  ;;  %6391 = vmatprep.subr.bf16.mxu1 %v9082_v44  ;;  %v3624_v53 = vld [vmem:[%s9062_s9 + $0x18] sm:$0xff]  ;;  %v3626_v58 = vld [vmem:[%s9062_s9 + $0x28] sm:$0xff] }
 0xa31   :  { %v3102_v56 = vmul.f32 %v3071_v55, %v7921_v30 }
 0xa33   :  { %v3109_v19 = vadd.f32 %v3108_v52, %v3102_v56  ;;  %v6041_v25 = vpop.f32.mrb[52].mxu1  ;;  %v8333_v52 = vpack.c.bf16 %v3622_v51, %v3621_v47  ;;  %v3625_v56 = vld [vmem:[%s9062_s9 + $0x20] sm:$0xff] }
 0xa34   :  { %v3081_v57 = vpop.f32.mrb[53].mxu1  ;;  %v3105_v46 = vmul.f32 %v6041_v25, %v7826_v40  ;;  %v8238_v40 = vld [vmem:[%s9053_s1 + $0x30] ss:$20 sps:$4 sm:$0xff]   ;;  %v3628_v25 = vld [vmem:[%s9062_s9 + $0x38] sm:$0xff] }
 0xa35   :  { %v3104_v31 = vmul.f32 %v3081_v57, %v7776_v34  ;;  %v3110_v33 = vadd.f32 %v3109_v19, %v3103_v26  ;;  %v8232_v34 = vld [vmem:[%s9053_s1 + $0x34] ss:$20 sps:$4 sm:$0xff]   ;;  %v8349_v26 = vpack.c.bf16 %v3626_v58, %v3625_v56  ;;  %v3632_v56 = vld [vmem:[%s9062_s9 + $0x58] sm:$0xff]  ;;  %v3633_v58 = vld [vmem:[%s9062_s9 + $0x60] sm:$0xff] }
 0xa36   :  { %v3627_v19 = vld [vmem:[%s9062_s9 + $0x30] sm:$0xff] }
 0xa37   :  { %v3111_v32 = vadd.f32 %v3110_v33, %v3104_v31  ;;  %v6044_v50 = vpop.f32.mrb[54].mxu1  ;;  %v8359_v57 = vpack.c.bf16 %v3628_v25, %v3627_v19  ;;  %v3629_v31 = vld [vmem:[%s9062_s9 + $0x40] sm:$0xff]  ;;  %v3630_v33 = vld [vmem:[%s9062_s9 + $0x48] sm:$0xff] }
 0xa38   :  { %v3091_v35 = vpop.f32.mrb[55].mxu1  ;;  %v3107_v30 = vmul.f32 %v6044_v50, %v7944_v41  ;;  %v8251_v41 = vld [vmem:[%s9053_s1 + $0x58] ss:$20 sps:$4 sm:$0xff]  }
 0xa39   :  { %v3106_v36 = vmul.f32 %v3091_v35, %v7877_v45  ;;  %v3112_v24 = vadd.f32 %v3111_v32, %v3105_v46  ;;  %v8245_v45 = vld [vmem:[%s9053_s1 + $0x5c] ss:$20 sps:$4 sm:$0xff]   ;;  %v8369_v46 = vpack.c.bf16 %v3630_v33, %v3629_v31  ;;  %v5631_v32 = vld [vmem:[%s9063_s8] ss:$0 sm:$0xff]  ;;  %v3634_v25 = vld [vmem:[%s9062_s9 + $0x68] sm:$0xff] }
 0xa3a   :  { %v8407_v31 = vpack.c.bf16 %v3634_v25, %v3633_v58  ;;  %v3635_v33 = vld [vmem:[%s9062_s9 + $0x70] sm:$0xff]  ;;  %v3716_v58 = vld [vmem:[%s9064_s10 + $0x40] sm:$0xff]  ;;  %v3717_v25 = vld [vmem:[%s9064_s10 + $0x48] sm:$0xff] }
 0xa3b   :  { %v3113_v62 = vadd.f32 %v3112_v24, %v3106_v36 }
 0xa3d   :  { %v3114_v59 = vadd.f32 %v3113_v62, %v3107_v30 }
 0xa3f   :  { %v3131_v38 = vpack.c.bf16 %v3114_v59, %v3114_v59 }
 0xa41   :  { %6062 = vmatmul.mubr.bf16.vlgmr.msra.gmra.mrb[56].mxu0 %v3131_v38 }
 0xa42   :  { %3531 = vmatpush1.bf16.msra.mxu0 %v8227_v15  ;;  %3562 = vmatprep.mubr.bf16.mxu0 %v9134_v0 }
 0xa43   :  { %3532 = vmatprep.subr.bf16.mxu0 %v8232_v34 }
 0xa46   :  { %3533 = vmatpush1.bf16.msra.mxu0 %v8238_v40 }
 0xa47   :  { %3534 = vmatprep.subr.bf16.mxu0 %v8245_v45 }
 0xa4a   :  { %3535 = vmatpush1.bf16.msra.mxu0 %v8251_v41 }
 0xa4b   :  { %v8265_v13 = vpop.f32.mrb[56].mxu1  ;;  %3536 = vmatprep.subr.bf16.mxu0 %v8257_v6 }
 0xa4c   :  { %v8273_v8 = vpop.f32.mrb[57].mxu1 }
 0xa4d   :  { %v3527_v17 = vpop.f32.mrb[58].mxu1 }
 0xa4e   :  { %v3528_v10 = vpop.f32.mrb[59].mxu1  ;;  %3537 = vmatpush1.bf16.msra.mxu0 %v8263_v7  ;;  %v9157_v17 = vlaneseq }
 0xa4f   :  { %3538 = vmatprep.subr.bf16.mxu0 %v8271_v18 }
 0xa50   :  { %v3228_v10 = vand.u32 127, %v9157_v17 }
 0xa52   :  { %3539 = vmatpush1.bf16.msra.mxu0 %v8279_v12  ;;  %vm3229_vm3 = vcmp.lt.s32.totalorder %v3228_v10, 4  ;;  %v3712_v10 = vld [vmem:[%s9064_s10 + $0x20] sm:$0xff] }
 0xa53   :  { %3540 = vmatprep.subr.bf16.mxu0 %v8285_v54 }
 0xa56   :  { %3541 = vmatpush1.bf16.msra.mxu0 %v8291_v27 }
 0xa57   :  { %3542 = vmatprep.subr.bf16.mxu0 %v8297_v48 }
 0xa5a   :  { %3543 = vmatpush1.bf16.msra.mxu0 %v8303_v11 }
 0xa5b   :  { %3544 = vmatprep.subr.bf16.mxu0 %v8309_v63 }
 0xa5e   :  { %3545 = vmatpush1.bf16.msra.mxu0 %v8315_v60 }
 0xa5f   :  { %6367 = vmatprep.subr.bf16.mxu0 %v9082_v44 }
 0xa61   :  { %3563 = vmatmul.mubr.bf16.vlgmr.msra.gmra.mrb[60].mxu0 %v8152_v9  ;;  %v3623_v9 = vld [vmem:[%s9062_s9 + $0x10] sm:$0xff] }
 0xa62   :  { %6117 = vmatprep.mubr.msk.f32.mxu0 %vm6971_vm2, %v9080_v5  ;;  %6369 = vmatpush3.bf16.msra.mxu0 %v8333_v52  ;;  %v8339_v55 = vpack.c.bf16 %v3624_v53, %v3623_v9  ;;  %v3631_v53 = vld [vmem:[%s9062_s9 + $0x50] sm:$0xff] }
 0xa63   :  { %6370 = vmatprep.subr.bf16.mxu0 %v9082_v44  ;;  %v8401_v19 = vpack.c.bf16 %v3632_v56, %v3631_v53  ;;  %v3715_v53 = vld [vmem:[%s9064_s10 + $0x38] sm:$0xff] }
 0xa66   :  { %6372 = vmatpush3.bf16.msra.mxu0 %v8339_v55 }
 0xa67   :  { %6373 = vmatprep.subr.bf16.mxu0 %v9082_v44 }
 0xa6a   :  { %6375 = vmatpush3.bf16.msra.mxu0 %v8349_v26 }
 0xa6b   :  { %v3605_v4 = vpop.f32.mrb[60].mxu1  ;;  %6376 = vmatprep.subr.bf16.mxu0 %v9082_v44 }
 0xa6c   :  { %v6083_v20 = vpop.f32.mrb[61].mxu1 }
 0xa6d   :  { %v3608_v21 = vpop.f32.mrb[62].mxu1  ;;  %v8385_v20 = vsel %vm3229_vm3, 1.0, %v9080_v5  ;;  %v8560_v5 = vld [vmem:[%s9066_s11 + $0x84] ss:$16 sps:$4 sm:$0xff]  }
 0xa6e   :  { %v6084_v42 = vpop.f32.mrb[63].mxu1  ;;  %6378 = vmatpush3.bf16.msra.mxu0 %v8359_v57  ;;  %9163 = vst [vmem:[#allocation12_spill] sm:$0xff] %v8560_v5 }
 0xa6f   :  { %6379 = vmatprep.subr.bf16.mxu0 %v9082_v44 }
 0xa72   :  { %6381 = vmatpush3.bf16.msra.mxu0 %v8369_v46 }
 0xa73   :  { %6382 = vmatprep.subr.bf16.mxu0 %v9082_v44 }
 0xa76   :  { %6384 = vmatpush3.bf16.msra.mxu0 %v8401_v19 }
 0xa77   :  { %6385 = vmatprep.subr.bf16.mxu0 %v9082_v44 }
 0xa7a   :  { %6387 = vmatpush3.bf16.msra.mxu0 %v8407_v31 }
 0xa7b   :  { %6388 = vmatprep.subr.bf16.mxu0 %v9082_v44 }
 0xb14   :  { %v3221_v50 = vpop.f32.mrb[56].mxu0 }
 0xb15   :  { %v8377_v35 = vadd.f32 %v5631_v32, %v3221_v50  ;;  %v6063_v36 = vpop.f32.mrb[57].mxu0  ;;  %v3636_v32 = vld [vmem:[%s9062_s9 + $0x78] sm:$0xff] }
 0xb16   :  { %v3224_v24 = vpop.f32.mrb[58].mxu0  ;;  %v8417_v50 = vpack.c.bf16 %v3636_v32, %v3635_v33  ;;  %v3708_v36 = vld [vmem:[%s9064_s10] sm:$0xff]  ;;  %v8466_v33 = vpack.c.bf16 %v3717_v25, %v3716_v58  ;;  %v3718_v32 = vld [vmem:[%s9064_s10 + $0x50] sm:$0xff]  ;;  %v3723_v25 = vld [vmem:[%s9064_s10 + $0x78] sm:$0xff] }
 0xb17   :  { %v8380_v30 = vadd.f32 %v3605_v4, %v8377_v35  ;;  %v6064_v62 = vpop.f32.mrb[59].mxu0  ;;  %v3709_v24 = vld [vmem:[%s9064_s10 + $0x8] sm:$0xff]  ;;  %v3722_v58 = vld [vmem:[%s9064_s10 + $0x70] sm:$0xff] }
 0xb18   :  { %6390 = vmatpush3.bf16.msra.mxu0 %v8417_v50  ;;  %v3710_v62 = vld [vmem:[%s9064_s10 + $0x10] sm:$0xff] }
 0xb19   :  { %6917 = vtanh.f32 %v8380_v30 }
 0xb23   :  { %v6918_v59 = vpop.eup %6917 }
 0xb24   :  { %v3613_v38 = vmul.f32 1.442695, %v6918_v59  ;;  %v8430_v59 = vpack.c.bf16 %v3709_v24, %v3708_v36  ;;  %v3719_v36 = vld [vmem:[%s9064_s10 + $0x58] sm:$0xff] }
 0xb25   :  { %v8476_v24 = vpack.c.bf16 %v3719_v36, %v3718_v32  ;;  %v8501_v32 = vpack.c.bf16 %v3723_v25, %v3722_v58  ;;  %v8512_v36 = vld [vmem:[%s9066_s11 + $0x4] ss:$16 sps:$4 sm:$0xff]   ;;  %v8554_v25 = vld [vmem:[%s9066_s11 + $0x60] ss:$16 sps:$4 sm:$0xff]  }
 0xb26   :  { %6919 = vpow2.f32 %v3613_v38  ;;  %v3711_v38 = vld [vmem:[%s9064_s10 + $0x18] sm:$0xff]  ;;  %6393 = vmatpush3.bf16.msra.mxu1 %v8430_v59  ;;  %3988 = vmatprep.subr.bf16.mxu0 %v8512_v36  ;;  %v8548_v58 = vld [vmem:[%s9066_s11 + $0x64] ss:$16 sps:$4 sm:$0xff]   ;;  %9162 = vst [vmem:[#allocation11_spill] sm:$0xff] %v8554_v25 }
 0xb27   :  { %v8436_v17 = vpack.c.bf16 %v3711_v38, %v3710_v62  ;;  %6394 = vmatprep.subr.bf16.mxu1 %v9082_v44  ;;  %v3720_v62 = vld [vmem:[%s9064_s10 + $0x60] sm:$0xff]  ;;  %v3721_v38 = vld [vmem:[%s9064_s10 + $0x68] sm:$0xff]  ;;  %9161 = vst [vmem:[#allocation10_spill] sm:$0xff] %v8548_v58 }
 0xb2a   :  { %6396 = vmatpush3.bf16.msra.mxu1 %v8436_v17 }
 0xb2b   :  { %6397 = vmatprep.subr.bf16.mxu1 %v9082_v44 }
 0xb30   :  { %v6920_v21 = vpop.eup %6919 }
 0xb31   :  { %v3615_v42 = vmul.f32 %v6920_v21, %v8385_v20  ;;  %v3713_v21 = vld [vmem:[%s9064_s10 + $0x28] sm:$0xff] }
 0xb33   :  { %3616 = vadd.xlane.f32.xlu0 %v3615_v42 }
 0xb34   :  { %v8388_v47 = vpop.f32.mrb[60].mxu0 }
 0xb35   :  { %v8390_v4 = vpop.f32.mrb[61].mxu0 }
 0xb36   :  { %v3568_v51 = vpop.f32.mrb[62].mxu0 }
 0xb37   :  { %v3569_v9 = vpop.f32.mrb[63].mxu0  ;;  %v8446_v51 = vpack.c.bf16 %v3713_v21, %v3712_v10  ;;  %v8486_v10 = vpack.c.bf16 %v3721_v38, %v3720_v62  ;;  %v8517_v62 = vld [vmem:[%s9066_s11 + $0xc] ss:$16 sps:$4 sm:$0xff]   ;;  %v8523_v38 = vld [vmem:[%s9066_s11 + $0x24] ss:$16 sps:$4 sm:$0xff]  }
 0xb38   :  { %v3714_v9 = vld [vmem:[%s9064_s10 + $0x30] sm:$0xff] }
 0xb39   :  { %6399 = vmatpush3.bf16.msra.mxu1 %v8446_v51  ;;  %v8456_v56 = vpack.c.bf16 %v3715_v53, %v3714_v9 }
 0xb3a   :  { %6400 = vmatprep.subr.bf16.mxu1 %v9082_v44 }
 0xb3d   :  { %6402 = vmatpush3.bf16.msra.mxu1 %v8456_v56 }
 0xb3e   :  { %6403 = vmatprep.subr.bf16.mxu1 %v9082_v44 }
 0xb41   :  { %6405 = vmatpush3.bf16.msra.mxu1 %v8466_v33 }
 0xb42   :  { %6406 = vmatprep.subr.bf16.mxu1 %v9082_v44 }
 0xb45   :  { %6408 = vmatpush3.bf16.msra.mxu1 %v8476_v24 }
 0xb46   :  { %6409 = vmatprep.subr.bf16.mxu1 %v9082_v44 }
 0xb49   :  { %6411 = vmatpush3.bf16.msra.mxu1 %v8486_v10 }
 0xb4a   :  { %6412 = vmatprep.subr.bf16.mxu1 %v9082_v44  ;;  %v8566_v44 = vld [vmem:[%s9066_s11 + $0x80] ss:$16 sps:$4 sm:$0xff]  }
 0xb4b   :  { %9164 = vst [vmem:[#allocation13_spill] sm:$0xff] %v8566_v44 }
 0xb4d   :  { %6414 = vmatpush3.bf16.msra.mxu1 %v8501_v32 }
 0xb4e   :  { %4029 = vmatprep.subr.bf16.mxu1 %v8517_v62 }
 0xbc0   :  { %v3617_v21 = vpop.xlane.xlu0 %3616 }
 0xbc1   :  { %6921 = vrcp.f32 %v3617_v21  ;;  %v8530_v21 = vld [vmem:[%s9066_s11 + $0x20] ss:$16 sps:$4 sm:$0xff]  }
 0xbc2   :  { %9158 = vst [vmem:[#allocation7_spill] sm:$0xff] %v8530_v21 }
 0xbcb   :  { %v6922_v9 = vpop.eup %6921 }
 0xbcc   :  { %v3619_v53 = vmul.f32 %v6922_v9, %v3615_v42  ;;  %v8507_v42 = vld [vmem:[%s9066_s11] ss:$16 sps:$4 sm:$0xff]   ;;  %v8536_v9 = vld [vmem:[%s9066_s11 + $0x44] ss:$16 sps:$4 sm:$0xff]  }
 0xbcd   :  { %9159 = vst [vmem:[#allocation8_spill] sm:$0xff] %v8536_v9 }
 0xbce   :  { %3620 = vst [vmem:[%s9065_s16] sm:$0xff] %v3619_v53  ;;  %6118 = vmatmul.mubr.f32.vlgmr.msra.gmra.mrb[64].mxu0 %v3619_v53  ;;  %v8542_v53 = vld [vmem:[%s9066_s11 + $0x40] ss:$16 sps:$4 sm:$0xff]  }
 0xbcf   :  { %4020 = vmatprep.mubr.bf16.mxu0 %v9134_v0  ;;  %3989 = vmatpush1.bf16.msra.mxu0 %v8507_v42  ;;  %9160 = vst [vmem:[#allocation9_spill] sm:$0xff] %v8542_v53 }
 0xbd0   :  { %3990 = vmatprep.subr.bf16.mxu0 %v8523_v38 }
 0xbd3   :  { %3991 = vmatpush1.bf16.msra.mxu0 %v8530_v21  ;;  %v8616_v21 = vld [vmem:[%s9066_s11 + $0x2c] ss:$16 sps:$4 sm:$0xff]  }
 0xbd4   :  { %3992 = vmatprep.subr.bf16.mxu0 %v8536_v9  ;;  %9169 = vst [vmem:[#allocation18_spill] sm:$0xff] %v8616_v21 }
 0xbd7   :  { %3993 = vmatpush1.bf16.msra.mxu0 %v8542_v53  ;;  %v8572_v53 = vld [vmem:[%s9066_s11 + $0xa4] ss:$16 sps:$4 sm:$0xff]  }
 0xbd8   :  { %3994 = vmatprep.subr.bf16.mxu0 %v8548_v58  ;;  %9165 = vst [vmem:[#allocation14_spill] sm:$0xff] %v8572_v53  ;;  %v8578_v58 = vld [vmem:[%s9066_s11 + $0xa0] ss:$16 sps:$4 sm:$0xff]  }
 0xbd9   :  { %9166 = vst [vmem:[#allocation15_spill] sm:$0xff] %v8578_v58 }
 0xbdb   :  { %3995 = vmatpush1.bf16.msra.mxu0 %v8554_v25  ;;  %v8584_v25 = vld [vmem:[%s9066_s11 + $0xc4] ss:$16 sps:$4 sm:$0xff]  }
 0xbdc   :  { %3996 = vmatprep.subr.bf16.mxu0 %v8560_v5  ;;  %9167 = vst [vmem:[#allocation16_spill] sm:$0xff] %v8584_v25  ;;  %v8590_v5 = vld [vmem:[%s9066_s11 + $0xc0] ss:$16 sps:$4 sm:$0xff]  }
 0xbdd   :  { %9168 = vst [vmem:[#allocation17_spill] sm:$0xff] %v8590_v5 }
 0xbdf   :  { %3997 = vmatpush1.bf16.msra.mxu0 %v8566_v44  ;;  %v8596_v44 = vld [vmem:[%s9066_s11 + $0xe4] ss:$16 sps:$4 sm:$0xff]  }
 0xbe0   :  { %3998 = vmatprep.subr.bf16.mxu0 %v8572_v53  ;;  %v8602_v53 = vld [vmem:[%s9066_s11 + $0xe0] ss:$16 sps:$4 sm:$0xff]  }
 0xbe3   :  { %3999 = vmatpush1.bf16.msra.mxu0 %v8578_v58 }
 0xbe4   :  { %4000 = vmatprep.subr.bf16.mxu0 %v8584_v25  ;;  %v8610_v25 = vld [vmem:[%s9066_s11 + $0x8] ss:$16 sps:$4 sm:$0xff]  }
 0xbe7   :  { %4001 = vmatpush1.bf16.msra.mxu0 %v8590_v5 }
 0xbe8   :  { %4002 = vmatprep.subr.bf16.mxu0 %v8596_v44 }
 0xbeb   :  { %4003 = vmatpush1.bf16.msra.mxu0 %v8602_v53 }
 0xbec   :  { %4381 = vmatprep.subr.bf16.mxu0 %v8017_v14  ;;  %v8622_v14 = vld [vmem:[%s9066_s11 + $0x28] ss:$16 sps:$4 sm:$0xff]  }
 0xbed   :  { %9170 = vst [vmem:[#allocation19_spill] sm:$0xff] %v8622_v14 }
 0xca1   :  { %v3703_v58 = vpop.f32.mrb[64].mxu0 }
 0xca2   :  { %v3707_v9 = vmul.f32 %v3703_v58, %v8380_v30  ;;  %v6119_v5 = vpop.f32.mrb[65].mxu0  ;;  %v8635_v30 = vld [vmem:[%s9066_s11 + $0x48] ss:$16 sps:$4 sm:$0xff]  }
 0xca3   :  { %v8629_v5 = vld [vmem:[%s9066_s11 + $0x4c] ss:$16 sps:$4 sm:$0xff]   ;;  %9172 = vst [vmem:[#allocation21_spill] sm:$0xff] %v8635_v30  ;;  %v8647_v58 = vld [vmem:[%s9066_s11 + $0x68] ss:$16 sps:$4 sm:$0xff]  }
 0xca4   :  { %6153 = vmatmul.mubr.f32.vlgmr.msra.gmra.mrb[64].mxu1 %v3707_v9  ;;  %9171 = vst [vmem:[#allocation20_spill] sm:$0xff] %v8629_v5  ;;  %v8641_v9 = vld [vmem:[%s9066_s11 + $0x6c] ss:$16 sps:$4 sm:$0xff]   ;;  %9174 = vst [vmem:[#allocation23_spill] sm:$0xff] %v8647_v58 }
 0xca5   :  { %4030 = vmatpush1.bf16.msra.mxu1 %v8610_v25  ;;  %4061 = vmatprep.mubr.bf16.mxu1 %v9134_v0  ;;  %9173 = vst [vmem:[#allocation22_spill] sm:$0xff] %v8641_v9 }
 0xca6   :  { %4031 = vmatprep.subr.bf16.mxu1 %v8616_v21 }
 0xca9   :  { %4032 = vmatpush1.bf16.msra.mxu1 %v8622_v14  ;;  %v8653_v14 = vld [vmem:[%s9066_s11 + $0x8c] ss:$16 sps:$4 sm:$0xff]  }
 0xcaa   :  { %4033 = vmatprep.subr.bf16.mxu1 %v8629_v5  ;;  %9175 = vst [vmem:[#allocation24_spill] sm:$0xff] %v8653_v14  ;;  %v8659_v5 = vld [vmem:[%s9066_s11 + $0x88] ss:$16 sps:$4 sm:$0xff]  }
 0xcab   :  { %9176 = vst [vmem:[#allocation25_spill] sm:$0xff] %v8659_v5 }
 0xcad   :  { %4034 = vmatpush1.bf16.msra.mxu1 %v8635_v30  ;;  %v8665_v30 = vld [vmem:[%s9066_s11 + $0xac] ss:$16 sps:$4 sm:$0xff]  }
 0xcae   :  { %4035 = vmatprep.subr.bf16.mxu1 %v8641_v9  ;;  %9177 = vst [vmem:[#allocation26_spill] sm:$0xff] %v8665_v30  ;;  %v8671_v9 = vld [vmem:[%s9066_s11 + $0xa8] ss:$16 sps:$4 sm:$0xff]  }
 0xcaf   :  { %9178 = vst [vmem:[#allocation27_spill] sm:$0xff] %v8671_v9 }
 0xcb1   :  { %4036 = vmatpush1.bf16.msra.mxu1 %v8647_v58  ;;  %v8677_v58 = vld [vmem:[%s9066_s11 + $0xcc] ss:$16 sps:$4 sm:$0xff]  }
 0xcb2   :  { %4037 = vmatprep.subr.bf16.mxu1 %v8653_v14  ;;  %9179 = vst [vmem:[#allocation28_spill] sm:$0xff] %v8677_v58  ;;  %v8683_v14 = vld [vmem:[%s9066_s11 + $0xc8] ss:$16 sps:$4 sm:$0xff]  }
 0xcb5   :  { %4038 = vmatpush1.bf16.msra.mxu1 %v8659_v5  ;;  %v8689_v5 = vld [vmem:[%s9066_s11 + $0xec] ss:$16 sps:$4 sm:$0xff]  }
 0xcb6   :  { %4039 = vmatprep.subr.bf16.mxu1 %v8665_v30  ;;  %v8695_v30 = vld [vmem:[%s9066_s11 + $0xe8] ss:$16 sps:$4 sm:$0xff]  }
 0xcb9   :  { %4040 = vmatpush1.bf16.msra.mxu1 %v8671_v9 }
 0xcba   :  { %4041 = vmatprep.subr.bf16.mxu1 %v8677_v58 }
 0xcbd   :  { %4042 = vmatpush1.bf16.msra.mxu1 %v8683_v14 }
 0xcbe   :  { %4043 = vmatprep.subr.bf16.mxu1 %v8689_v5 }
 0xcc1   :  { %4044 = vmatpush1.bf16.msra.mxu1 %v8695_v30 }
 0xcc2   :  { %4422 = vmatprep.subr.bf16.mxu1 %v8211_v29  ;;  %v9183_v29 = vld [vmem:[#allocation5_spill] sm:$0xff] }
 0xd77   :  { %v3790_v9 = vpop.f32.mrb[64].mxu1 }
 0xd78   :  { %3794 = vst [vmem:[%s9067_s15] sm:$0xff] %v3790_v9  ;;  %v3827_v58 = vpack.c.bf16 %v3790_v9, %v3790_v9  ;;  %v6154_v21 = vpop.f32.mrb[65].mxu1 }
 0xd79   :  { %v9184_v21 = vld [vmem:[#allocation6_spill] sm:$0xff] }
 0xd7a   :  { %4021 = vmatmul.mubr.bf16.vlgmr.msra.gmra.mrb[68].mxu0 %v3827_v58  ;;  %4062 = vmatmul.mubr.bf16.vlgmr.msra.gmra.mrb[68].mxu1 %v3827_v58 }
 0xd7b   :  { %4382 = vmatpush1.bf16.msra.mxu0 %v8044_v22  ;;  %4423 = vmatpush1.bf16.msra.mxu1 %v8227_v15  ;;  %v9180_v22 = vmov 0.0|0.0  }
 0xd7c   :  { %4383 = vmatprep.subr.bf16.mxu0 %v8052_v39  ;;  %4424 = vmatprep.subr.bf16.mxu1 %v8232_v34  ;;  %v6733_v39 = vld [vmem:[%s9053_s1 + $0xf0] ss:$20 sps:$4 sm:$0xff]  }
 0xd7d   :  { %4413 = vmatprep.mubr.bf16.mxu0 %v9134_v0  ;;  %4454 = vmatprep.mubr.bf16.mxu1 %v9134_v0 }
 0xd7f   :  { %4384 = vmatpush1.bf16.msra.mxu0 %v8082_v43  ;;  %4425 = vmatpush1.bf16.msra.mxu1 %v8238_v40  ;;  %v6735_v43 = vld [vmem:[%s9053_s1 + $0xf4] ss:$20 sps:$4 sm:$0xff]  }
 0xd80   :  { %4385 = vmatprep.subr.bf16.mxu0 %v8088_v37  ;;  %4426 = vmatprep.subr.bf16.mxu1 %v8245_v45  ;;  %v6738_v37 = vld [vmem:[%s9053_s1 + $0x11c] ss:$20 sps:$4 sm:$0xff]  }
 0xd83   :  { %4386 = vmatpush1.bf16.msra.mxu0 %v8094_v23  ;;  %4427 = vmatpush1.bf16.msra.mxu1 %v8251_v41  ;;  %v6736_v23 = vld [vmem:[%s9053_s1 + $0x118] ss:$20 sps:$4 sm:$0xff]  }
 0xd84   :  { %4387 = vmatprep.subr.bf16.mxu0 %v8100_v28  ;;  %4428 = vmatprep.subr.bf16.mxu1 %v8257_v6  ;;  %v9181_v28 = vmov 0.0  }
 0xd87   :  { %4388 = vmatpush1.bf16.msra.mxu0 %v8106_v16  ;;  %4429 = vmatpush1.bf16.msra.mxu1 %v8263_v7  ;;  %v4074_v16 = vld [vmem:[%s9068_s12] sm:$0xf] }
 0xd88   :  { %4389 = vmatprep.subr.bf16.mxu0 %v8112_v61  ;;  %4430 = vmatprep.subr.bf16.mxu1 %v8271_v18  ;;  %v9182_v61 = vld [vmem:[#allocation3_spill] sm:$0xff]  ;;  %v4083_v15 = vrot.slane %v4074_v16, %v9183_v29  ;;  %v4091_v9 = vrot.slane %v4074_v16, %v9184_v21 }
 0xd8b   :  { %4390 = vmatpush1.bf16.msra.mxu0 %v8118_v2  ;;  %4431 = vmatpush1.bf16.msra.mxu1 %v8279_v12  ;;  %v4087_v2 = vrot.slane %v4074_v16, %v9182_v61 }
 0xd8c   :  { %4391 = vmatprep.subr.bf16.mxu0 %v8125_v1  ;;  %4432 = vmatprep.subr.bf16.mxu1 %v8285_v54 }
 0xd8f   :  { %4392 = vmatpush1.bf16.msra.mxu0 %v8131_v3  ;;  %4433 = vmatpush1.bf16.msra.mxu1 %v8291_v27 }
 0xd90   :  { %4434 = vmatprep.subr.bf16.mxu1 %v8297_v48  ;;  %4393 = vmatprep.subr.bf16.mxu0 %v6735_v43 }
 0xd93   :  { %4435 = vmatpush1.bf16.msra.mxu1 %v8303_v11  ;;  %4394 = vmatpush1.bf16.msra.mxu0 %v6733_v39 }
 0xd94   :  { %4436 = vmatprep.subr.bf16.mxu1 %v8309_v63  ;;  %4395 = vmatprep.subr.bf16.mxu0 %v6738_v37 }
 0xd97   :  { %4437 = vmatpush1.bf16.msra.mxu1 %v8315_v60  ;;  %4396 = vmatpush1.bf16.msra.mxu0 %v6736_v23 }
 0xd98   :  { %6415 = vmatprep.subr.bf16.mxu1 %v9180_v22  ;;  %6155 = vmatprep.subr.bf16.mxu0 %v9181_v28 }
 0xe4d   :  { %v4022_v1 = vpop.f32.mrb[68].mxu0  ;;  %v4063_v3 = vpop.f32.mrb[68].mxu1 }
 0xe4e   :  { %v4070_v34 = vadd.f32 %v4022_v1, %v8265_v13  ;;  %v4072_v40 = vadd.f32 %v4063_v3, %v8388_v47  ;;  %v4024_v45 = vpop.f32.mrb[69].mxu0  ;;  %v4065_v41 = vpop.f32.mrb[69].mxu1  ;;  %v9185_v47 = vld [vmem:[#allocation4_spill] sm:$0xff] }
 0xe4f   :  { %v4071_v6 = vadd.f32 %v4024_v45, %v8273_v8  ;;  %v4073_v7 = vadd.f32 %v4065_v41, %v8390_v4  ;;  %v4026_v18 = vpop.f32.mrb[70].mxu0  ;;  %v4067_v12 = vpop.f32.mrb[70].mxu1  ;;  %v4079_v58 = vrot.slane %v4074_v16, %v9185_v47 }
 0xe50   :  { %v4098_v54 = vadd.f32 %v4087_v2, %v4072_v40  ;;  %v4027_v27 = vpop.f32.mrb[71].mxu0  ;;  %v4068_v48 = vpop.f32.mrb[71].mxu1  ;;  %v6739_v18 = vld [vmem:[%s9053_s1 + $0x10] ss:$20 sps:$4 sm:$0xff]  }
 0xe51   :  { %v4097_v11 = vadd.f32 %v4083_v15, %v4071_v6  ;;  %v4099_v13 = vadd.f32 %v4091_v9, %v4073_v7  ;;  %v4096_v43 = vadd.f32 %v4079_v58, %v4070_v34  ;;  %v6743_v27 = vld [vmem:[%s9053_s1 + $0xb0] ss:$20 sps:$4 sm:$0xff]  }
 0xe52   :  { %v5714_v63 = vmul.f32 -1.442695, %v4098_v54  ;;  %v6741_v54 = vld [vmem:[%s9053_s1 + $0x60] ss:$20 sps:$4 sm:$0xff]  }
 0xe53   :  { %v5713_v60 = vmul.f32 -1.442695, %v4097_v11  ;;  %v5715_v39 = vmul.f32 -1.442695, %v4099_v13  ;;  %v9186_v58 = vld [vmem:[#allocation7_spill] sm:$0xff] }
 0xe54   :  { %6923 = vpow2.f32 %v5714_v63 }
 0xe55   :  { %6925 = vpow2.f32 %v5713_v60 }
 0xe56   :  { %6927 = vpow2.f32 %v5715_v39  ;;  %v9187_v39 = vld [vmem:[#allocation8_spill] sm:$0xff] }
 0xe57   :  { %6929 = vtanh.f32 %v4096_v43  ;;  %v9188_v43 = vld [vmem:[#allocation9_spill] sm:$0xff] }
 0xe5e   :  { %v6924_v8 = vpop.eup %6923 }
 0xe5f   :  { %v6926_v37 = vpop.eup %6925  ;;  %v4110_v4 = vadd.f32 1.0, %v6924_v8  ;;  %v9189_v8 = vld [vmem:[#allocation10_spill] sm:$0xff] }
 0xe60   :  { %v4104_v23 = vadd.f32 1.0, %v6926_v37  ;;  %v6928_v2 = vpop.eup %6927  ;;  %v9190_v37 = vld [vmem:[#allocation11_spill] sm:$0xff] }
 0xe61   :  { %6931 = vrcp.f32 %v4110_v4  ;;  %v6930_v1 = vpop.eup %6929  ;;  %v4116_v45 = vadd.f32 1.0, %v6928_v2  ;;  %v9191_v4 = vld [vmem:[#allocation12_spill] sm:$0xff]  ;;  %v9193_v2 = vld [vmem:[#allocation14_spill] sm:$0xff] }
 0xe62   :  { %6933 = vrcp.f32 %v4104_v23  ;;  %v9192_v23 = vld [vmem:[#allocation13_spill] sm:$0xff] }
 0xe63   :  { %6935 = vrcp.f32 %v4116_v45  ;;  %v9197_v45 = vld [vmem:[#allocation18_spill] sm:$0xff] }
 0xe6b   :  { %v6932_v3 = vpop.eup %6931 }
 0xe6c   :  { %v6934_v15 = vpop.eup %6933  ;;  %v4119_v40 = vmul.f32 %v6932_v3, %v7937_v49  ;;  %v6740_v49 = vld [vmem:[%s9053_s1 + $0x38] ss:$20 sps:$4 sm:$0xff]  }
 0xe6d   :  { %v4120_v41 = vmul.f32 %v6934_v15, %v6930_v1  ;;  %v6936_v16 = vpop.eup %6935  ;;  %v9195_v1 = vld [vmem:[#allocation16_spill] sm:$0xff] }
 0xe6f   :  { %v8757_v6 = vadd.f32 %v4120_v41, %v4119_v40  ;;  %v9198_v41 = vld [vmem:[#allocation19_spill] sm:$0xff] }
 0xe71   :  { %6937 = vtanh.f32 %v8757_v6 }
 0xe7b   :  { %v6938_v34 = vpop.eup %6937 }
 0xe7c   :  { %v4123_v7 = vmul.f32 %v6938_v34, %v6936_v16  ;;  %v9199_v16 = vld [vmem:[#allocation20_spill] sm:$0xff]  ;;  %v9200_v34 = vld [vmem:[#allocation21_spill] sm:$0xff] }
 0xe7e   :  { %v4172_v12 = vpack.c.bf16 %v4123_v7, %v4123_v7  ;;  %v9203_v7 = vld [vmem:[#allocation24_spill] sm:$0xff] }
 0xe80   :  { %4414 = vmatmul.mubr.bf16.vlgmr.msra.gmra.mrb[72].mxu0 %v4172_v12  ;;  %4455 = vmatmul.mubr.bf16.vlgmr.msra.gmra.mrb[72].mxu1 %v4172_v12 }
 0xe81   :  { %6156 = vmatpush3.bf16.msra.mxu0 %v6739_v18  ;;  %6171 = vmatprep.mubr.msk.bf16.mxu0 %vm6971_vm2, %v9181_v28  ;;  %v9204_v18 = vld [vmem:[#allocation25_spill] sm:$0xff] }
 0xe82   :  { %6157 = vmatprep.subr.bf16.mxu0 %v9181_v28  ;;  %6417 = vmatpush3.bf16.msra.mxu1 %v8333_v52  ;;  %v6742_v52 = vld [vmem:[%s9053_s1 + $0x88] ss:$20 sps:$4 sm:$0xff]  }
 0xe83   :  { %6418 = vmatprep.subr.bf16.mxu1 %v9180_v22  ;;  %6207 = vmatprep.mubr.msk.f32.mxu1 %vm6971_vm2, %v9181_v28 }
 0xe85   :  { %6158 = vmatpush3.bf16.msra.mxu0 %v6740_v49 }
 0xe86   :  { %6159 = vmatprep.subr.bf16.mxu0 %v9181_v28  ;;  %6420 = vmatpush3.bf16.msra.mxu1 %v8339_v55  ;;  %v6744_v55 = vld [vmem:[%s9053_s1 + $0xd8] ss:$20 sps:$4 sm:$0xff]  }
 0xe87   :  { %6421 = vmatprep.subr.bf16.mxu1 %v9180_v22 }
 0xe89   :  { %6160 = vmatpush3.bf16.msra.mxu0 %v6741_v54 }
 0xe8a   :  { %6161 = vmatprep.subr.bf16.mxu0 %v9181_v28  ;;  %6423 = vmatpush3.bf16.msra.mxu1 %v8349_v26  ;;  %v6745_v26 = vld [vmem:[%s9053_s1 + $0x100] ss:$20 sps:$4 sm:$0xff]  }
 0xe8b   :  { %6424 = vmatprep.subr.bf16.mxu1 %v9180_v22 }
 0xe8d   :  { %6162 = vmatpush3.bf16.msra.mxu0 %v6742_v52 }
 0xe8e   :  { %6163 = vmatprep.subr.bf16.mxu0 %v9181_v28  ;;  %6426 = vmatpush3.bf16.msra.mxu1 %v8359_v57  ;;  %v6746_v57 = vld [vmem:[%s9053_s1 + $0x128] ss:$20 sps:$4 sm:$0xff]  }
 0xe8f   :  { %6427 = vmatprep.subr.bf16.mxu1 %v9180_v22 }
 0xe91   :  { %6164 = vmatpush3.bf16.msra.mxu0 %v6743_v27  ;;  %v6750_v27 = vld [vmem:[%s9053_s1 + $0x88] ss:$20 sps:$4 sm:$0xff]  }
 0xe92   :  { %6165 = vmatprep.subr.bf16.mxu0 %v9181_v28  ;;  %6429 = vmatpush3.bf16.msra.mxu1 %v8369_v46 }
 0xe93   :  { %6430 = vmatprep.subr.bf16.mxu1 %v9180_v22 }
 0xe95   :  { %6166 = vmatpush3.bf16.msra.mxu0 %v6744_v55  ;;  %v6751_v55 = vld [vmem:[%s9053_s1 + $0xb0] ss:$20 sps:$4 sm:$0xff]  }
 0xe96   :  { %6167 = vmatprep.subr.bf16.mxu0 %v9181_v28  ;;  %6432 = vmatpush3.bf16.msra.mxu1 %v8401_v19 }
 0xe97   :  { %6433 = vmatprep.subr.bf16.mxu1 %v9180_v22 }
 0xe99   :  { %6168 = vmatpush3.bf16.msra.mxu0 %v6745_v26  ;;  %v6752_v26 = vld [vmem:[%s9053_s1 + $0xd8] ss:$20 sps:$4 sm:$0xff]  }
 0xe9a   :  { %6169 = vmatprep.subr.bf16.mxu0 %v9181_v28  ;;  %6435 = vmatpush3.bf16.msra.mxu1 %v8407_v31 }
 0xe9b   :  { %6436 = vmatprep.subr.bf16.mxu1 %v9180_v22 }
 0xe9d   :  { %6170 = vmatpush3.bf16.msra.mxu0 %v6746_v57  ;;  %v6753_v57 = vld [vmem:[%s9053_s1 + $0x100] ss:$20 sps:$4 sm:$0xff]  }
 0xe9e   :  { %6438 = vmatpush3.bf16.msra.mxu1 %v8417_v50  ;;  %6439 = vmatprep.subr.bf16.mxu0 %v9180_v22 }
 0xe9f   :  { %4882 = vmatprep.subr.bf16.mxu1 %v8512_v36 }
 0xea0   :  { %6172 = vmatmul.mubr.bf16.vlgmr.msra.gmra.mrb[76].mxu0 %v4172_v12  ;;  %v9205_v12 = vld [vmem:[#allocation26_spill] sm:$0xff] }
 0xea1   :  { %6441 = vmatpush3.bf16.msra.mxu0 %v8430_v59  ;;  %6242 = vmatprep.mubr.msk.f32.mxu0 %vm6971_vm2, %v9181_v28 }
 0xea2   :  { %6442 = vmatprep.subr.bf16.mxu0 %v9180_v22 }
 0xea5   :  { %6444 = vmatpush3.bf16.msra.mxu0 %v8436_v17 }
 0xea6   :  { %6445 = vmatprep.subr.bf16.mxu0 %v9180_v22 }
 0xea9   :  { %6447 = vmatpush3.bf16.msra.mxu0 %v8446_v51 }
 0xeaa   :  { %6448 = vmatprep.subr.bf16.mxu0 %v9180_v22 }
 0xead   :  { %6450 = vmatpush3.bf16.msra.mxu0 %v8456_v56 }
 0xeae   :  { %6451 = vmatprep.subr.bf16.mxu0 %v9180_v22 }
 0xeb1   :  { %6453 = vmatpush3.bf16.msra.mxu0 %v8466_v33 }
 0xeb2   :  { %6454 = vmatprep.subr.bf16.mxu0 %v9180_v22 }
 0xeb5   :  { %6456 = vmatpush3.bf16.msra.mxu0 %v8476_v24 }
 0xeb6   :  { %6457 = vmatprep.subr.bf16.mxu0 %v9180_v22 }
 0xeb9   :  { %6459 = vmatpush3.bf16.msra.mxu0 %v8486_v10 }
 0xeba   :  { %6460 = vmatprep.subr.bf16.mxu0 %v9180_v22 }
 0xebd   :  { %6462 = vmatpush3.bf16.msra.mxu0 %v8501_v32 }
 0xebe   :  { %4923 = vmatprep.subr.bf16.mxu0 %v8517_v62 }
 0xf53   :  { %v8830_v46 = vpop.f32.mrb[72].mxu0  ;;  %v8832_v19 = vpop.f32.mrb[72].mxu1 }
 0xf54   :  { %v8834_v31 = vpop.f32.mrb[73].mxu0  ;;  %v8836_v50 = vpop.f32.mrb[73].mxu1 }
 0xf55   :  { %v4419_v59 = vpop.f32.mrb[74].mxu0  ;;  %v4460_v17 = vpop.f32.mrb[74].mxu1 }
 0xf56   :  { %v4420_v51 = vpop.f32.mrb[75].mxu0  ;;  %v4461_v56 = vpop.f32.mrb[75].mxu1  ;;  %v6754_v59 = vld [vmem:[%s9053_s1 + $0x128] ss:$20 sps:$4 sm:$0xff]   ;;  %v4968_v17 = vld [vmem:[%s9068_s12] sm:$0xf] }
 0xf57   :  { %v4981_v51 = vrot.slane %v4968_v17, %v9182_v61 }
 0xf73   :  { %v4497_v33 = vpop.f32.mrb[76].mxu0 }
 0xf74   :  { %v4503_v24 = vadd.f32 %v4497_v33, %v8377_v35  ;;  %v6173_v10 = vpop.f32.mrb[77].mxu0 }
 0xf75   :  { %v4500_v36 = vpop.f32.mrb[78].mxu0 }
 0xf76   :  { %6939 = vtanh.f32 %v4503_v24  ;;  %v6174_v32 = vpop.f32.mrb[79].mxu0 }
 0xf80   :  { %v6940_v62 = vpop.eup %6939 }
 0xf81   :  { %v4505_v48 = vmul.f32 1.442695, %v6940_v62 }
 0xf83   :  { %6941 = vpow2.f32 %v4505_v48 }
 0xf8d   :  { %v6942_v11 = vpop.eup %6941 }
 0xf8e   :  { %v4507_v63 = vmul.f32 %v6942_v11, %v8385_v20 }
 0xf90   :  { %4508 = vadd.xlane.f32.xlu0 %v4507_v63 }
0x101d   :  { %v4509_v60 = vpop.xlane.xlu0 %4508 }
0x101e   :  { %6943 = vrcp.f32 %v4509_v60 }
0x1028   :  { %v6944_v9 = vpop.eup %6943 }
0x1029   :  { %v4511_v13 = vmul.f32 %v6944_v9, %v4507_v63 }
0x102b   :  { %5756 = vst [vmem:[%s9065_s16 + $0x8] sm:$0xff] %v4511_v13  ;;  %6208 = vmatmul.mubr.f32.vlgmr.msra.gmra.mrb[66].mxu1 %v4511_v13 }
0x102c   :  { %4883 = vmatpush1.bf16.msra.mxu1 %v8507_v42  ;;  %4914 = vmatprep.mubr.bf16.mxu1 %v9134_v0  ;;  %v9194_v42 = vld [vmem:[#allocation15_spill] sm:$0xff] }
0x102d   :  { %4884 = vmatprep.subr.bf16.mxu1 %v8523_v38  ;;  %v9196_v38 = vld [vmem:[#allocation17_spill] sm:$0xff] }
0x1030   :  { %4885 = vmatpush1.bf16.msra.mxu1 %v9186_v58 }
0x1031   :  { %4886 = vmatprep.subr.bf16.mxu1 %v9187_v39 }
0x1034   :  { %4887 = vmatpush1.bf16.msra.mxu1 %v9188_v43 }
0x1035   :  { %4888 = vmatprep.subr.bf16.mxu1 %v9189_v8 }
0x1038   :  { %4889 = vmatpush1.bf16.msra.mxu1 %v9190_v37 }
0x1039   :  { %4890 = vmatprep.subr.bf16.mxu1 %v9191_v4 }
0x103c   :  { %4891 = vmatpush1.bf16.msra.mxu1 %v9192_v23 }
0x103d   :  { %4892 = vmatprep.subr.bf16.mxu1 %v9193_v2 }
0x1040   :  { %4893 = vmatpush1.bf16.msra.mxu1 %v9194_v42 }
0x1041   :  { %4894 = vmatprep.subr.bf16.mxu1 %v9195_v1 }
0x1044   :  { %4895 = vmatpush1.bf16.msra.mxu1 %v9196_v38 }
0x1045   :  { %4896 = vmatprep.subr.bf16.mxu1 %v8596_v44  ;;  %v9201_v44 = vld [vmem:[#allocation22_spill] sm:$0xff] }
0x1048   :  { %4897 = vmatpush1.bf16.msra.mxu1 %v8602_v53  ;;  %v9202_v53 = vld [vmem:[#allocation23_spill] sm:$0xff] }
0x1049   :  { %6245 = vmatprep.subr.bf16.mxu1 %v9181_v28 }
0x10fe   :  { %v4596_v3 = vpop.f32.mrb[66].mxu1 }
0x10ff   :  { %v4600_v15 = vmul.f32 %v4596_v3, %v4503_v24  ;;  %v6209_v40 = vpop.f32.mrb[67].mxu1  ;;  %v4977_v24 = vrot.slane %v4968_v17, %v9183_v29  ;;  %v4985_v29 = vrot.slane %v4968_v17, %v9184_v21 }
0x1101   :  { %6243 = vmatmul.mubr.f32.vlgmr.msra.gmra.mrb[66].mxu0 %v4600_v15 }
0x1102   :  { %4924 = vmatpush1.bf16.msra.mxu0 %v8610_v25  ;;  %4955 = vmatprep.mubr.bf16.mxu0 %v9134_v0  ;;  %v9206_v25 = vld [vmem:[#allocation27_spill] sm:$0xff]  ;;  %v9207_v0 = vld [vmem:[#allocation28_spill] sm:$0xff] }
0x1103   :  { %4925 = vmatprep.subr.bf16.mxu0 %v9197_v45 }
0x1106   :  { %4926 = vmatpush1.bf16.msra.mxu0 %v9198_v41 }
0x1107   :  { %4927 = vmatprep.subr.bf16.mxu0 %v9199_v16 }
0x110a   :  { %4928 = vmatpush1.bf16.msra.mxu0 %v9200_v34  ;;  %v5134_v34 = vld [vmem:[%s9062_s9] sm:$0xff] }
0x110b   :  { %4929 = vmatprep.subr.bf16.mxu0 %v9201_v44  ;;  %v5136_v44 = vld [vmem:[%s9062_s9 + $0x10] sm:$0xff] }
0x110e   :  { %4930 = vmatpush1.bf16.msra.mxu0 %v9202_v53 }
0x110f   :  { %4931 = vmatprep.subr.bf16.mxu0 %v9203_v7  ;;  %v5137_v7 = vld [vmem:[%s9062_s9 + $0x18] sm:$0xff] }
0x1112   :  { %4932 = vmatpush1.bf16.msra.mxu0 %v9204_v18  ;;  %v6467_v18 = vpack.c.bf16 %v5137_v7, %v5136_v44 }
0x1113   :  { %4933 = vmatprep.subr.bf16.mxu0 %v9205_v12  ;;  %v5139_v12 = vld [vmem:[%s9062_s9 + $0x28] sm:$0xff] }
0x1116   :  { %4934 = vmatpush1.bf16.msra.mxu0 %v9206_v25 }
0x1117   :  { %4935 = vmatprep.subr.bf16.mxu0 %v9207_v0  ;;  %v5140_v0 = vld [vmem:[%s9062_s9 + $0x30] sm:$0xff] }
0x111a   :  { %4936 = vmatpush1.bf16.msra.mxu0 %v8683_v14  ;;  %v6747_v14 = vld [vmem:[%s9053_s1 + $0x10] ss:$20 sps:$4 sm:$0xff]  }
0x111b   :  { %4937 = vmatprep.subr.bf16.mxu0 %v8689_v5  ;;  %v6748_v5 = vld [vmem:[%s9053_s1 + $0x38] ss:$20 sps:$4 sm:$0xff]  }
0x111e   :  { %4938 = vmatpush1.bf16.msra.mxu0 %v8695_v30  ;;  %v6749_v30 = vld [vmem:[%s9053_s1 + $0x60] ss:$20 sps:$4 sm:$0xff]  }
0x111f   :  { %6463 = vmatprep.subr.bf16.mxu0 %v9180_v22 }
0x11d4   :  { %v4683_v49 = vpop.f32.mrb[66].mxu0 }
0x11d5   :  { %5757 = vst [vmem:[%s9067_s15 + $0x8] sm:$0xff] %v4683_v49  ;;  %v4721_v54 = vpack.c.bf16 %v4683_v49, %v4683_v49  ;;  %v6244_v52 = vpop.f32.mrb[67].mxu0  ;;  %v5141_v49 = vld [vmem:[%s9062_s9 + $0x38] sm:$0xff] }
0x11d6   :  { %v5142_v52 = vld [vmem:[%s9062_s9 + $0x40] sm:$0xff] }
0x11d7   :  { %4915 = vmatmul.mubr.bf16.vlgmr.msra.gmra.mrb[76].mxu1 %v4721_v54  ;;  %4956 = vmatmul.mubr.bf16.vlgmr.msra.gmra.mrb[80].mxu0 %v4721_v54  ;;  %v6473_v54 = vpack.c.bf16 %v5141_v49, %v5140_v0 }
0x11d8   :  { %6261 = vmatprep.mubr.msk.bf16.mxu1 %vm6971_vm2, %v9181_v28  ;;  %6297 = vmatprep.mubr.msk.f32.mxu0 %vm6971_vm2, %v9181_v28 }
0x11d9   :  { %6246 = vmatpush3.bf16.msra.mxu1 %v6747_v14  ;;  %v5143_v14 = vld [vmem:[%s9062_s9 + $0x48] sm:$0xff] }
0x11da   :  { %6247 = vmatprep.subr.bf16.mxu1 %v9181_v28 }
0x11dd   :  { %6248 = vmatpush3.bf16.msra.mxu1 %v6748_v5  ;;  %v6476_v5 = vpack.c.bf16 %v5143_v14, %v5142_v52 }
0x11de   :  { %6249 = vmatprep.subr.bf16.mxu1 %v9181_v28 }
0x11e1   :  { %6250 = vmatpush3.bf16.msra.mxu1 %v6749_v30 }
0x11e2   :  { %6251 = vmatprep.subr.bf16.mxu1 %v9181_v28 }
0x11e5   :  { %6252 = vmatpush3.bf16.msra.mxu1 %v6750_v27 }
0x11e6   :  { %6253 = vmatprep.subr.bf16.mxu1 %v9181_v28 }
0x11e9   :  { %6254 = vmatpush3.bf16.msra.mxu1 %v6751_v55 }
0x11ea   :  { %6255 = vmatprep.subr.bf16.mxu1 %v9181_v28 }
0x11ed   :  { %6256 = vmatpush3.bf16.msra.mxu1 %v6752_v26 }
0x11ee   :  { %6257 = vmatprep.subr.bf16.mxu1 %v9181_v28 }
0x11f1   :  { %6258 = vmatpush3.bf16.msra.mxu1 %v6753_v57 }
0x11f2   :  { %6259 = vmatprep.subr.bf16.mxu1 %v9181_v28 }
0x11f5   :  { %6260 = vmatpush3.bf16.msra.mxu1 %v6754_v59 }
0x11f6   :  { %6487 = vmatprep.subr.bf16.mxu1 %v9180_v22 }
0x12aa   :  { %v4916_v56 = vpop.f32.mrb[76].mxu1  ;;  %v4957_v33 = vpop.f32.mrb[80].mxu0 }
0x12ab   :  { %v4964_v10 = vadd.f32 %v4916_v56, %v8830_v46  ;;  %v4966_v36 = vadd.f32 %v4957_v33, %v8832_v19  ;;  %v4918_v32 = vpop.f32.mrb[77].mxu1  ;;  %v4959_v62 = vpop.f32.mrb[81].mxu0  ;;  %v4973_v19 = vrot.slane %v4968_v17, %v9185_v47  ;;  %v5144_v33 = vld [vmem:[%s9062_s9 + $0x50] sm:$0xff] }
0x12ac   :  { %v4965_v48 = vadd.f32 %v4918_v32, %v8834_v31  ;;  %v4967_v11 = vadd.f32 %v4959_v62, %v8836_v50  ;;  %v4920_v63 = vpop.f32.mrb[78].mxu1  ;;  %v4961_v60 = vpop.f32.mrb[82].mxu0  ;;  %v5148_v32 = vld [vmem:[%s9062_s9 + $0x70] sm:$0xff]  ;;  %v5149_v62 = vld [vmem:[%s9062_s9 + $0x78] sm:$0xff] }
0x12ad   :  { %v4992_v9 = vadd.f32 %v4981_v51, %v4966_v36  ;;  %v4921_v13 = vpop.f32.mrb[79].mxu1  ;;  %v4962_v58 = vpop.f32.mrb[83].mxu0  ;;  %v4990_v37 = vadd.f32 %v4973_v19, %v4964_v10  ;;  %v5147_v36 = vld [vmem:[%s9062_s9 + $0x68] sm:$0xff]  ;;  %v5223_v60 = vld [vmem:[%s9064_s10 + $0x10] sm:$0xff] }
0x12ae   :  { %v4991_v61 = vadd.f32 %v4977_v24, %v4965_v48  ;;  %v4993_v46 = vadd.f32 %v4985_v29, %v4967_v11  ;;  %v5146_v24 = vld [vmem:[%s9062_s9 + $0x60] sm:$0xff]  ;;  %v6485_v48 = vpack.c.bf16 %v5149_v62, %v5148_v32  ;;  %v5222_v63 = vld [vmem:[%s9064_s10 + $0x8] sm:$0xff]  ;;  %v5224_v13 = vld [vmem:[%s9064_s10 + $0x18] sm:$0xff] }
0x12af   :  { %v5791_v39 = vmul.f32 -1.442695, %v4992_v9  ;;  %v5221_v11 = vld [vmem:[%s9064_s10] sm:$0xff]  ;;  %v6491_v58 = vpack.c.bf16 %v5224_v13, %v5223_v60  ;;  %v5227_v29 = vld [vmem:[%s9064_s10 + $0x30] sm:$0xff] }
0x12b0   :  { %v5790_v43 = vmul.f32 -1.442695, %v4991_v61  ;;  %v5792_v8 = vmul.f32 -1.442695, %v4993_v46  ;;  %v6488_v9 = vpack.c.bf16 %v5222_v63, %v5221_v11  ;;  %v5225_v61 = vld [vmem:[%s9064_s10 + $0x20] sm:$0xff]  ;;  %v5228_v46 = vld [vmem:[%s9064_s10 + $0x38] sm:$0xff] }
0x12b1   :  { %6945 = vpow2.f32 %v5791_v39  ;;  %v5226_v39 = vld [vmem:[%s9064_s10 + $0x28] sm:$0xff]  ;;  %v6497_v19 = vpack.c.bf16 %v5228_v46, %v5227_v29 }
0x12b2   :  { %6947 = vpow2.f32 %v5790_v43  ;;  %v6494_v43 = vpack.c.bf16 %v5226_v39, %v5225_v61 }
0x12b3   :  { %6949 = vpow2.f32 %v5792_v8  ;;  %v5229_v8 = vld [vmem:[%s9064_s10 + $0x40] sm:$0xff] }
0x12b4   :  { %6951 = vtanh.f32 %v4990_v37  ;;  %v5230_v37 = vld [vmem:[%s9064_s10 + $0x48] sm:$0xff] }
0x12bb   :  { %v6946_v31 = vpop.eup %6945 }
0x12bc   :  { %v6948_v4 = vpop.eup %6947  ;;  %v5004_v50 = vadd.f32 1.0, %v6946_v31  ;;  %v6500_v31 = vpack.c.bf16 %v5230_v37, %v5229_v8 }
0x12bd   :  { %v4998_v23 = vadd.f32 1.0, %v6948_v4  ;;  %v6950_v2 = vpop.eup %6949  ;;  %v5231_v4 = vld [vmem:[%s9064_s10 + $0x50] sm:$0xff] }
0x12be   :  { %6953 = vrcp.f32 %v5004_v50  ;;  %v6952_v42 = vpop.eup %6951  ;;  %v5010_v3 = vadd.f32 1.0, %v6950_v2  ;;  %v5232_v50 = vld [vmem:[%s9064_s10 + $0x58] sm:$0xff]  ;;  %v5233_v2 = vld [vmem:[%s9064_s10 + $0x60] sm:$0xff] }
0x12bf   :  { %6955 = vrcp.f32 %v4998_v23  ;;  %v6503_v23 = vpack.c.bf16 %v5232_v50, %v5231_v4 }
0x12c0   :  { %6957 = vrcp.f32 %v5010_v3 }
0x12c8   :  { %v6954_v1 = vpop.eup %6953 }
0x12c9   :  { %v6956_v38 = vpop.eup %6955  ;;  %v5013_v21 = vmul.f32 %v6954_v1, %v8757_v6  ;;  %v5135_v6 = vld [vmem:[%s9062_s9 + $0x8] sm:$0xff] }
0x12ca   :  { %v5014_v15 = vmul.f32 %v6956_v38, %v6952_v42  ;;  %v6958_v47 = vpop.eup %6957  ;;  %v6464_v53 = vpack.c.bf16 %v5135_v6, %v5134_v34  ;;  %v5234_v42 = vld [vmem:[%s9064_s10 + $0x68] sm:$0xff] }
0x12cb   :  { %v6506_v1 = vpack.c.bf16 %v5234_v42, %v5233_v2 }
0x12cc   :  { %v5015_v40 = vadd.f32 %v5014_v15, %v5013_v21  ;;  %6465 = vmatpush3.bf16.msra.mxu0 %v6464_v53  ;;  %v5235_v15 = vld [vmem:[%s9064_s10 + $0x70] sm:$0xff] }
0x12cd   :  { %6466 = vmatprep.subr.bf16.mxu0 %v9180_v22 }
0x12ce   :  { %6959 = vtanh.f32 %v5015_v40  ;;  %v5236_v40 = vld [vmem:[%s9064_s10 + $0x78] sm:$0xff] }
0x12d0   :  { %6468 = vmatpush3.bf16.msra.mxu0 %v6467_v18 }
0x12d1   :  { %6469 = vmatprep.subr.bf16.mxu0 %v9180_v22 }
0x12d8   :  { %v6960_v45 = vpop.eup %6959 }
0x12d9   :  { %v5017_v41 = vmul.f32 %v6960_v45, %v6958_v47  ;;  %v6509_v47 = vpack.c.bf16 %v5236_v40, %v5235_v15 }
0x12db   :  { %v5034_v16 = vpack.c.bf16 %v5017_v41, %v5017_v41 }
0x12dd   :  { %6262 = vmatmul.mubr.bf16.vlgmr.msra.gmra.mrb[80].mxu1 %v5034_v16 }
0x12de   :  { %6332 = vmatprep.mubr.msk.f32.mxu1 %vm6971_vm2, %v9181_v28  ;;  %v5138_v28 = vld [vmem:[%s9062_s9 + $0x20] sm:$0xff]  ;;  %6489 = vmatpush3.bf16.msra.mxu1 %v6488_v9 }
0x12df   :  { %v6470_v25 = vpack.c.bf16 %v5139_v12, %v5138_v28  ;;  %6490 = vmatprep.subr.bf16.mxu1 %v9180_v22 }
0x12e1   :  { %6471 = vmatpush3.bf16.msra.mxu0 %v6470_v25 }
0x12e2   :  { %6472 = vmatprep.subr.bf16.mxu0 %v9180_v22  ;;  %6492 = vmatpush3.bf16.msra.mxu1 %v6491_v58 }
0x12e3   :  { %6493 = vmatprep.subr.bf16.mxu1 %v9180_v22 }
0x12e5   :  { %6474 = vmatpush3.bf16.msra.mxu0 %v6473_v54 }
0x12e6   :  { %6475 = vmatprep.subr.bf16.mxu0 %v9180_v22  ;;  %6495 = vmatpush3.bf16.msra.mxu1 %v6494_v43 }
0x12e7   :  { %6496 = vmatprep.subr.bf16.mxu1 %v9180_v22 }
0x12e9   :  { %6477 = vmatpush3.bf16.msra.mxu0 %v6476_v5 }
0x12ea   :  { %6478 = vmatprep.subr.bf16.mxu0 %v9180_v22  ;;  %6498 = vmatpush3.bf16.msra.mxu1 %v6497_v19 }
0x12eb   :  { %6499 = vmatprep.subr.bf16.mxu1 %v9180_v22 }
0x12ee   :  { %6501 = vmatpush3.bf16.msra.mxu1 %v6500_v31 }
0x12ef   :  { %6502 = vmatprep.subr.bf16.mxu1 %v9180_v22 }
0x12f2   :  { %6504 = vmatpush3.bf16.msra.mxu1 %v6503_v23 }
0x12f3   :  { %6505 = vmatprep.subr.bf16.mxu1 %v9180_v22 }
0x12f6   :  { %6507 = vmatpush3.bf16.msra.mxu1 %v6506_v1 }
0x12f7   :  { %6508 = vmatprep.subr.bf16.mxu1 %v9180_v22 }
0x12fa   :  { %6510 = vmatpush3.bf16.msra.mxu1 %v6509_v47 }
0x13b0   :  { %v5117_v30 = vpop.f32.mrb[80].mxu1 }
0x13b1   :  { %v8966_v27 = vadd.f32 %v5117_v30, %v8377_v35  ;;  %v6263_v55 = vpop.f32.mrb[81].mxu1  ;;  %v5145_v35 = vld [vmem:[%s9062_s9 + $0x58] sm:$0xff] }
0x13b2   :  { %v5120_v26 = vpop.f32.mrb[82].mxu1  ;;  %v6479_v10 = vpack.c.bf16 %v5145_v35, %v5144_v33 }
0x13b3   :  { %6961 = vtanh.f32 %v8966_v27  ;;  %v6264_v57 = vpop.f32.mrb[83].mxu1 }
0x13b4   :  { %6480 = vmatpush3.bf16.msra.mxu0 %v6479_v10 }
0x13b5   :  { %6481 = vmatprep.subr.bf16.mxu0 %v9180_v22 }
0x13bd   :  { %v6962_v59 = vpop.eup %6961 }
0x13be   :  { %v5125_v17 = vmul.f32 1.442695, %v6962_v59 }
0x13c0   :  { %6963 = vpow2.f32 %v5125_v17 }
0x13ca   :  { %v6964_v51 = vpop.eup %6963 }
0x13cb   :  { %v5127_v56 = vmul.f32 %v6964_v51, %v8385_v20  ;;  %v6482_v20 = vpack.c.bf16 %v5147_v36, %v5146_v24 }
0x13cd   :  { %5128 = vadd.xlane.f32.xlu1 %v5127_v56  ;;  %6483 = vmatpush3.bf16.msra.mxu0 %v6482_v20 }
0x13ce   :  { %6484 = vmatprep.subr.bf16.mxu0 %v9180_v22 }
0x13d1   :  { %6486 = vmatpush3.bf16.msra.mxu0 %v6485_v48 }
0x145a   :  { %v5129_v38 = vpop.xlane.xlu1 %5128 }
0x145b   :  { %6965 = vrcp.f32 %v5129_v38 }
0x1465   :  { %v6966_v21 = vpop.eup %6965 }
0x1466   :  { %v5131_v3 = vmul.f32 %v6966_v21, %v5127_v56 }
0x1468   :  { %5801 = vst [vmem:[%s9065_s16 + $0x10] sm:$0xff] %v5131_v3  ;;  %6298 = vmatmul.mubr.f32.vlgmr.msra.gmra.mrb[84].mxu0 %v5131_v3 }
0x153b   :  { %v5216_v22 = vpop.f32.mrb[84].mxu0 }
0x153c   :  { %v5220_v45 = vmul.f32 %v5216_v22, %v8966_v27  ;;  %v6299_v41 = vpop.f32.mrb[85].mxu0 }
0x153e   :  { %6333 = vmatmul.mubr.f32.vlgmr.msra.gmra.mrb[84].mxu1 %v5220_v45 }
0x1611   :  { %v5303_v16 = vpop.f32.mrb[84].mxu1 }
0x1612   :  { %5802 = vst [vmem:[%s9067_s15 + $0x10] sm:$0xff] %v5303_v16  ;;  %v6334_v34 = vpop.f32.mrb[85].mxu1 }

</bundles_post_ra>
